<compile_context>
chip_gen: v7x
topology: tpu7x:2x2x1
jax: 0.10.0
libtpu: 0.0.40
codegen_flags: <defaults>
</compile_context>

<pallas_src>
import functools

import jax
import jax.numpy as jnp
from jax.experimental import pallas as pl
from jax.experimental.pallas import tpu as pltpu

F32 = jnp.float32
BF16 = jnp.bfloat16
EPS = 1e-10

N_PAD = 128     # lane padding for mid_ch / feat_dim / num_classes
BLK = 8         # images per grid step in the fused backbone kernel
NEG = -1e30


def _full_spec(shape):
    # single full-array block (grid=(1,))
    return pl.BlockSpec(shape, lambda i: (0,) * len(shape))


# --------------------------------------------------------------------------
# Fused backbone kernel:  im2col-patches @ Wconv -> ReLU -> GAP -> feat -> cls
# --------------------------------------------------------------------------

def _backbone_kernel(p_ref, wc_ref, bc_ref, wf_ref, bf_ref, wk_ref, bk_ref,
                     logit_ref, feat_ref):
    blk, hw, kp = p_ref.shape
    np_ = wc_ref.shape[1]
    x = p_ref[...].reshape(blk * hw, kp)                          # bf16
    conv = jnp.dot(x, wc_ref[...], preferred_element_type=jnp.float32)
    conv = jnp.maximum(conv + bc_ref[...], 0.0)                   # (blk*hw, NP) f32
    pooled = jnp.mean(conv.reshape(blk, hw, np_), axis=1)         # GAP  (blk, NP)
    feat = jnp.dot(pooled, wf_ref[...],
                   preferred_element_type=jnp.float32) + bf_ref[...]
    logits = jnp.dot(feat, wk_ref[...],
                     preferred_element_type=jnp.float32) + bk_ref[...]
    feat_ref[...] = feat
    logit_ref[...] = logits


def _pad_axis(x, axis, target):
    pad = target - x.shape[axis]
    if pad <= 0:
        return x
    widths = [(0, 0)] * x.ndim
    widths[axis] = (0, pad)
    return jnp.pad(x, widths)


def backbone_all(params, imgs):
    """imgs: (N, C, H, W) NCHW -> (logits (N, N_PAD), feat (N, N_PAD)), f32.

    Padded logit/feat columns (>= num_classes / feat_dim) are exactly zero.
    """
    N, C, H, W = imgs.shape
    KP, NP = params["w_conv"].shape
    HW = H * W

    patches = jax.lax.conv_general_dilated_patches(
        imgs, filter_shape=(3, 3), window_strides=(1, 1), padding="SAME",
        dimension_numbers=("NCHW", "OIHW", "NCHW"))               # (N, C*9, H, W)
    patches = jnp.transpose(patches, (0, 2, 3, 1)).reshape(N, HW, C * 9)
    patches = _pad_axis(patches, 2, KP)                           # pad K -> KP
    Np = ((N + BLK - 1) // BLK) * BLK
    patches = _pad_axis(patches, 0, Np).astype(BF16)              # pad batch, bf16 MXU feed
    wc = params["w_conv"].astype(BF16)

    logits, feats = pl.pallas_call(
        _backbone_kernel,
        grid=(Np // BLK,),
        in_specs=[
            pl.BlockSpec((BLK, HW, KP), lambda i: (i, 0, 0)),
            pl.BlockSpec((KP, NP), lambda i: (0, 0)),
            pl.BlockSpec((1, NP), lambda i: (0, 0)),
            pl.BlockSpec((NP, NP), lambda i: (0, 0)),
            pl.BlockSpec((1, NP), lambda i: (0, 0)),
            pl.BlockSpec((NP, NP), lambda i: (0, 0)),
            pl.BlockSpec((1, NP), lambda i: (0, 0)),
        ],
        out_specs=(pl.BlockSpec((BLK, NP), lambda i: (i, 0)),
                   pl.BlockSpec((BLK, NP), lambda i: (i, 0))),
        out_shape=(jax.ShapeDtypeStruct((Np, NP), F32),
                   jax.ShapeDtypeStruct((Np, NP), F32)),
        compiler_params=pltpu.CompilerParams(
            dimension_semantics=("parallel",)),
    )(patches, wc, params["b_conv"], params["w_feat"], params["b_feat"],
      params["w_cls"], params["b_cls"])
    return logits[:N], feats[:N]


# --------------------------------------------------------------------------
# Fused "head" kernel: softmax(output), softmax(logit_weak), max/argmax,
# cosine-similarity matrix of the image features.
# --------------------------------------------------------------------------

def _head_kernel(log_ref, feat_ref, po_ref, pw_ref, cos_ref, mp_ref, tu_ref,
                 *, num_classes, b):
    np_ = log_ref.shape[-1]
    valid = jax.lax.broadcasted_iota(jnp.int32, (1, np_), 1) < num_classes

    def masked_softmax(z):
        z = jnp.where(valid, z, NEG)
        m = jnp.max(z, axis=-1, keepdims=True)
        e = jnp.where(valid, jnp.exp(z - m), 0.0)
        return e / jnp.sum(e, axis=-1, keepdims=True)

    po = masked_softmax(log_ref[0:b, :])
    pw = masked_softmax(log_ref[b:2 * b, :])
    po_ref[...] = po
    pw_ref[...] = pw

    m = jnp.max(pw, axis=-1, keepdims=True)
    col = jax.lax.broadcasted_iota(jnp.int32, pw.shape, 1)
    idx = jnp.min(jnp.where(pw >= m, col, np_), axis=-1, keepdims=True)
    mp_ref[...] = m
    tu_ref[...] = idx.astype(jnp.int32)

    f = feat_ref[0:b, :]
    inv = jax.lax.rsqrt(jnp.sum(f * f, axis=-1, keepdims=True))
    fn = f * inv
    cos_ref[...] = jax.lax.dot_general(
        fn, fn, (((1,), (1,)), ((), ())), preferred_element_type=jnp.float32)


def pallas_head(logits_all, feats_all, b, num_classes):
    Np, NP = logits_all.shape
    return pl.pallas_call(
        functools.partial(_head_kernel, num_classes=num_classes, b=b),
        grid=(1,),
        in_specs=[_full_spec((Np, NP)), _full_spec((Np, NP))],
        out_specs=(_full_spec((b, NP)), _full_spec((b, NP)), _full_spec((b, b)),
                   _full_spec((b, 1)), _full_spec((b, 1))),
        out_shape=(jax.ShapeDtypeStruct((b, NP), F32),
                   jax.ShapeDtypeStruct((b, NP), F32),
                   jax.ShapeDtypeStruct((b, b), F32),
                   jax.ShapeDtypeStruct((b, 1), F32),
                   jax.ShapeDtypeStruct((b, 1), jnp.int32)),
    )(logits_all, feats_all)


# --------------------------------------------------------------------------
# Fused "losses" kernel: pos-BCE + entropy + labeled CE + fixmatch CE.
# --------------------------------------------------------------------------

def _losses_kernel(po_ref, pp_ref, zl_ref, ol_ref, zs_ref, ou_ref, mk_ref,
                   bce_ref, ent_ref, ce_ref, fm_ref, *, num_classes, eps):
    np_ = po_ref.shape[-1]
    valid = jax.lax.broadcasted_iota(jnp.int32, (1, np_), 1) < num_classes

    # BCEWithLogits(pos_sim, 1) = softplus(-pos_sim)
    s = jnp.sum(po_ref[...] * pp_ref[...], axis=-1, keepdims=True)     # (B,1)
    bce_ref[...] = jnp.mean(jnp.maximum(-s, 0.0)
                            + jnp.log1p(jnp.exp(-jnp.abs(s))), keepdims=True)

    # Entropy of the mean probability.
    pm = jnp.mean(po_ref[...], axis=0, keepdims=True)                  # (1,NP)
    ent_ref[...] = -jnp.sum(jnp.where(valid, pm * jnp.log(pm + eps), 0.0),
                            axis=-1, keepdims=True)

    def masked_ce(z, onehot):
        z = jnp.where(valid, z, NEG)
        m = jnp.max(z, axis=-1, keepdims=True)
        lse = jnp.log(jnp.sum(jnp.where(valid, jnp.exp(z - m), 0.0),
                              axis=-1, keepdims=True)) + m
        return -jnp.sum(onehot * (z - lse), axis=-1, keepdims=True)    # (rows,1)

    ce_ref[...] = jnp.mean(masked_ce(zl_ref[...], ol_ref[...]), keepdims=True)
    fm_ref[...] = jnp.mean(masked_ce(zs_ref[...], ou_ref[...]) * mk_ref[...],
                           keepdims=True)


def pallas_losses(prob_out, pos_prob, logits_lab, onehot_lab,
                  logit_s, onehot_u, mask, num_classes, eps):
    B, NP = prob_out.shape
    L = logits_lab.shape[0]
    scalar = jax.ShapeDtypeStruct((1, 1), F32)
    return pl.pallas_call(
        functools.partial(_losses_kernel, num_classes=num_classes, eps=eps),
        grid=(1,),
        in_specs=[_full_spec((B, NP)), _full_spec((B, NP)),
                  _full_spec((L, NP)), _full_spec((L, NP)),
                  _full_spec((B, NP)), _full_spec((B, NP)),
                  _full_spec((B, 1))],
        out_specs=(_full_spec((1, 1)),) * 4,
        out_shape=(scalar, scalar, scalar, scalar),
    )(prob_out, pos_prob, logits_lab, onehot_lab, logit_s, onehot_u, mask)


# --------------------------------------------------------------------------
# Eval-path masked softmax.
# --------------------------------------------------------------------------

def _masked_softmax_kernel(z_ref, o_ref, *, num_classes):
    z = z_ref[...]
    valid = jax.lax.broadcasted_iota(jnp.int32, (1, z.shape[-1]), 1) < num_classes
    z = jnp.where(valid, z, NEG)
    m = jnp.max(z, axis=-1, keepdims=True)
    e = jnp.where(valid, jnp.exp(z - m), 0.0)
    o_ref[...] = e / jnp.sum(e, axis=-1, keepdims=True)


def pallas_prob(logits, num_classes):
    B, NP = logits.shape
    return pl.pallas_call(
        functools.partial(_masked_softmax_kernel, num_classes=num_classes),
        grid=(1,),
        in_specs=[_full_spec((B, NP))],
        out_specs=_full_spec((B, NP)),
        out_shape=jax.ShapeDtypeStruct((B, NP), F32),
    )(logits)


# --------------------------------------------------------------------------
# Synthetic backbone parameters (lane-padded to N_PAD, K padded to sublane mult)
# --------------------------------------------------------------------------

def init_params(key, in_ch=3, mid_ch=16, feat_dim=32, num_classes=10):
    assert max(mid_ch, feat_dim, num_classes) <= N_PAD
    ks = jax.random.split(key, 4)
    k = in_ch * 9
    kp = ((k + 7) // 8) * 8
    w_conv = jnp.zeros((kp, N_PAD), F32).at[:k, :mid_ch].set(
        jax.random.normal(ks[0], (k, mid_ch), F32) * 0.1)
    w_feat = jnp.zeros((N_PAD, N_PAD), F32).at[:mid_ch, :feat_dim].set(
        jax.random.normal(ks[1], (mid_ch, feat_dim), F32) * 0.1)
    b_feat = jnp.zeros((1, N_PAD), F32).at[:, :feat_dim].set(
        jax.random.normal(ks[2], (1, feat_dim), F32) * 0.01)
    w_cls = jnp.zeros((N_PAD, N_PAD), F32).at[:feat_dim, :num_classes].set(
        jax.random.normal(ks[3], (feat_dim, num_classes), F32) * 0.1)
    return {
        "w_conv": w_conv,
        "b_conv": jnp.zeros((1, N_PAD), F32),
        "w_feat": w_feat,
        "b_feat": b_feat,
        "w_cls": w_cls,
        "b_cls": jnp.zeros((1, N_PAD), F32),
    }


# --------------------------------------------------------------------------
# NACH forward (jitted end-to-end)
# --------------------------------------------------------------------------

def _nach_forward(params, img, label, aug_weak, aug_strong, *,
                  num_classes, num_seen=5, threshold=0.95, eps=EPS,
                  mean_uncertainty=1.0, training=True):
    B = img.shape[0]
    num_label = label.shape[0]

    if not training:
        logits, _ = backbone_all(params, img)
        prob = pallas_prob(logits, num_classes)
        return prob[:, :num_classes], None, None, None

    # One fused backbone pass over the concatenated 3B batch.
    all_in = jnp.concatenate([img, aug_weak, aug_strong], axis=0)
    logits_all, feats_all = backbone_all(params, all_in)           # (3B, N_PAD)

    prob_out, prob_w, cos, maxp, tgt = pallas_head(
        logits_all, feats_all, B, num_classes)
    max_probs = maxp[:, 0]
    targets_u = tgt[:, 0]

    index_seen = (targets_u < num_seen).astype(F32)
    index_unseen = (targets_u >= num_seen).astype(F32)
    seen_count = jnp.sum(index_seen)
    unseen_count = jnp.sum(index_unseen)
    mask_seen = ((index_seen * max_probs) >= threshold).astype(F32)
    unseen_thr = threshold - min(2 * mean_uncertainty, 0.5)
    mask_unseen = ((index_unseen * max_probs) >= unseen_thr).astype(F32)
    # zero-guarded (reference divides by seen_count unguarded -> NaN risk)
    seen_prob = jnp.where(
        seen_count > 0,
        jnp.sum(index_seen * max_probs) / jnp.maximum(seen_count, 1.0) + eps, 0.0)
    unseen_prob = jnp.where(
        unseen_count > 0,
        jnp.sum(index_unseen * max_probs) / jnp.maximum(unseen_count, 1.0) + eps, 0.0)
    mask = mask_seen + mask_unseen

    # Positive pairs for labeled samples (vectorized; no host sync).
    # TODO(synk): original uses np.random.choice among same-label indices; this
    # is a deterministic "first other index with the same label" stand-in.
    lab_iota = jnp.arange(num_label, dtype=jnp.int32)
    same = (label[:, None] == label[None, :]) & (lab_iota[:, None] != lab_iota[None, :])
    has_other = jnp.any(same, axis=1)
    first_other = jnp.argmax(same, axis=1).astype(jnp.int32)
    pairs_lab = jnp.where(has_other, first_other, lab_iota)

    # Positive pairs for unlabeled samples via cosine nearest neighbours.
    # TODO(synk): top-k has no clean Pallas equivalent; kept as XLA glue.
    unlabel_cos = cos[num_label:, :]
    vals, pos_idx = jax.lax.top_k(unlabel_cos, 2)
    sub = cos[:num_label, :][:, pos_idx[:, 1]]                     # (L, B-L)
    max_pos = jax.lax.top_k(sub.T, 2)[0][:, 1]
    keep_second = (vals[:, 1] - max_pos) >= 0
    pos_idx_final = jnp.where(keep_second, pos_idx[:, 1],
                              pos_idx[:, 0]).astype(jnp.int32)

    pairs = jnp.concatenate([pairs_lab, pos_idx_final])
    pos_prob = jnp.take(prob_w, pairs, axis=0)                     # (B, N_PAD)

    NP = params["w_conv"].shape[1]
    onehot_lab = jax.nn.one_hot(label, NP, dtype=F32)
    onehot_u = jax.nn.one_hot(targets_u, NP, dtype=F32)
    logits_img = logits_all[:B]
    logit_s = logits_all[2 * B:3 * B]

    bce, ent, ce, fm = pallas_losses(
        prob_out, pos_prob, logits_img[:num_label], onehot_lab,
        logit_s, onehot_u, mask[:, None], num_classes, eps)

    results = {
        "bce-loss": bce[0, 0],
        "entropy-loss": ent[0, 0],
        "cross-entropy-loss": ce[0, 0],
        "fixmatch-loss": fm[0, 0],
    }
    return prob_out[:, :num_classes], results, seen_prob, unseen_prob


nach_forward = jax.jit(
    _nach_forward,
    static_argnames=("num_classes", "num_seen", "threshold", "eps",
                     "mean_uncertainty", "training"))


# --------------------------------------------------------------------------

if __name__ == "__main__":
    B, C, H, W = 8, 3, 16, 16
    NUM_CLASSES, NUM_SEEN, NUM_LABEL = 10, 5, 4

    key = jax.random.PRNGKey(0)
    kp, k1, k2, k3 = jax.random.split(key, 4)
    params = init_params(kp, in_ch=C, mid_ch=16, feat_dim=32,
                         num_classes=NUM_CLASSES)

    img = jax.random.normal(k1, (B, C, H, W), F32)
    aug_weak = img + 0.05 * jax.random.normal(k2, (B, C, H, W), F32)
    aug_strong = img + 0.25 * jax.random.normal(k3, (B, C, H, W), F32)
    label = jnp.array([0, 1, 0, 2], dtype=jnp.int32)               # (B * label_ratio,)

    prob_out, results, seen_prob, unseen_prob = nach_forward(
        params, img, label, aug_weak, aug_strong,
        num_classes=NUM_CLASSES, num_seen=NUM_SEEN,
        mean_uncertainty=1.0, training=True)

    jax.block_until_ready((prob_out, results, seen_prob, unseen_prob))
    print("KERNEL_OK")
</pallas_src>

<mosaic_0001>
module attributes {stable_mosaic.version = 11 : i64} {
  func.func @_backbone_kernel(%arg0: i32, %arg1: memref<8x256x32xbf16, #tpu.memory_space<vmem>>, %arg2: memref<32x128xbf16, #tpu.memory_space<vmem>>, %arg3: memref<1x128xf32, #tpu.memory_space<vmem>>, %arg4: memref<128x128xf32, #tpu.memory_space<vmem>>, %arg5: memref<1x128xf32, #tpu.memory_space<vmem>>, %arg6: memref<128x128xf32, #tpu.memory_space<vmem>>, %arg7: memref<1x128xf32, #tpu.memory_space<vmem>>, %arg8: memref<8x128xf32, #tpu.memory_space<vmem>>, %arg9: memref<8x128xf32, #tpu.memory_space<vmem>>) attributes {dimension_semantics = [#tpu.dimension_semantics<parallel>], iteration_bounds = array<i64: 3>, scalar_prefetch = 0 : i64, scratch_operands = 0 : i64, tpu.core_type = #tpu.core_type<tc>, window_params = [{transform_indices = @transform_0, window_bounds = array<i64: 8, 256, 32>}, {pipeline_mode = #tpu.pipeline_mode<synchronous>, transform_indices = @transform_1, window_bounds = array<i64: 32, 128>}, {pipeline_mode = #tpu.pipeline_mode<synchronous>, transform_indices = @transform_2, window_bounds = array<i64: 1, 128>}, {pipeline_mode = #tpu.pipeline_mode<synchronous>, transform_indices = @transform_3, window_bounds = array<i64: 128, 128>}, {pipeline_mode = #tpu.pipeline_mode<synchronous>, transform_indices = @transform_4, window_bounds = array<i64: 1, 128>}, {pipeline_mode = #tpu.pipeline_mode<synchronous>, transform_indices = @transform_5, window_bounds = array<i64: 128, 128>}, {pipeline_mode = #tpu.pipeline_mode<synchronous>, transform_indices = @transform_6, window_bounds = array<i64: 1, 128>}, {transform_indices = @transform_7, window_bounds = array<i64: 8, 128>}, {transform_indices = @transform_8, window_bounds = array<i64: 8, 128>}]} {
    %c0 = arith.constant 0 : index
    %c0_0 = arith.constant 0 : index
    %c0_1 = arith.constant 0 : index
    %0 = vector.load %arg1[%c0, %c0_0, %c0_1] : memref<8x256x32xbf16, #tpu.memory_space<vmem>>, vector<8x256x32xbf16>
    %1 = vector.shape_cast %0 : vector<8x256x32xbf16> to vector<2048x32xbf16>
    %c0_2 = arith.constant 0 : index
    %c0_3 = arith.constant 0 : index
    %2 = vector.load %arg2[%c0_2, %c0_3] : memref<32x128xbf16, #tpu.memory_space<vmem>>, vector<32x128xbf16>
    %cst = arith.constant dense<0.000000e+00> : vector<2048x128xf32>
    %3 = tpu.matmul %1, %2, %cst {dimension_numbers = #tpu.dot_dimension_numbers<[1], [0], [0], [1], [0, 0, 1, 1], [], []>} : vector<2048x32xbf16>, vector<32x128xbf16>, vector<2048x128xf32> -> vector<2048x128xf32>
    %c0_4 = arith.constant 0 : index
    %c0_5 = arith.constant 0 : index
    %4 = vector.load %arg3[%c0_4, %c0_5] : memref<1x128xf32, #tpu.memory_space<vmem>>, vector<1x128xf32>
    %5 = vector.broadcast %4 : vector<1x128xf32> to vector<2048x128xf32>
    %6 = arith.addf %3, %5 : vector<2048x128xf32>
    %cst_6 = arith.constant 0.000000e+00 : f32
    %7 = vector.broadcast %cst_6 : f32 to vector<2048x128xf32>
    %8 = arith.maximumf %6, %7 : vector<2048x128xf32>
    %9 = vector.shape_cast %8 : vector<2048x128xf32> to vector<8x256x128xf32>
    %cst_7 = arith.constant dense<0.000000e+00> : vector<8x128xf32>
    %10 = vector.multi_reduction <add>, %9, %cst_7 [1] : vector<8x256x128xf32> to vector<8x128xf32>
    %cst_8 = arith.constant 2.560000e+02 : f32
    %11 = vector.broadcast %cst_8 : f32 to vector<8x128xf32>
    %12 = arith.divf %10, %11 : vector<8x128xf32>
    %c0_9 = arith.constant 0 : index
    %c0_10 = arith.constant 0 : index
    %13 = vector.load %arg4[%c0_9, %c0_10] : memref<128x128xf32, #tpu.memory_space<vmem>>, vector<128x128xf32>
    %cst_11 = arith.constant dense<0.000000e+00> : vector<8x128xf32>
    %14 = tpu.matmul %12, %13, %cst_11 {dimension_numbers = #tpu.dot_dimension_numbers<[1], [0], [0], [1], [0, 0, 1, 1], [], []>} : vector<8x128xf32>, vector<128x128xf32>, vector<8x128xf32> -> vector<8x128xf32>
    %c0_12 = arith.constant 0 : index
    %c0_13 = arith.constant 0 : index
    %15 = vector.load %arg5[%c0_12, %c0_13] : memref<1x128xf32, #tpu.memory_space<vmem>>, vector<1x128xf32>
    %16 = vector.broadcast %15 : vector<1x128xf32> to vector<8x128xf32>
    %17 = arith.addf %14, %16 : vector<8x128xf32>
    %c0_14 = arith.constant 0 : index
    %c0_15 = arith.constant 0 : index
    %18 = vector.load %arg6[%c0_14, %c0_15] : memref<128x128xf32, #tpu.memory_space<vmem>>, vector<128x128xf32>
    %cst_16 = arith.constant dense<0.000000e+00> : vector<8x128xf32>
    %19 = tpu.matmul %17, %18, %cst_16 {dimension_numbers = #tpu.dot_dimension_numbers<[1], [0], [0], [1], [0, 0, 1, 1], [], []>} : vector<8x128xf32>, vector<128x128xf32>, vector<8x128xf32> -> vector<8x128xf32>
    %c0_17 = arith.constant 0 : index
    %c0_18 = arith.constant 0 : index
    %20 = vector.load %arg7[%c0_17, %c0_18] : memref<1x128xf32, #tpu.memory_space<vmem>>, vector<1x128xf32>
    %21 = vector.broadcast %20 : vector<1x128xf32> to vector<8x128xf32>
    %22 = arith.addf %19, %21 : vector<8x128xf32>
    %c0_19 = arith.constant 0 : index
    %c0_20 = arith.constant 0 : index
    %23 = vector.load %arg9[%c0_19, %c0_20] : memref<8x128xf32, #tpu.memory_space<vmem>>, vector<8x128xf32>
    tpu.vector_store %arg9[%c0_19, %c0_20], %17 {strides = array<i32>} : memref<8x128xf32, #tpu.memory_space<vmem>>, vector<8x128xf32>,
    %c0_21 = arith.constant 0 : index
    %c0_22 = arith.constant 0 : index
    %24 = vector.load %arg8[%c0_21, %c0_22] : memref<8x128xf32, #tpu.memory_space<vmem>>, vector<8x128xf32>
    tpu.vector_store %arg8[%c0_21, %c0_22], %22 {strides = array<i32>} : memref<8x128xf32, #tpu.memory_space<vmem>>, vector<8x128xf32>,
    return
  }
  func.func @transform_0(%arg0: i32) -> (i32, i32, i32) {
    %c0_i32 = arith.constant 0 : i32
    %c0_i32_0 = arith.constant 0 : i32
    %c0_i32_1 = arith.constant 0 : i32
    return %arg0, %c0_i32, %c0_i32_0 : i32, i32, i32
  }
  func.func @transform_1(%arg0: i32) -> (i32, i32) {
    %c0_i32 = arith.constant 0 : i32
    %c0_i32_0 = arith.constant 0 : i32
    %c0_i32_1 = arith.constant 0 : i32
    return %c0_i32, %c0_i32_0 : i32, i32
  }
  func.func @transform_2(%arg0: i32) -> (i32, i32) {
    %c0_i32 = arith.constant 0 : i32
    %c0_i32_0 = arith.constant 0 : i32
    %c0_i32_1 = arith.constant 0 : i32
    return %c0_i32, %c0_i32_0 : i32, i32
  }
  func.func @transform_3(%arg0: i32) -> (i32, i32) {
    %c0_i32 = arith.constant 0 : i32
    %c0_i32_0 = arith.constant 0 : i32
    %c0_i32_1 = arith.constant 0 : i32
    return %c0_i32, %c0_i32_0 : i32, i32
  }
  func.func @transform_4(%arg0: i32) -> (i32, i32) {
    %c0_i32 = arith.constant 0 : i32
    %c0_i32_0 = arith.constant 0 : i32
    %c0_i32_1 = arith.constant 0 : i32
    return %c0_i32, %c0_i32_0 : i32, i32
  }
  func.func @transform_5(%arg0: i32) -> (i32, i32) {
    %c0_i32 = arith.constant 0 : i32
    %c0_i32_0 = arith.constant 0 : i32
    %c0_i32_1 = arith.constant 0 : i32
    return %c0_i32, %c0_i32_0 : i32, i32
  }
  func.func @transform_6(%arg0: i32) -> (i32, i32) {
    %c0_i32 = arith.constant 0 : i32
    %c0_i32_0 = arith.constant 0 : i32
    %c0_i32_1 = arith.constant 0 : i32
    return %c0_i32, %c0_i32_0 : i32, i32
  }
  func.func @transform_7(%arg0: i32) -> (i32, i32) {
    %c0_i32 = arith.constant 0 : i32
    %c0_i32_0 = arith.constant 0 : i32
    return %arg0, %c0_i32 : i32, i32
  }
  func.func @transform_8(%arg0: i32) -> (i32, i32) {
    %c0_i32 = arith.constant 0 : i32
    %c0_i32_0 = arith.constant 0 : i32
    return %arg0, %c0_i32 : i32, i32
  }
}

module attributes {stable_mosaic.version = 11 : i64} {
  func.func @_head_kernel(%arg0: i32, %arg1: memref<24x128xf32, #tpu.memory_space<vmem>>, %arg2: memref<24x128xf32, #tpu.memory_space<vmem>>, %arg3: memref<8x128xf32, #tpu.memory_space<vmem>>, %arg4: memref<8x128xf32, #tpu.memory_space<vmem>>, %arg5: memref<8x8xf32, #tpu.memory_space<vmem>>, %arg6: memref<8x1xf32, #tpu.memory_space<vmem>>, %arg7: memref<8x1xi32, #tpu.memory_space<vmem>>) attributes {dimension_semantics = [#tpu.dimension_semantics<arbitrary>], iteration_bounds = array<i64: 1>, scalar_prefetch = 0 : i64, scratch_operands = 0 : i64, tpu.core_type = #tpu.core_type<tc>, window_params = [{pipeline_mode = #tpu.pipeline_mode<synchronous>, transform_indices = @transform_0, window_bounds = array<i64: 24, 128>}, {pipeline_mode = #tpu.pipeline_mode<synchronous>, transform_indices = @transform_1, window_bounds = array<i64: 24, 128>}, {pipeline_mode = #tpu.pipeline_mode<synchronous>, transform_indices = @transform_2, window_bounds = array<i64: 8, 128>}, {pipeline_mode = #tpu.pipeline_mode<synchronous>, transform_indices = @transform_3, window_bounds = array<i64: 8, 128>}, {pipeline_mode = #tpu.pipeline_mode<synchronous>, transform_indices = @transform_4, window_bounds = array<i64: 8, 8>}, {pipeline_mode = #tpu.pipeline_mode<synchronous>, transform_indices = @transform_5, window_bounds = array<i64: 8, 1>}, {pipeline_mode = #tpu.pipeline_mode<synchronous>, transform_indices = @transform_6, window_bounds = array<i64: 8, 1>}]} {
    %0 = tpu.iota {dimensions = array<i32: 1>} : vector<1x128xi32>
    %c10_i32 = arith.constant 10 : i32
    %1 = vector.broadcast %c10_i32 : i32 to vector<1x128xi32>
    %2 = arith.cmpi slt, %0, %1 : vector<1x128xi32>
    %c0 = arith.constant 0 : index
    %c0_0 = arith.constant 0 : index
    %3 = vector.load %arg1[%c0, %c0_0] : memref<24x128xf32, #tpu.memory_space<vmem>>, vector<8x128xf32>
    %cst = arith.constant -1.000000e+30 : f32
    %4 = vector.shape_cast %2 : vector<1x128xi1> to vector<1x128xi1>
    %5 = vector.broadcast %4 : vector<1x128xi1> to vector<8x128xi1>
    %6 = vector.broadcast %cst : f32 to vector<8x128xf32>
    %7 = arith.select %5, %3, %6 : vector<8x128xi1>, vector<8x128xf32>
    %cst_1 = arith.constant dense<0xFF800000> : vector<8xf32>
    %8 = vector.multi_reduction <maximumf>, %7, %cst_1 [1] : vector<8x128xf32> to vector<8xf32>
    %9 = vector.shape_cast %8 : vector<8xf32> to vector<8x1xf32>
    %10 = vector.broadcast %9 : vector<8x1xf32> to vector<8x128xf32>
    %11 = arith.subf %7, %10 : vector<8x128xf32>
    %12 = math.exp %11 : vector<8x128xf32>
    %cst_2 = arith.constant 0.000000e+00 : f32
    %13 = vector.shape_cast %2 : vector<1x128xi1> to vector<1x128xi1>
    %14 = vector.broadcast %13 : vector<1x128xi1> to vector<8x128xi1>
    %15 = vector.broadcast %cst_2 : f32 to vector<8x128xf32>
    %16 = arith.select %14, %12, %15 : vector<8x128xi1>, vector<8x128xf32>
    %cst_3 = arith.constant dense<0.000000e+00> : vector<8xf32>
    %17 = vector.multi_reduction <add>, %16, %cst_3 [1] : vector<8x128xf32> to vector<8xf32>
    %18 = vector.shape_cast %17 : vector<8xf32> to vector<8x1xf32>
    %19 = vector.broadcast %18 : vector<8x1xf32> to vector<8x128xf32>
    %20 = arith.divf %16, %19 : vector<8x128xf32>
    %c8 = arith.constant 8 : index
    %c0_4 = arith.constant 0 : index
    %21 = vector.load %arg1[%c8, %c0_4] : memref<24x128xf32, #tpu.memory_space<vmem>>, vector<8x128xf32>
    %cst_5 = arith.constant -1.000000e+30 : f32
    %22 = vector.shape_cast %2 : vector<1x128xi1> to vector<1x128xi1>
    %23 = vector.broadcast %22 : vector<1x128xi1> to vector<8x128xi1>
    %24 = vector.broadcast %cst_5 : f32 to vector<8x128xf32>
    %25 = arith.select %23, %21, %24 : vector<8x128xi1>, vector<8x128xf32>
    %cst_6 = arith.constant dense<0xFF800000> : vector<8xf32>
    %26 = vector.multi_reduction <maximumf>, %25, %cst_6 [1] : vector<8x128xf32> to vector<8xf32>
    %27 = vector.shape_cast %26 : vector<8xf32> to vector<8x1xf32>
    %28 = vector.broadcast %27 : vector<8x1xf32> to vector<8x128xf32>
    %29 = arith.subf %25, %28 : vector<8x128xf32>
    %30 = math.exp %29 : vector<8x128xf32>
    %cst_7 = arith.constant 0.000000e+00 : f32
    %31 = vector.shape_cast %2 : vector<1x128xi1> to vector<1x128xi1>
    %32 = vector.broadcast %31 : vector<1x128xi1> to vector<8x128xi1>
    %33 = vector.broadcast %cst_7 : f32 to vector<8x128xf32>
    %34 = arith.select %32, %30, %33 : vector<8x128xi1>, vector<8x128xf32>
    %cst_8 = arith.constant dense<0.000000e+00> : vector<8xf32>
    %35 = vector.multi_reduction <add>, %34, %cst_8 [1] : vector<8x128xf32> to vector<8xf32>
    %36 = vector.shape_cast %35 : vector<8xf32> to vector<8x1xf32>
    %37 = vector.broadcast %36 : vector<8x1xf32> to vector<8x128xf32>
    %38 = arith.divf %34, %37 : vector<8x128xf32>
    %c0_9 = arith.constant 0 : index
    %c0_10 = arith.constant 0 : index
    %39 = vector.load %arg3[%c0_9, %c0_10] : memref<8x128xf32, #tpu.memory_space<vmem>>, vector<8x128xf32>
    tpu.vector_store %arg3[%c0_9, %c0_10], %20 {strides = array<i32>} : memref<8x128xf32, #tpu.memory_space<vmem>>, vector<8x128xf32>,
    %c0_11 = arith.constant 0 : index
    %c0_12 = arith.constant 0 : index
    %40 = vector.load %arg4[%c0_11, %c0_12] : memref<8x128xf32, #tpu.memory_space<vmem>>, vector<8x128xf32>
    tpu.vector_store %arg4[%c0_11, %c0_12], %38 {strides = array<i32>} : memref<8x128xf32, #tpu.memory_space<vmem>>, vector<8x128xf32>,
    %cst_13 = arith.constant dense<0xFF800000> : vector<8xf32>
    %41 = vector.multi_reduction <maximumf>, %38, %cst_13 [1] : vector<8x128xf32> to vector<8xf32>
    %42 = vector.shape_cast %41 : vector<8xf32> to vector<8x1xf32>
    %43 = tpu.iota {dimensions = array<i32: 1>} : vector<8x128xi32>
    %44 = vector.broadcast %42 : vector<8x1xf32> to vector<8x128xf32>
    %45 = arith.cmpf oge, %38, %44 : vector<8x128xf32>
    %c128_i32 = arith.constant 128 : i32
    %46 = vector.broadcast %c128_i32 : i32 to vector<8x128xi32>
    %47 = arith.select %45, %43, %46 : vector<8x128xi1>, vector<8x128xi32>
    %cst_14 = arith.constant dense<2147483647> : vector<8xi32>
    %48 = vector.multi_reduction <minsi>, %47, %cst_14 [1] : vector<8x128xi32> to vector<8xi32>
    %49 = vector.shape_cast %48 : vector<8xi32> to vector<8x1xi32>
    %c0_15 = arith.constant 0 : index
    %c0_16 = arith.constant 0 : index
    %50 = vector.load %arg6[%c0_15, %c0_16] : memref<8x1xf32, #tpu.memory_space<vmem>>, vector<8x1xf32>
    tpu.vector_store %arg6[%c0_15, %c0_16], %42 {strides = array<i32>} : memref<8x1xf32, #tpu.memory_space<vmem>>, vector<8x1xf32>,
    %c0_17 = arith.constant 0 : index
    %c0_18 = arith.constant 0 : index
    %51 = vector.load %arg7[%c0_17, %c0_18] : memref<8x1xi32, #tpu.memory_space<vmem>>, vector<8x1xi32>
    tpu.vector_store %arg7[%c0_17, %c0_18], %49 {strides = array<i32>} : memref<8x1xi32, #tpu.memory_space<vmem>>, vector<8x1xi32>,
    %c0_19 = arith.constant 0 : index
    %c0_20 = arith.constant 0 : index
    %52 = vector.load %arg2[%c0_19, %c0_20] : memref<24x128xf32, #tpu.memory_space<vmem>>, vector<8x128xf32>
    %53 = arith.mulf %52, %52 : vector<8x128xf32>
    %cst_21 = arith.constant dense<0.000000e+00> : vector<8xf32>
    %54 = vector.multi_reduction <add>, %53, %cst_21 [1] : vector<8x128xf32> to vector<8xf32>
    %55 = vector.shape_cast %54 : vector<8xf32> to vector<8x1xf32>
    %56 = math.rsqrt %55 : vector<8x1xf32>
    %57 = vector.broadcast %56 : vector<8x1xf32> to vector<8x128xf32>
    %58 = arith.mulf %52, %57 : vector<8x128xf32>
    %cst_22 = arith.constant dense<0.000000e+00> : vector<8x8xf32>
    %59 = tpu.matmul %58, %58, %cst_22 {dimension_numbers = #tpu.dot_dimension_numbers<[1], [1], [0], [0], [0, 0, 1, 0], [], []>} : vector<8x128xf32>, vector<8x128xf32>, vector<8x8xf32> -> vector<8x8xf32>
    %c0_23 = arith.constant 0 : index
    %c0_24 = arith.constant 0 : index
    %60 = vector.load %arg5[%c0_23, %c0_24] : memref<8x8xf32, #tpu.memory_space<vmem>>, vector<8x8xf32>
    tpu.vector_store %arg5[%c0_23, %c0_24], %59 {strides = array<i32>} : memref<8x8xf32, #tpu.memory_space<vmem>>, vector<8x8xf32>,
    return
  }
  func.func @transform_0(%arg0: i32) -> (i32, i32) {
    %c0_i32 = arith.constant 0 : i32
    %c0_i32_0 = arith.constant 0 : i32
    %c0_i32_1 = arith.constant 0 : i32
    return %c0_i32, %c0_i32_0 : i32, i32
  }
  func.func @transform_1(%arg0: i32) -> (i32, i32) {
    %c0_i32 = arith.constant 0 : i32
    %c0_i32_0 = arith.constant 0 : i32
    %c0_i32_1 = arith.constant 0 : i32
    return %c0_i32, %c0_i32_0 : i32, i32
  }
  func.func @transform_2(%arg0: i32) -> (i32, i32) {
    %c0_i32 = arith.constant 0 : i32
    %c0_i32_0 = arith.constant 0 : i32
    %c0_i32_1 = arith.constant 0 : i32
    return %c0_i32, %c0_i32_0 : i32, i32
  }
  func.func @transform_3(%arg0: i32) -> (i32, i32) {
    %c0_i32 = arith.constant 0 : i32
    %c0_i32_0 = arith.constant 0 : i32
    %c0_i32_1 = arith.constant 0 : i32
    return %c0_i32, %c0_i32_0 : i32, i32
  }
  func.func @transform_4(%arg0: i32) -> (i32, i32) {
    %c0_i32 = arith.constant 0 : i32
    %c0_i32_0 = arith.constant 0 : i32
    %c0_i32_1 = arith.constant 0 : i32
    return %c0_i32, %c0_i32_0 : i32, i32
  }
  func.func @transform_5(%arg0: i32) -> (i32, i32) {
    %c0_i32 = arith.constant 0 : i32
    %c0_i32_0 = arith.constant 0 : i32
    %c0_i32_1 = arith.constant 0 : i32
    return %c0_i32, %c0_i32_0 : i32, i32
  }
  func.func @transform_6(%arg0: i32) -> (i32, i32) {
    %c0_i32 = arith.constant 0 : i32
    %c0_i32_0 = arith.constant 0 : i32
    %c0_i32_1 = arith.constant 0 : i32
    return %c0_i32, %c0_i32_0 : i32, i32
  }
}

module attributes {stable_mosaic.version = 11 : i64} {
  func.func @_losses_kernel(%arg0: i32, %arg1: memref<8x128xf32, #tpu.memory_space<vmem>>, %arg2: memref<8x128xf32, #tpu.memory_space<vmem>>, %arg3: memref<4x128xf32, #tpu.memory_space<vmem>>, %arg4: memref<4x128xf32, #tpu.memory_space<vmem>>, %arg5: memref<8x128xf32, #tpu.memory_space<vmem>>, %arg6: memref<8x128xf32, #tpu.memory_space<vmem>>, %arg7: memref<8x1xf32, #tpu.memory_space<vmem>>, %arg8: memref<1x1xf32, #tpu.memory_space<vmem>>, %arg9: memref<1x1xf32, #tpu.memory_space<vmem>>, %arg10: memref<1x1xf32, #tpu.memory_space<vmem>>, %arg11: memref<1x1xf32, #tpu.memory_space<vmem>>) attributes {dimension_semantics = [#tpu.dimension_semantics<arbitrary>], iteration_bounds = array<i64: 1>, scalar_prefetch = 0 : i64, scratch_operands = 0 : i64, tpu.core_type = #tpu.core_type<tc>, window_params = [{pipeline_mode = #tpu.pipeline_mode<synchronous>, transform_indices = @transform_0, window_bounds = array<i64: 8, 128>}, {pipeline_mode = #tpu.pipeline_mode<synchronous>, transform_indices = @transform_1, window_bounds = array<i64: 8, 128>}, {pipeline_mode = #tpu.pipeline_mode<synchronous>, transform_indices = @transform_2, window_bounds = array<i64: 4, 128>}, {pipeline_mode = #tpu.pipeline_mode<synchronous>, transform_indices = @transform_3, window_bounds = array<i64: 4, 128>}, {pipeline_mode = #tpu.pipeline_mode<synchronous>, transform_indices = @transform_4, window_bounds = array<i64: 8, 128>}, {pipeline_mode = #tpu.pipeline_mode<synchronous>, transform_indices = @transform_5, window_bounds = array<i64: 8, 128>}, {pipeline_mode = #tpu.pipeline_mode<synchronous>, transform_indices = @transform_6, window_bounds = array<i64: 8, 1>}, {pipeline_mode = #tpu.pipeline_mode<synchronous>, transform_indices = @transform_7, window_bounds = array<i64: 1, 1>}, {pipeline_mode = #tpu.pipeline_mode<synchronous>, transform_indices = @transform_8, window_bounds = array<i64: 1, 1>}, {pipeline_mode = #tpu.pipeline_mode<synchronous>, transform_indices = @transform_9, window_bounds = array<i64: 1, 1>}, {pipeline_mode = #tpu.pipeline_mode<synchronous>, transform_indices = @transform_10, window_bounds = array<i64: 1, 1>}]} {
    %0 = tpu.iota {dimensions = array<i32: 1>} : vector<1x128xi32>
    %c10_i32 = arith.constant 10 : i32
    %1 = vector.broadcast %c10_i32 : i32 to vector<1x128xi32>
    %2 = arith.cmpi slt, %0, %1 : vector<1x128xi32>
    %c0 = arith.constant 0 : index
    %c0_0 = arith.constant 0 : index
    %3 = vector.load %arg1[%c0, %c0_0] : memref<8x128xf32, #tpu.memory_space<vmem>>, vector<8x128xf32>
    %c0_1 = arith.constant 0 : index
    %c0_2 = arith.constant 0 : index
    %4 = vector.load %arg2[%c0_1, %c0_2] : memref<8x128xf32, #tpu.memory_space<vmem>>, vector<8x128xf32>
    %5 = arith.mulf %3, %4 : vector<8x128xf32>
    %cst = arith.constant dense<0.000000e+00> : vector<8xf32>
    %6 = vector.multi_reduction <add>, %5, %cst [1] : vector<8x128xf32> to vector<8xf32>
    %7 = vector.shape_cast %6 : vector<8xf32> to vector<8x1xf32>
    %cst_3 = arith.constant 0.000000e+00 : f32
    %8 = vector.broadcast %cst_3 : f32 to vector<8x1xf32>
    %9 = arith.subf %8, %7 : vector<8x1xf32>
    %cst_4 = arith.constant 0.000000e+00 : f32
    %10 = vector.broadcast %cst_4 : f32 to vector<8x1xf32>
    %11 = arith.maximumf %9, %10 : vector<8x1xf32>
    %12 = math.absf %7 : vector<8x1xf32>
    %cst_5 = arith.constant 0.000000e+00 : f32
    %13 = vector.broadcast %cst_5 : f32 to vector<8x1xf32>
    %14 = arith.subf %13, %12 : vector<8x1xf32>
    %15 = math.exp %14 : vector<8x1xf32>
    %16 = math.log1p %15 : vector<8x1xf32>
    %17 = arith.addf %11, %16 : vector<8x1xf32>
    %18 = vector.shape_cast %17 : vector<8x1xf32> to vector<1x8x1xf32>
    %cst_6 = arith.constant dense<0.000000e+00> : vector<1xf32>
    %19 = vector.multi_reduction <add>, %18, %cst_6 [1, 2] : vector<1x8x1xf32> to vector<1xf32>
    %20 = vector.shape_cast %19 : vector<1xf32> to vector<1x1x1xf32>
    %21 = vector.extract %20[0, 0, 0] : f32 from vector<1x1x1xf32>
    %22 = vector.broadcast %21 : f32 to vector<1x1xf32>
    %cst_7 = arith.constant 8.000000e+00 : f32
    %23 = vector.broadcast %cst_7 : f32 to vector<1x1xf32>
    %24 = arith.divf %22, %23 : vector<1x1xf32>
    %c0_8 = arith.constant 0 : index
    %c0_9 = arith.constant 0 : index
    %25 = vector.load %arg8[%c0_8, %c0_9] : memref<1x1xf32, #tpu.memory_space<vmem>>, vector<1x1xf32>
    tpu.vector_store %arg8[%c0_8, %c0_9], %24 {strides = array<i32>} : memref<1x1xf32, #tpu.memory_space<vmem>>, vector<1x1xf32>,
    %c0_10 = arith.constant 0 : index
    %c0_11 = arith.constant 0 : index
    %26 = vector.load %arg1[%c0_10, %c0_11] : memref<8x128xf32, #tpu.memory_space<vmem>>, vector<8x128xf32>
    %cst_12 = arith.constant dense<0.000000e+00> : vector<128xf32>
    %27 = vector.multi_reduction <add>, %26, %cst_12 [0] : vector<8x128xf32> to vector<128xf32>
    %28 = vector.shape_cast %27 : vector<128xf32> to vector<1x128xf32>
    %cst_13 = arith.constant 8.000000e+00 : f32
    %29 = vector.broadcast %cst_13 : f32 to vector<1x128xf32>
    %30 = arith.divf %28, %29 : vector<1x128xf32>
    %cst_14 = arith.constant 1.000000e-10 : f32
    %31 = vector.broadcast %cst_14 : f32 to vector<1x128xf32>
    %32 = arith.addf %30, %31 : vector<1x128xf32>
    %33 = math.log %32 : vector<1x128xf32>
    %34 = arith.mulf %30, %33 : vector<1x128xf32>
    %cst_15 = arith.constant 0.000000e+00 : f32
    %35 = vector.broadcast %cst_15 : f32 to vector<1x128xf32>
    %36 = arith.select %2, %34, %35 : vector<1x128xi1>, vector<1x128xf32>
    %cst_16 = arith.constant dense<0.000000e+00> : vector<1xf32>
    %37 = vector.multi_reduction <add>, %36, %cst_16 [1] : vector<1x128xf32> to vector<1xf32>
    %38 = vector.shape_cast %37 : vector<1xf32> to vector<1x1xf32>
    %cst_17 = arith.constant 0.000000e+00 : f32
    %39 = vector.broadcast %cst_17 : f32 to vector<1x1xf32>
    %40 = arith.subf %39, %38 : vector<1x1xf32>
    %c0_18 = arith.constant 0 : index
    %c0_19 = arith.constant 0 : index
    %41 = vector.load %arg9[%c0_18, %c0_19] : memref<1x1xf32, #tpu.memory_space<vmem>>, vector<1x1xf32>
    tpu.vector_store %arg9[%c0_18, %c0_19], %40 {strides = array<i32>} : memref<1x1xf32, #tpu.memory_space<vmem>>, vector<1x1xf32>,
    %c0_20 = arith.constant 0 : index
    %c0_21 = arith.constant 0 : index
    %42 = vector.load %arg3[%c0_20, %c0_21] : memref<4x128xf32, #tpu.memory_space<vmem>>, vector<4x128xf32>
    %c0_22 = arith.constant 0 : index
    %c0_23 = arith.constant 0 : index
    %43 = vector.load %arg4[%c0_22, %c0_23] : memref<4x128xf32, #tpu.memory_space<vmem>>, vector<4x128xf32>
    %cst_24 = arith.constant -1.000000e+30 : f32
    %44 = vector.shape_cast %2 : vector<1x128xi1> to vector<1x128xi1>
    %45 = vector.broadcast %44 : vector<1x128xi1> to vector<4x128xi1>
    %46 = vector.broadcast %cst_24 : f32 to vector<4x128xf32>
    %47 = arith.select %45, %42, %46 : vector<4x128xi1>, vector<4x128xf32>
    %cst_25 = arith.constant dense<0xFF800000> : vector<4xf32>
    %48 = vector.multi_reduction <maximumf>, %47, %cst_25 [1] : vector<4x128xf32> to vector<4xf32>
    %49 = vector.shape_cast %48 : vector<4xf32> to vector<4x1xf32>
    %50 = vector.broadcast %49 : vector<4x1xf32> to vector<4x128xf32>
    %51 = arith.subf %47, %50 : vector<4x128xf32>
    %52 = math.exp %51 : vector<4x128xf32>
    %cst_26 = arith.constant 0.000000e+00 : f32
    %53 = vector.shape_cast %2 : vector<1x128xi1> to vector<1x128xi1>
    %54 = vector.broadcast %53 : vector<1x128xi1> to vector<4x128xi1>
    %55 = vector.broadcast %cst_26 : f32 to vector<4x128xf32>
    %56 = arith.select %54, %52, %55 : vector<4x128xi1>, vector<4x128xf32>
    %cst_27 = arith.constant dense<0.000000e+00> : vector<4xf32>
    %57 = vector.multi_reduction <add>, %56, %cst_27 [1] : vector<4x128xf32> to vector<4xf32>
    %58 = vector.shape_cast %57 : vector<4xf32> to vector<4x1xf32>
    %59 = math.log %58 : vector<4x1xf32>
    %60 = arith.addf %59, %49 : vector<4x1xf32>
    %61 = vector.broadcast %60 : vector<4x1xf32> to vector<4x128xf32>
    %62 = arith.subf %47, %61 : vector<4x128xf32>
    %63 = arith.mulf %43, %62 : vector<4x128xf32>
    %cst_28 = arith.constant dense<0.000000e+00> : vector<4xf32>
    %64 = vector.multi_reduction <add>, %63, %cst_28 [1] : vector<4x128xf32> to vector<4xf32>
    %65 = vector.shape_cast %64 : vector<4xf32> to vector<4x1xf32>
    %cst_29 = arith.constant 0.000000e+00 : f32
    %66 = vector.broadcast %cst_29 : f32 to vector<4x1xf32>
    %67 = arith.subf %66, %65 : vector<4x1xf32>
    %68 = vector.shape_cast %67 : vector<4x1xf32> to vector<1x4x1xf32>
    %cst_30 = arith.constant dense<0.000000e+00> : vector<1xf32>
    %69 = vector.multi_reduction <add>, %68, %cst_30 [1, 2] : vector<1x4x1xf32> to vector<1xf32>
    %70 = vector.shape_cast %69 : vector<1xf32> to vector<1x1x1xf32>
    %71 = vector.extract %70[0, 0, 0] : f32 from vector<1x1x1xf32>
    %72 = vector.broadcast %71 : f32 to vector<1x1xf32>
    %cst_31 = arith.constant 4.000000e+00 : f32
    %73 = vector.broadcast %cst_31 : f32 to vector<1x1xf32>
    %74 = arith.divf %72, %73 : vector<1x1xf32>
    %c0_32 = arith.constant 0 : index
    %c0_33 = arith.constant 0 : index
    %75 = vector.load %arg10[%c0_32, %c0_33] : memref<1x1xf32, #tpu.memory_space<vmem>>, vector<1x1xf32>
    tpu.vector_store %arg10[%c0_32, %c0_33], %74 {strides = array<i32>} : memref<1x1xf32, #tpu.memory_space<vmem>>, vector<1x1xf32>,
    %c0_34 = arith.constant 0 : index
    %c0_35 = arith.constant 0 : index
    %76 = vector.load %arg5[%c0_34, %c0_35] : memref<8x128xf32, #tpu.memory_space<vmem>>, vector<8x128xf32>
    %c0_36 = arith.constant 0 : index
    %c0_37 = arith.constant 0 : index
    %77 = vector.load %arg6[%c0_36, %c0_37] : memref<8x128xf32, #tpu.memory_space<vmem>>, vector<8x128xf32>
    %cst_38 = arith.constant -1.000000e+30 : f32
    %78 = vector.shape_cast %2 : vector<1x128xi1> to vector<1x128xi1>
    %79 = vector.broadcast %78 : vector<1x128xi1> to vector<8x128xi1>
    %80 = vector.broadcast %cst_38 : f32 to vector<8x128xf32>
    %81 = arith.select %79, %76, %80 : vector<8x128xi1>, vector<8x128xf32>
    %cst_39 = arith.constant dense<0xFF800000> : vector<8xf32>
    %82 = vector.multi_reduction <maximumf>, %81, %cst_39 [1] : vector<8x128xf32> to vector<8xf32>
    %83 = vector.shape_cast %82 : vector<8xf32> to vector<8x1xf32>
    %84 = vector.broadcast %83 : vector<8x1xf32> to vector<8x128xf32>
    %85 = arith.subf %81, %84 : vector<8x128xf32>
    %86 = math.exp %85 : vector<8x128xf32>
    %cst_40 = arith.constant 0.000000e+00 : f32
    %87 = vector.shape_cast %2 : vector<1x128xi1> to vector<1x128xi1>
    %88 = vector.broadcast %87 : vector<1x128xi1> to vector<8x128xi1>
    %89 = vector.broadcast %cst_40 : f32 to vector<8x128xf32>
    %90 = arith.select %88, %86, %89 : vector<8x128xi1>, vector<8x128xf32>
    %cst_41 = arith.constant dense<0.000000e+00> : vector<8xf32>
    %91 = vector.multi_reduction <add>, %90, %cst_41 [1] : vector<8x128xf32> to vector<8xf32>
    %92 = vector.shape_cast %91 : vector<8xf32> to vector<8x1xf32>
    %93 = math.log %92 : vector<8x1xf32>
    %94 = arith.addf %93, %83 : vector<8x1xf32>
    %95 = vector.broadcast %94 : vector<8x1xf32> to vector<8x128xf32>
    %96 = arith.subf %81, %95 : vector<8x128xf32>
    %97 = arith.mulf %77, %96 : vector<8x128xf32>
    %cst_42 = arith.constant dense<0.000000e+00> : vector<8xf32>
    %98 = vector.multi_reduction <add>, %97, %cst_42 [1] : vector<8x128xf32> to vector<8xf32>
    %99 = vector.shape_cast %98 : vector<8xf32> to vector<8x1xf32>
    %cst_43 = arith.constant 0.000000e+00 : f32
    %100 = vector.broadcast %cst_43 : f32 to vector<8x1xf32>
    %101 = arith.subf %100, %99 : vector<8x1xf32>
    %c0_44 = arith.constant 0 : index
    %c0_45 = arith.constant 0 : index
    %102 = vector.load %arg7[%c0_44, %c0_45] : memref<8x1xf32, #tpu.memory_space<vmem>>, vector<8x1xf32>
    %103 = arith.mulf %101, %102 : vector<8x1xf32>
    %104 = vector.shape_cast %103 : vector<8x1xf32> to vector<1x8x1xf32>
    %cst_46 = arith.constant dense<0.000000e+00> : vector<1xf32>
    %105 = vector.multi_reduction <add>, %104, %cst_46 [1, 2] : vector<1x8x1xf32> to vector<1xf32>
    %106 = vector.shape_cast %105 : vector<1xf32> to vector<1x1x1xf32>
    %107 = vector.extract %106[0, 0, 0] : f32 from vector<1x1x1xf32>
    %108 = vector.broadcast %107 : f32 to vector<1x1xf32>
    %cst_47 = arith.constant 8.000000e+00 : f32
    %109 = vector.broadcast %cst_47 : f32 to vector<1x1xf32>
    %110 = arith.divf %108, %109 : vector<1x1xf32>
    %c0_48 = arith.constant 0 : index
    %c0_49 = arith.constant 0 : index
    %111 = vector.load %arg11[%c0_48, %c0_49] : memref<1x1xf32, #tpu.memory_space<vmem>>, vector<1x1xf32>
    tpu.vector_store %arg11[%c0_48, %c0_49], %110 {strides = array<i32>} : memref<1x1xf32, #tpu.memory_space<vmem>>, vector<1x1xf32>,
    return
  }
  func.func @transform_0(%arg0: i32) -> (i32, i32) {
    %c0_i32 = arith.constant 0 : i32
    %c0_i32_0 = arith.constant 0 : i32
    %c0_i32_1 = arith.constant 0 : i32
    return %c0_i32, %c0_i32_0 : i32, i32
  }
  func.func @transform_1(%arg0: i32) -> (i32, i32) {
    %c0_i32 = arith.constant 0 : i32
    %c0_i32_0 = arith.constant 0 : i32
    %c0_i32_1 = arith.constant 0 : i32
    return %c0_i32, %c0_i32_0 : i32, i32
  }
  func.func @transform_2(%arg0: i32) -> (i32, i32) {
    %c0_i32 = arith.constant 0 : i32
    %c0_i32_0 = arith.constant 0 : i32
    %c0_i32_1 = arith.constant 0 : i32
    return %c0_i32, %c0_i32_0 : i32, i32
  }
  func.func @transform_3(%arg0: i32) -> (i32, i32) {
    %c0_i32 = arith.constant 0 : i32
    %c0_i32_0 = arith.constant 0 : i32
    %c0_i32_1 = arith.constant 0 : i32
    return %c0_i32, %c0_i32_0 : i32, i32
  }
  func.func @transform_4(%arg0: i32) -> (i32, i32) {
    %c0_i32 = arith.constant 0 : i32
    %c0_i32_0 = arith.constant 0 : i32
    %c0_i32_1 = arith.constant 0 : i32
    return %c0_i32, %c0_i32_0 : i32, i32
  }
  func.func @transform_5(%arg0: i32) -> (i32, i32) {
    %c0_i32 = arith.constant 0 : i32
    %c0_i32_0 = arith.constant 0 : i32
    %c0_i32_1 = arith.constant 0 : i32
    return %c0_i32, %c0_i32_0 : i32, i32
  }
  func.func @transform_6(%arg0: i32) -> (i32, i32) {
    %c0_i32 = arith.constant 0 : i32
    %c0_i32_0 = arith.constant 0 : i32
    %c0_i32_1 = arith.constant 0 : i32
    return %c0_i32, %c0_i32_0 : i32, i32
  }
  func.func @transform_7(%arg0: i32) -> (i32, i32) {
    %c0_i32 = arith.constant 0 : i32
    %c0_i32_0 = arith.constant 0 : i32
    %c0_i32_1 = arith.constant 0 : i32
    return %c0_i32, %c0_i32_0 : i32, i32
  }
  func.func @transform_8(%arg0: i32) -> (i32, i32) {
    %c0_i32 = arith.constant 0 : i32
    %c0_i32_0 = arith.constant 0 : i32
    %c0_i32_1 = arith.constant 0 : i32
    return %c0_i32, %c0_i32_0 : i32, i32
  }
  func.func @transform_9(%arg0: i32) -> (i32, i32) {
    %c0_i32 = arith.constant 0 : i32
    %c0_i32_0 = arith.constant 0 : i32
    %c0_i32_1 = arith.constant 0 : i32
    return %c0_i32, %c0_i32_0 : i32, i32
  }
  func.func @transform_10(%arg0: i32) -> (i32, i32) {
    %c0_i32 = arith.constant 0 : i32
    %c0_i32_0 = arith.constant 0 : i32
    %c0_i32_1 = arith.constant 0 : i32
    return %c0_i32, %c0_i32_0 : i32, i32
  }
}

</mosaic_0001>

<bundles_post_ra>
// kernel: _nach_forward.4
= control target key start
LH: loop header
LB: loop body
LE: loop exit
PB: predicated region body
PF: predicated region fallthrough
CT: control target
= control target key end

     0   :  { %v16_v0 = vlaneseq  ;;  %v185_v23 = vmov 0.0   ;;  %vm186_vm1 = vmmov 0   ;;  %vm65_vm2 = vcmask 7168   ;;  %s252_s0 = inlined_call_operand.vmem [shape: f32[24,128], index: 0, kind: input, shape index: {}]   ;;  %s253_s1 = inlined_call_operand.vmem [shape: f32[24,128], index: 1, kind: input, shape index: {}]   ;;  %s254_s3 = inlined_call_operand.vmem [shape: f32[8,128], index: 3, kind: output, shape index: {1}]   ;;  %s255_s5 = inlined_call_operand.vmem [shape: f32[8,1], index: 5, kind: output, shape index: {3}]   ;;  %s256_s2 = inlined_call_operand.vmem [shape: f32[8,128], index: 2, kind: output, shape index: {0}]   ;;  %s257_s4 = inlined_call_operand.vmem [shape: f32[8,8], index: 4, kind: output, shape index: {2}]   ;;  %s258_s6 = inlined_call_operand.vmem [shape: s32[8,1], index: 6, kind: output, shape index: {4}]  }
   0x1   :  { %v33_v2 = vld [vmem:[%s252_s0 + $0x8] sm:$0xff]  ;;  %v19_v8 = vld [vmem:[%s252_s0] sm:$0xff]  ;;  %168 = vmatprep.subr.mxu0 %v185_v23  ;;  %170 = vmatprep.mubr.msk.f32.mxu0 %vm186_vm1, %v185_v23  ;;  %vm144_vm4 = vcmask 64512  }
   0x2   :  { %v17_v1 = vand.u32 127, %v16_v0  ;;  %v68_v11 = vld [vmem:[%s253_s1] sm:$0xff] }
   0x3   :  { %v69_v12 = vmul.f32 %v68_v11, %v68_v11 }
   0x4   :  { %vm18_vm0 = vcmp.lt.s32.totalorder %v17_v1, 10 }
   0x5   :  { %v34_v3 = vsel %vm18_vm0, %v33_v2, -1e+30  ;;  %v22_v10 = vsel %vm18_vm0, %v19_v8, -1e+30  ;;  %70 = vadd.xlane.f32.xlu1 %v69_v12 }
   0x6   :  { %35 = vmax.xlane.f32.xlu0 %v34_v3 }
  0x92   :  { %v71_v19 = vpop.xlane.xlu1 %70 }
  0x93   :  { %v36_v4 = vpop.xlane.xlu0 %35 }
  0x94   :  { %v37_v5 = vsub.f32 %v34_v3, %v36_v4 }
  0x96   :  { %v38_v6 = vmul.f32 1.442695, %v37_v5 }
  0x98   :  { %175 = vpow2.f32 %v38_v6 }
  0xa2   :  { %v176_v7 = vpop.eup %175 }
  0xa3   :  { %v40_v9 = vsel %vm18_vm0, %v176_v7, 0.0 }
  0xa4   :  { %41 = vadd.xlane.f32.xlu0 %v40_v9 }
  0xa8   :  { %23 = vmax.xlane.f32.xlu0 %v22_v10 }
 0x131   :  { %v42_v13 = vpop.xlane.xlu0 %41 }
 0x132   :  { %177 = vrcp.f32 %v42_v13 }
 0x135   :  { %v24_v14 = vpop.xlane.xlu0 %23 }
 0x136   :  { %v25_v15 = vsub.f32 %v22_v10, %v24_v14 }
 0x138   :  { %v26_v16 = vmul.f32 1.442695, %v25_v15 }
 0x13a   :  { %179 = vpow2.f32 %v26_v16 }
 0x13b   :  { %181 = vrsqrt.f32 %v71_v19 }
 0x13c   :  { %v178_v17 = vpop.eup %177 }
 0x13d   :  { %v44_v18 = vmul.f32 %v178_v17, %v40_v9 }
 0x13f   :  { %47 = vmax.xlane.f32.xlu1 %v44_v18  ;;  %46 = vst [vmem:[%s254_s3] sm:$0xff] %v44_v18 }
 0x144   :  { %v180_v20 = vpop.eup %179 }
 0x145   :  { %v28_v21 = vsel %vm18_vm0, %v180_v20, 0.0  ;;  %v182_v22 = vpop.eup %181 }
 0x146   :  { %29 = vadd.xlane.f32.xlu0 %v28_v21  ;;  %v73_v24 = vmul.f32 %v182_v22, %v68_v11 }
 0x148   :  { %169 = vmatpush3.xpose.msra.mxu0 %v73_v24 }
 0x14b   :  { %171 = vmatmul.mubr.f32.vlgmr.msra.gmra.mrb[0].mxu0 %v73_v24 }
 0x1cc   :  { %v48_v25 = vpop.xlane.xlu1 %47 }
 0x1cd   :  { %vm49_vm3 = vcmp.ge.f32.partialorder %v44_v18, %v48_v25  ;;  %66 = vst.msk [vmem:[%s255_s5] sm:$0xff] %vm65_vm2, %v48_v25 }
 0x1ce   :  { %v50_v26 = vsel %vm49_vm3, %v17_v1, 128 }
 0x1cf   :  { %v52_v27 = vshra.s32 %v50_v26, 16  ;;  %v51_v34 = vand.u32 65535, %v50_v26 }
 0x1d1   :  { %v54_v28 = vcvt.s32.f32 %v52_v27  ;;  %v53_v36 = vcvt.s32.f32 %v51_v34 }
 0x1d3   :  { %55 = vmin.xlane.f32.xlu1 %v54_v28  ;;  %v30_v29 = vpop.xlane.xlu0 %29 }
 0x1d4   :  { %183 = vrcp.f32 %v30_v29 }
 0x1de   :  { %v184_v30 = vpop.eup %183 }
 0x1df   :  { %v32_v31 = vmul.f32 %v184_v30, %v28_v21 }
 0x1e1   :  { %45 = vst [vmem:[%s256_s2] sm:$0xff] %v32_v31 }
 0x21e   :  { %v140_v32 = vpop.f32.mrb[0].mxu0 }
 0x21f   :  { %145 = vst.msk [vmem:[%s257_s4] sm:$0xff] %vm144_vm4, %v140_v32  ;;  %v172_v33 = vpop.f32.mrb[1].mxu0 }
 0x260   :  { %v56_v35 = vpop.xlane.xlu1 %55 }
 0x261   :  { %vm57_vm5 = vcmp.eq.f32.partialorder %v54_v28, %v56_v35  ;;  %v62_v38 = vcvt.f32.s32 %v56_v35 }
 0x262   :  { %v58_v37 = vsel %vm57_vm5, %v53_v36, inf }
 0x263   :  { %59 = vmin.xlane.f32.xlu1 %v58_v37  ;;  %v63_v40 = vshll.u32 %v62_v38, 16 }
 0x2f0   :  { %v60_v39 = vpop.xlane.xlu1 %59 }
 0x2f1   :  { %v61_v41 = vcvt.f32.s32 %v60_v39 }
 0x2f3   :  { %v64_v42 = vadd.s32 %v63_v40, %v61_v41 }
 0x2f5   :  { %67 = vst.msk [vmem:[%s258_s6] sm:$0xff] %vm65_vm2, %v64_v42 }

// kernel: _nach_forward.3
= control target key start
LH: loop header
LB: loop body
LE: loop exit
PB: predicated region body
PF: predicated region fallthrough
CT: control target
= control target key end

     0   :  { %s4557_s27 = smov 0   ;;  %s5325_s0 = inlined_call_operand.vmem [shape: bf16[24,256,32], index: 0, kind: input, shape index: {}]   ;;  %s5326_s1 = inlined_call_operand.vmem [shape: bf16[32,128], index: 1, kind: input, shape index: {}]   ;;  %s5327_s2 = inlined_call_operand.vmem [shape: f32[1,128], index: 2, kind: input, shape index: {}]   ;;  %s5328_s3 = inlined_call_operand.vmem [shape: f32[128,128], index: 3, kind: input, shape index: {}]   ;;  %s5329_s4 = inlined_call_operand.vmem [shape: f32[1,128], index: 4, kind: input, shape index: {}]   ;;  %s5330_s5 = inlined_call_operand.vmem [shape: f32[128,128], index: 5, kind: input, shape index: {}]   ;;  %s5331_s6 = inlined_call_operand.vmem [shape: f32[1,128], index: 6, kind: input, shape index: {}]   ;;  %s5332_s7 = inlined_call_operand.vmem [shape: f32[24,128], index: 7, kind: output, shape index: {0}]   ;;  %s5333_s8 = inlined_call_operand.vmem [shape: f32[24,128], index: 8, kind: output, shape index: {1}]  }
   0x1 LB: > { %s4563_s28 = sadd.s32 4294967295, %s4507_s27   ;;  %p3542_p0 = scmp.ge.s32.totalorder %s4507_s27, 1  ;;  %s4507_s27 = sphi %s4557_s27, %s19_s27  }
   0x2   : > { %p267_p1 = scmp.lt.s32.totalorder %s4507_s27, 4 }
   0x4   : > { %p268_p2 = pnand %p3542_p0, %p267_p1 }
   0x5   : > { %v4369_v0 = vld [vmem:[%s5326_s1] sm:$0xff] (!%p268_p2)   ;;  %s3543_s9 = sshll.u32 (!%p268_p2), %s4563_s28, 3  ;;  %v4370_v1 = vld [vmem:[%s5326_s1 + $0x8] sm:$0xff] (!%p268_p2)   ;;  %vm1240_vm0 = vcmask (!%p268_p2), 261120   ;;  %vm3274_vm1 = vcmask (!%p268_p2), 1041409   ;;  %vm4510_vm2 = vmmov (!%p268_p2), 0  }
   0x6   : > { %271 = sbr.rel (%p268_p2) target bundleno = 1002 (0x3ea), region = 48  ;;  %p306_p3 = scmp.lt.s32.totalorder (!%p268_p2), %s3543_s9, 23  ;;  %3976 = vmatprep.subr.bf16.mxu0 (!%p268_p2), %v4369_v0  ;;  %4354 = vmatprep.subr.bf16.mxu1 (!%p268_p2), %v4369_v0  ;;  %vm3276_vm3 = vcmask (!%p268_p2), 1042434   ;;  %vm3278_vm4 = vcmask (!%p268_p2), 1043459   ;;  %vm3280_vm5 = vcmask (!%p268_p2), 1044484   ;;  %vm3282_vm6 = vcmask (!%p268_p2), 1045509  }
   0x7   : > { %3977 = vmatpush3.bf16.msra.mxu0 (!%p268_p2), %v4369_v0  ;;  %4356 = vmatpush3.bf16.msra.mxu1 (!%p268_p2), %v4369_v0  ;;  %vm3284_vm7 = vcmask (!%p268_p2), 1046534   ;;  %vm3286_vm8 = vcmask (!%p268_p2), 1047559   ;;  %p312_p4 = scmp.lt.s32.totalorder (!%p268_p2), %s4563_s28, 2 }
   0x8   : > { %3978 = vmatprep.subr.bf16.mxu0 (!%p268_p2), %v4370_v1  ;;  %4355 = vmatprep.subr.bf16.mxu1 (!%p268_p2), %v4370_v1 }
   0xb   : > { %3979 = vmatpush3.bf16.msra.mxu0 (!%p268_p2), %v4370_v1  ;;  %4357 = vmatpush3.bf16.msra.mxu1 (!%p268_p2), %v4370_v1 }
   0xd   : > { %s5335_s9 = smov (!%p306_p3, %s3543_s9), 23  ;;  %s5337_s28 = smov (!%p312_p4, %s4563_s28), 2 }
   0xe   : > { %s3811_s12 = sshll.u32 %s5335_s9, 7  ;;  %s3546_s26 = sshll.u32 %s5337_s28, 3 }
   0xf   : > { %s4577_s15 = scalar_lea.vmem %s5325_s0, %s3811_s12  ;;  %s319_s11 = scalar_lea.vmem %s5333_s8, %s3546_s26 }
  0x10   : > { %v4371_v2 = vld [vmem:[%s4577_s15] sm:$0xff]   ;;  %v4372_v3 = vld [vmem:[%s4577_s15 + $0x8] sm:$0xff]   ;;  %v4373_v4 = vld [vmem:[%s4577_s15 + $0x10] sm:$0xff]   ;;  %s315_s28 = scalar_lea.vmem %s5332_s7, %s3546_s26 }
  0x11   : > { %3980 = vmatprep.mubr.msk.bf16.mxu0 %vm1240_vm0, %v4371_v2  ;;  %v4374_v5 = vld [vmem:[%s4577_s15 + $0x18] sm:$0xff]   ;;  %v4375_v6 = vld [vmem:[%s4577_s15 + $0x20] sm:$0xff]   ;;  %v4376_v7 = vld [vmem:[%s4577_s15 + $0x28] sm:$0xff]  }
  0x12   : > { %3981 = vmatmul.mubr.msk.bf16.vlgmr.msra.gmra.mrb[0].mxu0 %vm1240_vm0, %v4372_v3  ;;  %v4377_v8 = vld [vmem:[%s4577_s15 + $0x30] sm:$0xff]   ;;  %v4392_v10 = vld [vmem:[%s4577_s15 + $0x238] sm:$0xff]   ;;  %v4379_v12 = vld [vmem:[%s4577_s15 + $0x40] sm:$0xff]  }
  0x13   : > { %3984 = vmatprep.mubr.msk.bf16.mxu0 %vm1240_vm0, %v4373_v4  ;;  %v4391_v9 = vld [vmem:[%s4577_s15 + $0x230] sm:$0xff]   ;;  %v4378_v11 = vld [vmem:[%s4577_s15 + $0x38] sm:$0xff]   ;;  %v4395_v13 = vld [vmem:[%s4577_s15 + $0x240] sm:$0xff]  }
  0x14   : > { %4120 = vmatprep.mubr.msk.bf16.mxu1 %vm1240_vm0, %v4391_v9  ;;  %v4396_v14 = vld [vmem:[%s4577_s15 + $0x248] sm:$0xff]   ;;  %v4399_v15 = vld [vmem:[%s4577_s15 + $0x250] sm:$0xff]   ;;  %v4400_v18 = vld [vmem:[%s4577_s15 + $0x258] sm:$0xff]  }
  0x15   : > { %4121 = vmatmul.mubr.msk.bf16.vlgmr.msra.gmra.mrb[0].mxu1 %vm1240_vm0, %v4392_v10  ;;  %v4380_v16 = vld [vmem:[%s4577_s15 + $0x48] sm:$0xff]   ;;  %v4381_v17 = vld [vmem:[%s4577_s15 + $0x50] sm:$0xff]   ;;  %v4403_v19 = vld [vmem:[%s4577_s15 + $0x260] sm:$0xff]  }
  0x16   : > { %4124 = vmatprep.mubr.msk.bf16.mxu1 %vm1240_vm0, %v4395_v13  ;;  %v4382_v20 = vld [vmem:[%s4577_s15 + $0x58] sm:$0xff]   ;;  %v4383_v21 = vld [vmem:[%s4577_s15 + $0x60] sm:$0xff]   ;;  %v4404_v22 = vld [vmem:[%s4577_s15 + $0x268] sm:$0xff]  }
  0x17   : > { %v4407_v23 = vld [vmem:[%s4577_s15 + $0x270] sm:$0xff]   ;;  %v4384_v24 = vld [vmem:[%s4577_s15 + $0x68] sm:$0xff]   ;;  %v4408_v26 = vld [vmem:[%s4577_s15 + $0x278] sm:$0xff]  }
  0x18   : > { %v4385_v25 = vld [vmem:[%s4577_s15 + $0x70] sm:$0xff]   ;;  %v4411_v27 = vld [vmem:[%s4577_s15 + $0x280] sm:$0xff]   ;;  %v4386_v28 = vld [vmem:[%s4577_s15 + $0x78] sm:$0xff]  }
  0x19   : > { %v4387_v29 = vld [vmem:[%s4577_s15 + $0x80] sm:$0xff]   ;;  %v4412_v30 = vld [vmem:[%s4577_s15 + $0x288] sm:$0xff]   ;;  %v4415_v31 = vld [vmem:[%s4577_s15 + $0x290] sm:$0xff]  }
  0x1a   : > { %3985 = vmatmul.mubr.msk.bf16.gmra.mrb[4].mxu0 %vm1240_vm0, %v4374_v5  ;;  %v4388_v32 = vld [vmem:[%s4577_s15 + $0x88] sm:$0xff]   ;;  %v4389_v33 = vld [vmem:[%s4577_s15 + $0x90] sm:$0xff]   ;;  %v4416_v34 = vld [vmem:[%s4577_s15 + $0x298] sm:$0xff]  }
  0x1b   : > { %3988 = vmatprep.mubr.msk.bf16.mxu0 %vm1240_vm0, %v4375_v6  ;;  %v4419_v35 = vld [vmem:[%s4577_s15 + $0x2a0] sm:$0xff]   ;;  %v4390_v36 = vld [vmem:[%s4577_s15 + $0x98] sm:$0xff]   ;;  %v4420_v38 = vld [vmem:[%s4577_s15 + $0x2a8] sm:$0xff]  }
  0x1c   : > { %v4393_v37 = vld [vmem:[%s4577_s15 + $0xa0] sm:$0xff]   ;;  %v4423_v39 = vld [vmem:[%s4577_s15 + $0x2b0] sm:$0xff]   ;;  %v4394_v40 = vld [vmem:[%s4577_s15 + $0xa8] sm:$0xff]  }
  0x1d   : > { %4125 = vmatmul.mubr.msk.bf16.gmra.mrb[4].mxu1 %vm1240_vm0, %v4396_v14  ;;  %v4397_v41 = vld [vmem:[%s4577_s15 + $0xb0] sm:$0xff]   ;;  %v4424_v42 = vld [vmem:[%s4577_s15 + $0x2b8] sm:$0xff]   ;;  %v4427_v43 = vld [vmem:[%s4577_s15 + $0x2c0] sm:$0xff]  }
  0x1e   : > { %4128 = vmatprep.mubr.msk.bf16.mxu1 %vm1240_vm0, %v4399_v15  ;;  %v4398_v44 = vld [vmem:[%s4577_s15 + $0xb8] sm:$0xff]   ;;  %v4401_v45 = vld [vmem:[%s4577_s15 + $0xc0] sm:$0xff]   ;;  %v4428_v46 = vld [vmem:[%s4577_s15 + $0x2c8] sm:$0xff]  }
  0x1f   : > { %v4431_v47 = vld [vmem:[%s4577_s15 + $0x2d0] sm:$0xff]   ;;  %v4402_v48 = vld [vmem:[%s4577_s15 + $0xc8] sm:$0xff]   ;;  %v4432_v50 = vld [vmem:[%s4577_s15 + $0x2d8] sm:$0xff]  }
  0x20   : > { %v4405_v49 = vld [vmem:[%s4577_s15 + $0xd0] sm:$0xff]   ;;  %v4435_v51 = vld [vmem:[%s4577_s15 + $0x2e0] sm:$0xff]   ;;  %v4406_v52 = vld [vmem:[%s4577_s15 + $0xd8] sm:$0xff]  }
  0x21   : > { %v4409_v53 = vld [vmem:[%s4577_s15 + $0xe0] sm:$0xff]   ;;  %v4436_v54 = vld [vmem:[%s4577_s15 + $0x2e8] sm:$0xff]   ;;  %v4439_v55 = vld [vmem:[%s4577_s15 + $0x2f0] sm:$0xff]  }
  0x22   : > { %3989 = vmatmul.mubr.msk.bf16.gmra.mrb[8].mxu0 %vm1240_vm0, %v4376_v7  ;;  %v4410_v56 = vld [vmem:[%s4577_s15 + $0xe8] sm:$0xff]   ;;  %v4413_v57 = vld [vmem:[%s4577_s15 + $0xf0] sm:$0xff]   ;;  %v4440_v58 = vld [vmem:[%s4577_s15 + $0x2f8] sm:$0xff]  }
  0x23   : > { %3992 = vmatprep.mubr.msk.bf16.mxu0 %vm1240_vm0, %v4377_v8  ;;  %v4443_v59 = vld [vmem:[%s4577_s15 + $0x300] sm:$0xff]   ;;  %v4414_v60 = vld [vmem:[%s4577_s15 + $0xf8] sm:$0xff]   ;;  %v4444_v62 = vld [vmem:[%s4577_s15 + $0x308] sm:$0xff]  }
  0x24   : > { %v4417_v61 = vld [vmem:[%s4577_s15 + $0x100] sm:$0xff]   ;;  %v4447_v63 = vld [vmem:[%s4577_s15 + $0x310] sm:$0xff]   ;;  %v4418_v0 = vld [vmem:[%s4577_s15 + $0x108] sm:$0xff]  }
  0x25   : > { %4129 = vmatmul.mubr.msk.bf16.gmra.mrb[8].mxu1 %vm1240_vm0, %v4400_v18  ;;  %v4421_v1 = vld [vmem:[%s4577_s15 + $0x110] sm:$0xff]   ;;  %v4448_v2 = vld [vmem:[%s4577_s15 + $0x318] sm:$0xff]   ;;  %v4451_v3 = vld [vmem:[%s4577_s15 + $0x320] sm:$0xff]  }
  0x26   : > { %4132 = vmatprep.mubr.msk.bf16.mxu1 %vm1240_vm0, %v4403_v19  ;;  %v4422_v4 = vld [vmem:[%s4577_s15 + $0x118] sm:$0xff]   ;;  %v4425_v5 = vld [vmem:[%s4577_s15 + $0x120] sm:$0xff]   ;;  %v4452_v6 = vld [vmem:[%s4577_s15 + $0x328] sm:$0xff]  }
  0x27   : > { %v4455_v7 = vld [vmem:[%s4577_s15 + $0x330] sm:$0xff]   ;;  %v4426_v8 = vld [vmem:[%s4577_s15 + $0x128] sm:$0xff]   ;;  %v4456_v10 = vld [vmem:[%s4577_s15 + $0x338] sm:$0xff]  }
  0x28   : > { %v4429_v9 = vld [vmem:[%s4577_s15 + $0x130] sm:$0xff]   ;;  %v4433_v13 = vld [vmem:[%s4577_s15 + $0x140] sm:$0xff]   ;;  %v4460_v14 = vld [vmem:[%s4577_s15 + $0x348] sm:$0xff]  }
  0x29   : > { %v4463_v15 = vld [vmem:[%s4577_s15 + $0x350] sm:$0xff]   ;;  %v4464_v18 = vld [vmem:[%s4577_s15 + $0x358] sm:$0xff]   ;;  %v4467_v19 = vld [vmem:[%s4577_s15 + $0x360] sm:$0xff]  }
  0x2a   : > { %3993 = vmatmul.mubr.msk.bf16.gmra.mrb[12].mxu0 %vm1240_vm0, %v4378_v11  ;;  %v4459_v11 = vld [vmem:[%s4577_s15 + $0x340] sm:$0xff]  }
  0x2b   : > { %3996 = vmatprep.mubr.msk.bf16.mxu0 %vm1240_vm0, %v4379_v12  ;;  %v4430_v12 = vld [vmem:[%s4577_s15 + $0x138] sm:$0xff]  }
  0x2d   : > { %4133 = vmatmul.mubr.msk.bf16.gmra.mrb[12].mxu1 %vm1240_vm0, %v4404_v22  ;;  %v4468_v22 = vld [vmem:[%s4577_s15 + $0x368] sm:$0xff]  }
  0x2e   : > { %4136 = vmatprep.mubr.msk.bf16.mxu1 %vm1240_vm0, %v4407_v23  ;;  %v4471_v23 = vld [vmem:[%s4577_s15 + $0x370] sm:$0xff]  }
  0x32   : > { %3997 = vmatmul.mubr.msk.bf16.gmra.mrb[16].mxu0 %vm1240_vm0, %v4380_v16  ;;  %v4434_v16 = vld [vmem:[%s4577_s15 + $0x148] sm:$0xff]  }
  0x33   : > { %4000 = vmatprep.mubr.msk.bf16.mxu0 %vm1240_vm0, %v4381_v17  ;;  %v4437_v17 = vld [vmem:[%s4577_s15 + $0x150] sm:$0xff]  }
  0x35   : > { %4137 = vmatmul.mubr.msk.bf16.gmra.mrb[16].mxu1 %vm1240_vm0, %v4408_v26  ;;  %v4472_v26 = vld [vmem:[%s4577_s15 + $0x378] sm:$0xff]  }
  0x36   : > { %4140 = vmatprep.mubr.msk.bf16.mxu1 %vm1240_vm0, %v4411_v27  ;;  %v4475_v27 = vld [vmem:[%s4577_s15 + $0x380] sm:$0xff]  }
  0x3a   : > { %4001 = vmatmul.mubr.msk.bf16.gmra.mrb[20].mxu0 %vm1240_vm0, %v4382_v20  ;;  %v4438_v20 = vld [vmem:[%s4577_s15 + $0x158] sm:$0xff]  }
  0x3b   : > { %4004 = vmatprep.mubr.msk.bf16.mxu0 %vm1240_vm0, %v4383_v21  ;;  %v4441_v21 = vld [vmem:[%s4577_s15 + $0x160] sm:$0xff]  }
  0x3d   : > { %4141 = vmatmul.mubr.msk.bf16.gmra.mrb[20].mxu1 %vm1240_vm0, %v4412_v30  ;;  %v4476_v30 = vld [vmem:[%s4577_s15 + $0x388] sm:$0xff]  }
  0x3e   : > { %4144 = vmatprep.mubr.msk.bf16.mxu1 %vm1240_vm0, %v4415_v31  ;;  %v4479_v31 = vld [vmem:[%s4577_s15 + $0x390] sm:$0xff]  }
  0x42   : > { %4005 = vmatmul.mubr.msk.bf16.gmra.mrb[24].mxu0 %vm1240_vm0, %v4384_v24  ;;  %v4442_v24 = vld [vmem:[%s4577_s15 + $0x168] sm:$0xff]  }
  0x43   : > { %4008 = vmatprep.mubr.msk.bf16.mxu0 %vm1240_vm0, %v4385_v25  ;;  %v4445_v25 = vld [vmem:[%s4577_s15 + $0x170] sm:$0xff]  }
  0x45   : > { %4145 = vmatmul.mubr.msk.bf16.gmra.mrb[24].mxu1 %vm1240_vm0, %v4416_v34  ;;  %v4480_v34 = vld [vmem:[%s4577_s15 + $0x398] sm:$0xff]  }
  0x46   : > { %4148 = vmatprep.mubr.msk.bf16.mxu1 %vm1240_vm0, %v4419_v35  ;;  %v4483_v35 = vld [vmem:[%s4577_s15 + $0x3a0] sm:$0xff]  }
  0x4a   : > { %4009 = vmatmul.mubr.msk.bf16.gmra.mrb[28].mxu0 %vm1240_vm0, %v4386_v28  ;;  %v4446_v28 = vld [vmem:[%s4577_s15 + $0x178] sm:$0xff]  }
  0x4b   : > { %4012 = vmatprep.mubr.msk.bf16.mxu0 %vm1240_vm0, %v4387_v29  ;;  %v4449_v29 = vld [vmem:[%s4577_s15 + $0x180] sm:$0xff]  }
  0x4d   : > { %4149 = vmatmul.mubr.msk.bf16.gmra.mrb[28].mxu1 %vm1240_vm0, %v4420_v38  ;;  %v4509_v38 = vmov 0.0|0.0  }
  0x4e   : > { %4152 = vmatprep.mubr.msk.bf16.mxu1 %vm1240_vm0, %v4423_v39  ;;  %4306 = vmatprep.subr.bf16.mxu1 %v4509_v38  ;;  %v3243_v39 = vld [vmem:[%s5328_s3] sm:$0xff] }
  0x52   : > { %4013 = vmatmul.mubr.msk.bf16.gmra.mrb[32].mxu0 %vm1240_vm0, %v4388_v32  ;;  %v4450_v32 = vld [vmem:[%s4577_s15 + $0x188] sm:$0xff]  }
  0x53   : > { %4016 = vmatprep.mubr.msk.bf16.mxu0 %vm1240_vm0, %v4389_v33  ;;  %v4453_v33 = vld [vmem:[%s4577_s15 + $0x190] sm:$0xff]  }
  0x55   : > { %4153 = vmatmul.mubr.msk.bf16.gmra.mrb[32].mxu1 %vm1240_vm0, %v4424_v42  ;;  %v4484_v42 = vld [vmem:[%s4577_s15 + $0x3a8] sm:$0xff]  }
  0x56   : > { %4156 = vmatprep.mubr.msk.bf16.mxu1 %vm1240_vm0, %v4427_v43  ;;  %v4487_v43 = vld [vmem:[%s4577_s15 + $0x3b0] sm:$0xff]  }
  0x5a   : > { %4017 = vmatmul.mubr.msk.bf16.gmra.mrb[36].mxu0 %vm1240_vm0, %v4390_v36  ;;  %v4454_v36 = vld [vmem:[%s4577_s15 + $0x198] sm:$0xff]  }
  0x5b   : > { %4020 = vmatprep.mubr.msk.bf16.mxu0 %vm1240_vm0, %v4393_v37  ;;  %v4457_v37 = vld [vmem:[%s4577_s15 + $0x1a0] sm:$0xff]  }
  0x5d   : > { %4157 = vmatmul.mubr.msk.bf16.gmra.mrb[36].mxu1 %vm1240_vm0, %v4428_v46  ;;  %v4488_v46 = vld [vmem:[%s4577_s15 + $0x3b8] sm:$0xff]  }
  0x5e   : > { %4160 = vmatprep.mubr.msk.bf16.mxu1 %vm1240_vm0, %v4431_v47  ;;  %v4491_v47 = vld [vmem:[%s4577_s15 + $0x3c0] sm:$0xff]  }
  0x62   : > { %4021 = vmatmul.mubr.msk.bf16.gmra.mrb[40].mxu0 %vm1240_vm0, %v4394_v40  ;;  %v3244_v40 = vld [vmem:[%s5328_s3 + $0x8] sm:$0xff] }
  0x63   : > { %4024 = vmatprep.mubr.msk.bf16.mxu0 %vm1240_vm0, %v4397_v41  ;;  %v4307_v41 = vpack.c.bf16 %v3244_v40, %v3243_v39 }
  0x65   : > { %4161 = vmatmul.mubr.msk.bf16.gmra.mrb[40].mxu1 %vm1240_vm0, %v4432_v50 }
  0x66   : > { %4164 = vmatprep.mubr.msk.bf16.mxu1 %vm1240_vm0, %v4435_v51  ;;  %4308 = vmatpush3.bf16.msra.mxu1 %v4307_v41  ;;  %v4462_v51 = vld [vmem:[%s4577_s15 + $0x1b8] sm:$0xff]  }
  0x67   : > { %4309 = vmatprep.subr.bf16.mxu1 %v4509_v38 }
  0x6a   : > { %4025 = vmatmul.mubr.msk.bf16.gmra.mrb[44].mxu0 %vm1240_vm0, %v4398_v44  ;;  %v4458_v44 = vld [vmem:[%s4577_s15 + $0x1a8] sm:$0xff]  }
  0x6b   : > { %4028 = vmatprep.mubr.msk.bf16.mxu0 %vm1240_vm0, %v4401_v45  ;;  %v4461_v45 = vld [vmem:[%s4577_s15 + $0x1b0] sm:$0xff]  }
  0x6d   : > { %4165 = vmatmul.mubr.msk.bf16.gmra.mrb[44].mxu1 %vm1240_vm0, %v4436_v54  ;;  %v4465_v54 = vld [vmem:[%s4577_s15 + $0x1c0] sm:$0xff]  }
  0x6e   : > { %4168 = vmatprep.mubr.msk.bf16.mxu1 %vm1240_vm0, %v4439_v55 }
  0x72   : > { %4029 = vmatmul.mubr.msk.bf16.gmra.mrb[48].mxu0 %vm1240_vm0, %v4402_v48  ;;  %v4800_v48 = vld [vmem:[%s5327_s2] ss:$0 sm:$0xff] }
  0x73   : > { %4032 = vmatprep.mubr.msk.bf16.mxu0 %vm1240_vm0, %v4405_v49 }
  0x75   : > { %4169 = vmatmul.mubr.msk.bf16.gmra.mrb[48].mxu1 %vm1240_vm0, %v4440_v58  ;;  %v4492_v58 = vld [vmem:[%s4577_s15 + $0x3c8] sm:$0xff]  }
  0x76   : > { %4172 = vmatprep.mubr.msk.bf16.mxu1 %vm1240_vm0, %v4443_v59 }
  0x7a   : > { %4033 = vmatmul.mubr.msk.bf16.gmra.mrb[52].mxu0 %vm1240_vm0, %v4406_v52 }
  0x7b   : > { %4036 = vmatprep.mubr.msk.bf16.mxu0 %vm1240_vm0, %v4409_v53 }
  0x7d   : > { %4173 = vmatmul.mubr.msk.bf16.gmra.mrb[52].mxu1 %vm1240_vm0, %v4444_v62  ;;  %v4493_v62 = vld [vmem:[%s4577_s15 + $0x3d0] sm:$0xff]  }
  0x7e   : > { %4176 = vmatprep.mubr.msk.bf16.mxu1 %vm1240_vm0, %v4447_v63 }
  0x82   : > { %4037 = vmatmul.mubr.msk.bf16.gmra.mrb[56].mxu0 %vm1240_vm0, %v4410_v56 }
  0x83   : > { %4040 = vmatprep.mubr.msk.bf16.mxu0 %vm1240_vm0, %v4413_v57 }
  0x85   : > { %4177 = vmatmul.mubr.msk.bf16.gmra.mrb[56].mxu1 %vm1240_vm0, %v4448_v2 }
  0x86   : > { %4180 = vmatprep.mubr.msk.bf16.mxu1 %vm1240_vm0, %v4451_v3  ;;  %v4466_v3 = vld [vmem:[%s4577_s15 + $0x1c8] sm:$0xff]  }
  0x8a   : > { %4041 = vmatmul.mubr.msk.bf16.gmra.mrb[60].mxu0 %vm1240_vm0, %v4414_v60 }
  0x8b   : > { %4044 = vmatprep.mubr.msk.bf16.mxu0 %vm1240_vm0, %v4417_v61 }
  0x8d   : > { %4181 = vmatmul.mubr.msk.bf16.gmra.mrb[60].mxu1 %vm1240_vm0, %v4452_v6 }
  0x8e   : > { %4184 = vmatprep.mubr.msk.bf16.mxu1 %vm1240_vm0, %v4455_v7 }
  0x92   : > { %4045 = vmatmul.mubr.msk.bf16.gmra.mrb[64].mxu0 %vm1240_vm0, %v4418_v0 }
  0x93   : > { %4048 = vmatprep.mubr.msk.bf16.mxu0 %vm1240_vm0, %v4421_v1 }
  0x95   : > { %4185 = vmatmul.mubr.msk.bf16.gmra.mrb[64].mxu1 %vm1240_vm0, %v4456_v10 }
  0x96   : > { %4188 = vmatprep.mubr.msk.bf16.mxu1 %vm1240_vm0, %v4459_v11 }
  0x9a   : > { %4049 = vmatmul.mubr.msk.bf16.gmra.mrb[68].mxu0 %vm1240_vm0, %v4422_v4 }
  0x9b   : > { %4052 = vmatprep.mubr.msk.bf16.mxu0 %vm1240_vm0, %v4425_v5 }
  0x9d   : > { %4189 = vmatmul.mubr.msk.bf16.gmra.mrb[68].mxu1 %vm1240_vm0, %v4460_v14  ;;  %v4494_v14 = vld [vmem:[%s4577_s15 + $0x3d8] sm:$0xff]  }
  0x9e   : > { %4192 = vmatprep.mubr.msk.bf16.mxu1 %vm1240_vm0, %v4463_v15 }
  0xa2   : > { %4053 = vmatmul.mubr.msk.bf16.gmra.mrb[72].mxu0 %vm1240_vm0, %v4426_v8  ;;  %v4469_v8 = vld [vmem:[%s4577_s15 + $0x1d0] sm:$0xff]  }
  0xa3   : > { %4056 = vmatprep.mubr.msk.bf16.mxu0 %vm1240_vm0, %v4429_v9 }
  0xa5   : > { %4193 = vmatmul.mubr.msk.bf16.gmra.mrb[72].mxu1 %vm1240_vm0, %v4464_v18  ;;  %v4495_v18 = vld [vmem:[%s4577_s15 + $0x3e0] sm:$0xff]  }
  0xa6   : > { %4196 = vmatprep.mubr.msk.bf16.mxu1 %vm1240_vm0, %v4467_v19 }
  0xaa   : > { %4057 = vmatmul.mubr.msk.bf16.gmra.mrb[76].mxu0 %vm1240_vm0, %v4430_v12 }
  0xab   : > { %4060 = vmatprep.mubr.msk.bf16.mxu0 %vm1240_vm0, %v4433_v13 }
  0xad   : > { %4197 = vmatmul.mubr.msk.bf16.gmra.mrb[76].mxu1 %vm1240_vm0, %v4468_v22 }
  0xae   : > { %4200 = vmatprep.mubr.msk.bf16.mxu1 %vm1240_vm0, %v4471_v23  ;;  %v4470_v23 = vld [vmem:[%s4577_s15 + $0x1d8] sm:$0xff]  }
  0xb2   : > { %4061 = vmatmul.mubr.msk.bf16.gmra.mrb[80].mxu0 %vm1240_vm0, %v4434_v16 }
  0xb3   : > { %4064 = vmatprep.mubr.msk.bf16.mxu0 %vm1240_vm0, %v4437_v17 }
  0xb5   : > { %4201 = vmatmul.mubr.msk.bf16.gmra.mrb[80].mxu1 %vm1240_vm0, %v4472_v26 }
  0xb6   : > { %4204 = vmatprep.mubr.msk.bf16.mxu1 %vm1240_vm0, %v4475_v27 }
  0xba   : > { %4065 = vmatmul.mubr.msk.bf16.gmra.mrb[84].mxu0 %vm1240_vm0, %v4438_v20 }
  0xbb   : > { %4068 = vmatprep.mubr.msk.bf16.mxu0 %vm1240_vm0, %v4441_v21 }
  0xbd   : > { %4205 = vmatmul.mubr.msk.bf16.gmra.mrb[84].mxu1 %vm1240_vm0, %v4476_v30 }
  0xbe   : > { %4208 = vmatprep.mubr.msk.bf16.mxu1 %vm1240_vm0, %v4479_v31 }
  0xc2   : > { %4069 = vmatmul.mubr.msk.bf16.gmra.mrb[88].mxu0 %vm1240_vm0, %v4442_v24 }
  0xc3   : > { %4072 = vmatprep.mubr.msk.bf16.mxu0 %vm1240_vm0, %v4445_v25 }
  0xc5   : > { %4209 = vmatmul.mubr.msk.bf16.gmra.mrb[88].mxu1 %vm1240_vm0, %v4480_v34 }
  0xc6   : > { %4212 = vmatprep.mubr.msk.bf16.mxu1 %vm1240_vm0, %v4483_v35  ;;  %v3245_v35 = vld [vmem:[%s5328_s3 + $0x10] sm:$0xff] }
  0xca   : > { %4073 = vmatmul.mubr.msk.bf16.gmra.mrb[92].mxu0 %vm1240_vm0, %v4446_v28  ;;  %v4473_v28 = vld [vmem:[%s4577_s15 + $0x1e0] sm:$0xff]  }
  0xcb   : > { %4076 = vmatprep.mubr.msk.bf16.mxu0 %vm1240_vm0, %v4449_v29 }
  0xcd   : > { %4213 = vmatmul.mubr.msk.bf16.gmra.mrb[92].mxu1 %vm1240_vm0, %v4484_v42 }
  0xce   : > { %4216 = vmatprep.mubr.msk.bf16.mxu1 %vm1240_vm0, %v4487_v43 }
  0xd2   : > { %4077 = vmatmul.mubr.msk.bf16.gmra.mrb[96].mxu0 %vm1240_vm0, %v4450_v32 }
  0xd3   : > { %4080 = vmatprep.mubr.msk.bf16.mxu0 %vm1240_vm0, %v4453_v33 }
  0xd5   : > { %4217 = vmatmul.mubr.msk.bf16.gmra.mrb[96].mxu1 %vm1240_vm0, %v4488_v46 }
  0xd6   : > { %4220 = vmatprep.mubr.msk.bf16.mxu1 %vm1240_vm0, %v4491_v47 }
  0xda   : > { %4081 = vmatmul.mubr.msk.bf16.gmra.mrb[100].mxu0 %vm1240_vm0, %v4454_v36  ;;  %v3246_v36 = vld [vmem:[%s5328_s3 + $0x18] sm:$0xff] }
  0xdb   : > { %4084 = vmatprep.mubr.msk.bf16.mxu0 %vm1240_vm0, %v4457_v37  ;;  %v4496_v37 = vld [vmem:[%s4577_s15 + $0x3e8] sm:$0xff]   ;;  %v4310_v40 = vpack.c.bf16 %v3246_v36, %v3245_v35 }
  0xdd   : > { %4221 = vmatmul.mubr.msk.bf16.gmra.mrb[100].mxu1 %vm1240_vm0, %v4492_v58 }
  0xde   : > { %4224 = vmatprep.mubr.msk.bf16.mxu1 %vm1240_vm0, %v4493_v62  ;;  %4311 = vmatpush3.bf16.msra.mxu1 %v4310_v40 }
  0xdf   : > { %4312 = vmatprep.subr.bf16.mxu1 %v4509_v38 }
  0xe2   : > { %4085 = vmatmul.mubr.msk.bf16.gmra.mrb[104].mxu0 %vm1240_vm0, %v4458_v44 }
  0xe3   : > { %4088 = vmatprep.mubr.msk.bf16.mxu0 %vm1240_vm0, %v4461_v45  ;;  %v4497_v45 = vld [vmem:[%s4577_s15 + $0x3f0] sm:$0xff]  }
  0xe5   : > { %v3982_v49 = vpop.f32.mrb[0].mxu0  ;;  %4225 = vmatmul.mubr.msk.bf16.gmra.mrb[104].mxu1 %vm1240_vm0, %v4494_v14 }
  0xe6   : > { %v1659_v50 = vpop.f32.mrb[1].mxu0  ;;  %v1668_v56 = vadd.f32 %v3982_v49, %v4800_v48  ;;  %4228 = vmatprep.mubr.msk.bf16.mxu1 %vm1240_vm0, %v4495_v18 }
  0xe7   : > { %v1660_v52 = vadd.f32 %v4800_v48, %v1659_v50  ;;  %v3983_v53 = vpop.f32.mrb[2].mxu0 }
  0xe8   : > { %v1662_v55 = vpop.f32.mrb[3].mxu0  ;;  %v1671_v60 = vadd.f32 %v3983_v53, %v4800_v48  ;;  %v2684_v63 = vmax.f32 %v1668_v56, 0.0  ;;  %v4833_v34 = vpop.f32.mrb[0].mxu1 }
  0xe9   : > { %v1663_v57 = vadd.f32 %v4800_v48, %v1662_v55  ;;  %v2682_v59 = vmax.f32 %v1660_v52, 0.0  ;;  %v4843_v39 = vpop.f32.mrb[1].mxu1  ;;  %v4474_v52 = vld [vmem:[%s4577_s15 + $0x1e8] sm:$0xff]  }
  0xea   : > { %4089 = vmatmul.mubr.msk.bf16.gmra.mrb[108].mxu0 %vm1240_vm0, %v4462_v51  ;;  %v2685_v4 = vmax.f32 %v1671_v60, 0.0  ;;  %v4847_v44 = vpop.f32.mrb[2].mxu1 }
  0xeb   : > { %v2683_v61 = vmax.f32 %v1663_v57, 0.0  ;;  %4092 = vmatprep.mubr.msk.bf16.mxu0 %vm1240_vm0, %v4465_v54  ;;  %v4850_v46 = vpop.f32.mrb[3].mxu1  ;;  %v4477_v57 = vld [vmem:[%s4577_s15 + $0x1f0] sm:$0xff]  }
  0xed   : > { %v2938_v0 = vadd.f32 %v2683_v61, %v2682_v59  ;;  %v3986_v1 = vpop.f32.mrb[4].mxu0  ;;  %4229 = vmatmul.mubr.msk.bf16.gmra.mrb[108].mxu1 %vm1240_vm0, %v4496_v37 }
  0xee   : > { %v1675_v2 = vpop.f32.mrb[5].mxu0  ;;  %v1684_v10 = vadd.f32 %v3986_v1, %v4800_v48  ;;  %4232 = vmatprep.mubr.msk.bf16.mxu1 %vm1240_vm0, %v4497_v45 }
  0xef   : > { %v2939_v5 = vadd.f32 %v2938_v0, %v2684_v63  ;;  %v1676_v6 = vadd.f32 %v4800_v48, %v1675_v2  ;;  %v3987_v7 = vpop.f32.mrb[6].mxu0  ;;  %v4498_v0 = vld [vmem:[%s4577_s15 + $0x3f8] sm:$0xff]  }
  0xf0   : > { %v1678_v9 = vpop.f32.mrb[7].mxu0  ;;  %v1687_v16 = vadd.f32 %v3987_v7, %v4800_v48  ;;  %v2688_v19 = vmax.f32 %v1684_v10, 0.0  ;;  %v4860_v63 = vpop.f32.mrb[4].mxu1 }
  0xf1   : > { %v2686_v11 = vmax.f32 %v1676_v6, 0.0  ;;  %v2940_v12 = vadd.f32 %v2939_v5, %v2685_v4  ;;  %v1679_v13 = vadd.f32 %v4800_v48, %v1678_v9  ;;  %v4864_v1 = vpop.f32.mrb[5].mxu1 }
  0xf2   : > { %4093 = vmatmul.mubr.msk.bf16.gmra.mrb[112].mxu0 %vm1240_vm0, %v4466_v3  ;;  %v2689_v24 = vmax.f32 %v1687_v16, 0.0  ;;  %v4868_v5 = vpop.f32.mrb[6].mxu1  ;;  %v4481_v16 = vld [vmem:[%s4577_s15 + $0x200] sm:$0xff]  }
  0xf3   : > { %v2941_v15 = vadd.f32 %v2940_v12, %v2686_v11  ;;  %v2687_v17 = vmax.f32 %v1679_v13, 0.0  ;;  %4096 = vmatprep.mubr.msk.bf16.mxu0 %vm1240_vm0, %v4469_v8  ;;  %v4870_v6 = vpop.f32.mrb[7].mxu1  ;;  %v4478_v11 = vld [vmem:[%s4577_s15 + $0x1f8] sm:$0xff]  }
  0xf5   : > { %v2942_v20 = vadd.f32 %v2941_v15, %v2687_v17  ;;  %v3990_v21 = vpop.f32.mrb[8].mxu0  ;;  %4233 = vmatmul.mubr.msk.bf16.gmra.mrb[112].mxu1 %vm1240_vm0, %v4498_v0 }
  0xf6   : > { %v1691_v22 = vpop.f32.mrb[9].mxu0  ;;  %v1700_v30 = vadd.f32 %v3990_v21, %v4800_v48 }
  0xf7   : > { %v2943_v25 = vadd.f32 %v2942_v20, %v2688_v19  ;;  %v1692_v26 = vadd.f32 %v4800_v48, %v1691_v22  ;;  %v3991_v27 = vpop.f32.mrb[10].mxu0 }
  0xf8   : > { %v1694_v29 = vpop.f32.mrb[11].mxu0  ;;  %v1703_v42 = vadd.f32 %v3991_v27, %v4800_v48  ;;  %v2692_v47 = vmax.f32 %v1700_v30, 0.0  ;;  %v4878_v22 = vpop.f32.mrb[8].mxu1 }
  0xf9   : > { %v2690_v31 = vmax.f32 %v1692_v26, 0.0  ;;  %v2944_v32 = vadd.f32 %v2943_v25, %v2689_v24  ;;  %v1695_v33 = vadd.f32 %v4800_v48, %v1694_v29 }
  0xfa   : > { %4097 = vmatmul.mubr.msk.bf16.gmra.mrb[116].mxu0 %vm1240_vm0, %v4470_v23  ;;  %v2693_v53 = vmax.f32 %v1703_v42, 0.0  ;;  %v4881_v23 = vpop.f32.mrb[9].mxu1 }
  0xfb   : > { %v2945_v41 = vadd.f32 %v2944_v32, %v2690_v31  ;;  %v2691_v43 = vmax.f32 %v1695_v33, 0.0  ;;  %4100 = vmatprep.mubr.msk.bf16.mxu0 %vm1240_vm0, %v4473_v28  ;;  %v4885_v27 = vpop.f32.mrb[10].mxu1  ;;  %v4482_v33 = vld [vmem:[%s4577_s15 + $0x208] sm:$0xff]  }
  0xfc   : > { %v4887_v28 = vpop.f32.mrb[11].mxu1 }
  0xfd   : > { %v2946_v49 = vadd.f32 %v2945_v41, %v2691_v43  ;;  %v3994_v50 = vpop.f32.mrb[12].mxu0  ;;  %v4485_v41 = vld [vmem:[%s4577_s15 + $0x210] sm:$0xff]  }
  0xfe   : > { %v1707_v51 = vpop.f32.mrb[13].mxu0  ;;  %v1716_v59 = vadd.f32 %v3994_v50, %v4800_v48 }
  0xff   : > { %v2947_v54 = vadd.f32 %v2946_v49, %v2692_v47  ;;  %v1708_v55 = vadd.f32 %v4800_v48, %v1707_v51  ;;  %v3995_v56 = vpop.f32.mrb[14].mxu0 }
 0x100   : > { %v1710_v58 = vpop.f32.mrb[15].mxu0  ;;  %v1719_v3 = vadd.f32 %v3995_v56, %v4800_v48  ;;  %v2696_v7 = vmax.f32 %v1716_v59, 0.0  ;;  %v4894_v50 = vpop.f32.mrb[12].mxu1  ;;  %v3247_v56 = vld [vmem:[%s5328_s3 + $0x20] sm:$0xff] }
 0x101   : > { %v2694_v60 = vmax.f32 %v1708_v55, 0.0  ;;  %v2948_v61 = vadd.f32 %v2947_v54, %v2693_v53  ;;  %v1711_v62 = vadd.f32 %v4800_v48, %v1710_v58  ;;  %v4897_v51 = vpop.f32.mrb[13].mxu1 }
 0x102   : > { %4101 = vmatmul.mubr.msk.bf16.gmra.mrb[120].mxu0 %vm1240_vm0, %v4474_v52  ;;  %v2697_v12 = vmax.f32 %v1719_v3, 0.0  ;;  %v4901_v55 = vpop.f32.mrb[14].mxu1 }
 0x103   : > { %v2949_v2 = vadd.f32 %v2948_v61, %v2694_v60  ;;  %v2695_v4 = vmax.f32 %v1711_v62, 0.0  ;;  %4104 = vmatprep.mubr.msk.bf16.mxu0 %vm1240_vm0, %v4477_v57  ;;  %v3248_v57 = vld [vmem:[%s5328_s3 + $0x28] sm:$0xff]  ;;  %v4909_v58 = vpop.f32.mrb[15].mxu1 }
 0x104   : > { %v4313_v59 = vpack.c.bf16 %v3248_v57, %v3247_v56 }
 0x105   : > { %v2950_v8 = vadd.f32 %v2949_v2, %v2695_v4  ;;  %v3998_v9 = vpop.f32.mrb[16].mxu0  ;;  %v4486_v2 = vld [vmem:[%s4577_s15 + $0x218] sm:$0xff]  }
 0x106   : > { %v1723_v10 = vpop.f32.mrb[17].mxu0  ;;  %v1732_v18 = vadd.f32 %v3998_v9, %v4800_v48  ;;  %4314 = vmatpush3.bf16.msra.mxu1 %v4313_v59  ;;  %v4489_v9 = vld [vmem:[%s4577_s15 + $0x220] sm:$0xff]  }
 0x107   : > { %v2951_v13 = vadd.f32 %v2950_v8, %v2696_v7  ;;  %v1724_v14 = vadd.f32 %v4800_v48, %v1723_v10  ;;  %v3999_v15 = vpop.f32.mrb[18].mxu0  ;;  %4315 = vmatprep.subr.bf16.mxu1 %v4509_v38 }
 0x108   : > { %v1726_v17 = vpop.f32.mrb[19].mxu0  ;;  %v1735_v25 = vadd.f32 %v3999_v15, %v4800_v48  ;;  %v2700_v29 = vmax.f32 %v1732_v18, 0.0  ;;  %v4917_v15 = vpop.f32.mrb[16].mxu1 }
 0x109   : > { %v2698_v19 = vmax.f32 %v1724_v14, 0.0  ;;  %v2952_v20 = vadd.f32 %v2951_v13, %v2697_v12  ;;  %v1727_v21 = vadd.f32 %v4800_v48, %v1726_v17 }
 0x10a   : > { %4105 = vmatmul.mubr.msk.bf16.gmra.mrb[124].mxu0 %vm1240_vm0, %v4478_v11  ;;  %v2701_v35 = vmax.f32 %v1735_v25, 0.0 }
 0x10b   : > { %v2953_v24 = vadd.f32 %v2952_v20, %v2698_v19  ;;  %v2699_v26 = vmax.f32 %v1727_v21, 0.0  ;;  %4108 = vmatprep.mubr.msk.bf16.mxu0 %vm1240_vm0, %v4481_v16  ;;  %v4920_v16 = vpop.f32.mrb[17].mxu1 }
 0x10c   : > { %v4924_v20 = vpop.f32.mrb[18].mxu1 }
 0x10d   : > { %v2954_v30 = vadd.f32 %v2953_v24, %v2699_v26  ;;  %v4002_v31 = vpop.f32.mrb[20].mxu0  ;;  %v4926_v21 = vpop.f32.mrb[19].mxu1 }
 0x10e   : > { %v1739_v32 = vpop.f32.mrb[21].mxu0  ;;  %v1748_v43 = vadd.f32 %v4002_v31, %v4800_v48 }
 0x10f   : > { %v2955_v36 = vadd.f32 %v2954_v30, %v2700_v29  ;;  %v1740_v37 = vadd.f32 %v4800_v48, %v1739_v32  ;;  %v4003_v40 = vpop.f32.mrb[22].mxu0  ;;  %v4490_v30 = vld [vmem:[%s4577_s15 + $0x228] sm:$0xff]  }
 0x110   : > { %v1742_v42 = vpop.f32.mrb[23].mxu0  ;;  %v1751_v53 = vadd.f32 %v4003_v40, %v4800_v48  ;;  %v2704_v60 = vmax.f32 %v1748_v43, 0.0  ;;  %v4142_v43 = vpop.f32.mrb[20].mxu1 }
 0x111   : > { %v2702_v45 = vmax.f32 %v1740_v37, 0.0  ;;  %v2956_v47 = vadd.f32 %v2955_v36, %v2701_v35  ;;  %v1743_v49 = vadd.f32 %v4800_v48, %v1742_v42 }
 0x112   : > { %4109 = vmatmul.mubr.msk.bf16.gmra.mrb[128].mxu0 %vm1240_vm0, %v4482_v33  ;;  %v2705_v3 = vmax.f32 %v1751_v53, 0.0  ;;  %v2308_v53 = vadd.f32 %v4142_v43, %v4800_v48 }
 0x113   : > { %v2957_v52 = vadd.f32 %v2956_v47, %v2702_v45  ;;  %v2703_v54 = vmax.f32 %v1743_v49, 0.0  ;;  %4112 = vmatprep.mubr.msk.bf16.mxu0 %vm1240_vm0, %v4485_v41  ;;  %v2299_v47 = vpop.f32.mrb[21].mxu1 }
 0x114   : > { %v4143_v56 = vpop.f32.mrb[22].mxu1 }
 0x115   : > { %v2958_v61 = vadd.f32 %v2957_v52, %v2703_v54  ;;  %v4006_v62 = vpop.f32.mrb[24].mxu0  ;;  %v2300_v54 = vadd.f32 %v4800_v48, %v2299_v47  ;;  %v2302_v59 = vpop.f32.mrb[23].mxu1 }
 0x116   : > { %v1755_v0 = vpop.f32.mrb[25].mxu0  ;;  %v1764_v11 = vadd.f32 %v4006_v62, %v4800_v48 }
 0x117   : > { %v2959_v4 = vadd.f32 %v2958_v61, %v2704_v60  ;;  %v1756_v7 = vadd.f32 %v4800_v48, %v1755_v0  ;;  %v4007_v8 = vpop.f32.mrb[26].mxu0  ;;  %v2842_v62 = vmax.f32 %v2300_v54, 0.0  ;;  %v2311_v0 = vadd.f32 %v4143_v56, %v4800_v48 }
 0x118   : > { %v1758_v10 = vpop.f32.mrb[27].mxu0  ;;  %v1767_v18 = vadd.f32 %v4007_v8, %v4800_v48  ;;  %v2708_v24 = vmax.f32 %v1764_v11, 0.0 }
 0x119   : > { %v2706_v12 = vmax.f32 %v1756_v7, 0.0  ;;  %v2960_v13 = vadd.f32 %v2959_v4, %v2705_v3  ;;  %v1759_v14 = vadd.f32 %v4800_v48, %v1758_v10  ;;  %v2844_v10 = vmax.f32 %v2308_v53, 0.0 }
 0x11a   : > { %4113 = vmatmul.mubr.msk.bf16.gmra.mrb[132].mxu0 %vm1240_vm0, %v4486_v2  ;;  %v2709_v31 = vmax.f32 %v1767_v18, 0.0  ;;  %v2303_v2 = vadd.f32 %v4800_v48, %v2302_v59  ;;  %v2845_v18 = vmax.f32 %v2311_v0, 0.0 }
 0x11b   : > { %v2961_v17 = vadd.f32 %v2960_v13, %v2706_v12  ;;  %v2707_v19 = vmax.f32 %v1759_v14, 0.0  ;;  %4116 = vmatprep.mubr.msk.bf16.mxu0 %vm1240_vm0, %v4489_v9 }
 0x11c   : > { %v2843_v11 = vmax.f32 %v2303_v2, 0.0 }
 0x11d   : > { %v2962_v25 = vadd.f32 %v2961_v17, %v2707_v19  ;;  %v4010_v26 = vpop.f32.mrb[28].mxu0 }
 0x11e   : > { %v1771_v29 = vpop.f32.mrb[29].mxu0  ;;  %v1780_v36 = vadd.f32 %v4010_v26, %v4800_v48  ;;  %v3123_v19 = vadd.f32 %v2843_v11, %v2842_v62 }
 0x11f   : > { %v2963_v32 = vadd.f32 %v2962_v25, %v2708_v24  ;;  %v1772_v33 = vadd.f32 %v4800_v48, %v1771_v29  ;;  %v4011_v35 = vpop.f32.mrb[30].mxu0  ;;  %v4146_v24 = vpop.f32.mrb[24].mxu1 }
 0x120   : > { %v1774_v37 = vpop.f32.mrb[31].mxu0  ;;  %v1783_v45 = vadd.f32 %v4011_v35, %v4800_v48  ;;  %v2712_v57 = vmax.f32 %v1780_v36, 0.0  ;;  %v2315_v26 = vpop.f32.mrb[25].mxu1  ;;  %v2324_v35 = vadd.f32 %v4146_v24, %v4800_v48 }
 0x121   : > { %v2710_v40 = vmax.f32 %v1772_v33, 0.0  ;;  %v2964_v41 = vadd.f32 %v2963_v32, %v2709_v31  ;;  %v1775_v42 = vadd.f32 %v4800_v48, %v1774_v37  ;;  %v3124_v31 = vadd.f32 %v3123_v19, %v2844_v10  ;;  %v4147_v33 = vpop.f32.mrb[26].mxu1 }
 0x122   : > { %4117 = vmatmul.mubr.msk.bf16.gmra.mrb[136].mxu0 %vm1240_vm0, %v4490_v30  ;;  %v2713_v3 = vmax.f32 %v1783_v45, 0.0  ;;  %v2316_v32 = vadd.f32 %v4800_v48, %v2315_v26  ;;  %v2318_v36 = vpop.f32.mrb[27].mxu1  ;;  %v2327_v47 = vadd.f32 %v4147_v33, %v4800_v48 }
 0x123   : > { %v2965_v49 = vadd.f32 %v2964_v41, %v2710_v40  ;;  %v2711_v52 = vmax.f32 %v1775_v42, 0.0  ;;  %v3125_v43 = vadd.f32 %v3124_v31, %v2845_v18 }
 0x124   : > { %v2846_v42 = vmax.f32 %v2316_v32, 0.0 }
 0x125   : > { %v2966_v60 = vadd.f32 %v2965_v49, %v2711_v52  ;;  %v4014_v61 = vpop.f32.mrb[32].mxu0  ;;  %v2319_v49 = vadd.f32 %v4800_v48, %v2318_v36 }
 0x126   : > { %v1787_v4 = vpop.f32.mrb[33].mxu0  ;;  %v1796_v12 = vadd.f32 %v4014_v61, %v4800_v48 }
 0x127   : > { %v2967_v7 = vadd.f32 %v2966_v60, %v2712_v57  ;;  %v1788_v8 = vadd.f32 %v4800_v48, %v1787_v4  ;;  %v4015_v9 = vpop.f32.mrb[34].mxu0  ;;  %v3126_v57 = vadd.f32 %v3125_v43, %v2846_v42  ;;  %v2848_v60 = vmax.f32 %v2324_v35, 0.0  ;;  %v4150_v4 = vpop.f32.mrb[28].mxu1  ;;  %v3249_v43 = vld [vmem:[%s5328_s3 + $0x30] sm:$0xff] }
 0x128   : > { %v1790_v13 = vpop.f32.mrb[35].mxu0  ;;  %v1799_v25 = vadd.f32 %v4015_v9, %v4800_v48  ;;  %v2716_v37 = vmax.f32 %v1796_v12, 0.0  ;;  %v2847_v61 = vmax.f32 %v2319_v49, 0.0  ;;  %v2331_v9 = vpop.f32.mrb[29].mxu1  ;;  %v2340_v19 = vadd.f32 %v4150_v4, %v4800_v48 }
 0x129   : > { %v4940_v14 = vadd.f32 %v2967_v7, %v2713_v3  ;;  %v1791_v17 = vadd.f32 %v4800_v48, %v1790_v13  ;;  %v2714_v29 = vmax.f32 %v1788_v8, 0.0  ;;  %v2849_v7 = vmax.f32 %v2327_v47, 0.0 }
 0x12a   : > { %v2717_v52 = vmax.f32 %v1799_v25, 0.0  ;;  %v3127_v8 = vadd.f32 %v3126_v57, %v2847_v61  ;;  %v2332_v13 = vadd.f32 %v4800_v48, %v2331_v9  ;;  %v2852_v49 = vmax.f32 %v2340_v19, 0.0 }
 0x12b   : > { %v2715_v30 = vmax.f32 %v1791_v17, 0.0  ;;  %v4151_v17 = vpop.f32.mrb[30].mxu1 }
 0x12c   : > { %v3128_v18 = vadd.f32 %v3127_v8, %v2848_v60  ;;  %v2334_v24 = vpop.f32.mrb[31].mxu1  ;;  %v2343_v35 = vadd.f32 %v4151_v17, %v4800_v48 }
 0x12d   : > { %v2975_v40 = vadd.f32 %v2715_v30, %v2714_v29  ;;  %v4018_v41 = vpop.f32.mrb[36].mxu0  ;;  %v2850_v30 = vmax.f32 %v2332_v13, 0.0  ;;  %v2335_v31 = vadd.f32 %v4800_v48, %v2334_v24  ;;  %v4154_v60 = vpop.f32.mrb[32].mxu1 }
 0x12e   : > { %v1803_v45 = vpop.f32.mrb[37].mxu0  ;;  %v1812_v62 = vadd.f32 %v4018_v41, %v4800_v48  ;;  %v3129_v33 = vadd.f32 %v3128_v18, %v2849_v7  ;;  %v2853_v61 = vmax.f32 %v2343_v35, 0.0 }
 0x12f   : > { %v2976_v53 = vadd.f32 %v2975_v40, %v2716_v37  ;;  %v1804_v54 = vadd.f32 %v4800_v48, %v1803_v45  ;;  %v4019_v56 = vpop.f32.mrb[38].mxu0  ;;  %v2851_v42 = vmax.f32 %v2335_v31, 0.0  ;;  %v3250_v45 = vld [vmem:[%s5328_s3 + $0x38] sm:$0xff] }
 0x130   : > { %v1806_v59 = vpop.f32.mrb[39].mxu0  ;;  %v1815_v11 = vadd.f32 %v4019_v56, %v4800_v48  ;;  %v2720_v25 = vmax.f32 %v1812_v62, 0.0 }
 0x131   : > { %v2718_v0 = vmax.f32 %v1804_v54, 0.0  ;;  %v2977_v2 = vadd.f32 %v2976_v53, %v2717_v52  ;;  %v1807_v3 = vadd.f32 %v4800_v48, %v1806_v59  ;;  %v3130_v52 = vadd.f32 %v3129_v33, %v2850_v30 }
 0x132   : > { %v2721_v36 = vmax.f32 %v1815_v11, 0.0  ;;  %v4316_v53 = vpack.c.bf16 %v3250_v45, %v3249_v43 }
 0x133   : > { %v2978_v10 = vadd.f32 %v2977_v2, %v2718_v0  ;;  %v2719_v12 = vmax.f32 %v1807_v3, 0.0  ;;  %v3131_v62 = vadd.f32 %v3130_v52, %v2851_v42  ;;  %v2347_v0 = vpop.f32.mrb[33].mxu1 }
 0x134   : > { %4317 = vmatpush3.bf16.msra.mxu1 %v4316_v53  ;;  %v2348_v7 = vadd.f32 %v4800_v48, %v2347_v0  ;;  %v4155_v8 = vpop.f32.mrb[34].mxu1 }
 0x135   : > { %v2979_v26 = vadd.f32 %v2978_v10, %v2719_v12  ;;  %v4022_v29 = vpop.f32.mrb[40].mxu0  ;;  %4318 = vmatprep.subr.bf16.mxu1 %v4509_v38  ;;  %v3132_v9 = vadd.f32 %v3131_v62, %v2852_v49  ;;  %v2356_v10 = vadd.f32 %v4154_v60, %v4800_v48  ;;  %v2350_v11 = vpop.f32.mrb[35].mxu1 }
 0x136   : > { %v1819_v32 = vpop.f32.mrb[41].mxu0  ;;  %v1828_v54 = vadd.f32 %v4022_v29, %v4800_v48  ;;  %v2854_v18 = vmax.f32 %v2348_v7, 0.0  ;;  %v2351_v19 = vadd.f32 %v4800_v48, %v2350_v11  ;;  %v4158_v45 = vpop.f32.mrb[36].mxu1 }
 0x137   : > { %v2980_v37 = vadd.f32 %v2979_v26, %v2720_v25  ;;  %v1820_v40 = vadd.f32 %v4800_v48, %v1819_v32  ;;  %v4023_v41 = vpop.f32.mrb[42].mxu0  ;;  %v3133_v25 = vadd.f32 %v3132_v9, %v2853_v61  ;;  %v2359_v26 = vadd.f32 %v4155_v8, %v4800_v48  ;;  %v2363_v52 = vpop.f32.mrb[37].mxu1 }
 0x138   : > { %v1822_v47 = vpop.f32.mrb[43].mxu0  ;;  %v1831_v3 = vadd.f32 %v4023_v41, %v4800_v48  ;;  %v2724_v12 = vmax.f32 %v1828_v54, 0.0  ;;  %v2855_v33 = vmax.f32 %v2351_v19, 0.0  ;;  %v2372_v61 = vadd.f32 %v4158_v45, %v4800_v48 }
 0x139   : > { %v2722_v56 = vmax.f32 %v1820_v40, 0.0  ;;  %v2981_v57 = vadd.f32 %v2980_v37, %v2721_v36  ;;  %v1823_v59 = vadd.f32 %v4800_v48, %v1822_v47  ;;  %v2856_v36 = vmax.f32 %v2356_v10, 0.0 }
 0x13a   : > { %v2725_v29 = vmax.f32 %v1831_v3, 0.0  ;;  %v3134_v37 = vadd.f32 %v3133_v25, %v2854_v18  ;;  %v2857_v47 = vmax.f32 %v2359_v26, 0.0 }
 0x13b   : > { %v2982_v2 = vadd.f32 %v2981_v57, %v2722_v56  ;;  %v2723_v4 = vmax.f32 %v1823_v59, 0.0  ;;  %v2364_v57 = vadd.f32 %v4800_v48, %v2363_v52  ;;  %v4159_v59 = vpop.f32.mrb[38].mxu1 }
 0x13c   : > { %v3135_v49 = vadd.f32 %v3134_v37, %v2855_v33  ;;  %v2366_v62 = vpop.f32.mrb[39].mxu1  ;;  %v2375_v10 = vadd.f32 %v4159_v59, %v4800_v48 }
 0x13d   : > { %v2983_v13 = vadd.f32 %v2982_v2, %v2723_v4  ;;  %v4026_v17 = vpop.f32.mrb[44].mxu0  ;;  %v2858_v4 = vmax.f32 %v2364_v57, 0.0  ;;  %v2367_v7 = vadd.f32 %v4800_v48, %v2366_v62 }
 0x13e   : > { %v1835_v24 = vpop.f32.mrb[45].mxu0  ;;  %v1844_v40 = vadd.f32 %v4026_v17, %v4800_v48  ;;  %v3136_v60 = vadd.f32 %v3135_v49, %v2856_v36  ;;  %v2861_v33 = vmax.f32 %v2375_v10, 0.0 }
 0x13f   : > { %v2984_v30 = vadd.f32 %v2983_v13, %v2724_v12  ;;  %v1836_v31 = vadd.f32 %v4800_v48, %v1835_v24  ;;  %v4027_v32 = vpop.f32.mrb[46].mxu0  ;;  %v2859_v18 = vmax.f32 %v2367_v7, 0.0  ;;  %v2860_v24 = vmax.f32 %v2372_v61, 0.0  ;;  %v3251_v7 = vld [vmem:[%s5328_s3 + $0x40] sm:$0xff] }
 0x140   : > { %v1838_v35 = vpop.f32.mrb[47].mxu0  ;;  %v1847_v54 = vadd.f32 %v4027_v32, %v4800_v48  ;;  %v2728_v0 = vmax.f32 %v1844_v40, 0.0  ;;  %v3137_v9 = vadd.f32 %v3136_v60, %v2857_v47  ;;  %v4162_v32 = vpop.f32.mrb[40].mxu1 }
 0x141   : > { %v2726_v41 = vmax.f32 %v1836_v31, 0.0  ;;  %v2985_v42 = vadd.f32 %v2984_v30, %v2725_v29  ;;  %v1839_v43 = vadd.f32 %v4800_v48, %v1838_v35  ;;  %v2379_v36 = vpop.f32.mrb[41].mxu1  ;;  %v2388_v47 = vadd.f32 %v4162_v32, %v4800_v48 }
 0x142   : > { %v2729_v11 = vmax.f32 %v1847_v54, 0.0  ;;  %v3138_v25 = vadd.f32 %v3137_v9, %v2858_v4 }
 0x143   : > { %v2986_v53 = vadd.f32 %v2985_v42, %v2726_v41  ;;  %v2727_v56 = vmax.f32 %v1839_v43, 0.0  ;;  %v2380_v42 = vadd.f32 %v4800_v48, %v2379_v36  ;;  %v4163_v43 = vpop.f32.mrb[42].mxu1  ;;  %v2864_v10 = vmax.f32 %v2388_v47, 0.0 }
 0x144   : > { %v3139_v35 = vadd.f32 %v3138_v25, %v2859_v18  ;;  %v2382_v49 = vpop.f32.mrb[43].mxu1  ;;  %v2391_v61 = vadd.f32 %v4163_v43, %v4800_v48 }
 0x145   : > { %v2987_v2 = vadd.f32 %v2986_v53, %v2727_v56  ;;  %v4030_v3 = vpop.f32.mrb[48].mxu0  ;;  %v2862_v56 = vmax.f32 %v2380_v42, 0.0  ;;  %v2383_v57 = vadd.f32 %v4800_v48, %v2382_v49 }
 0x146   : > { %v1851_v8 = vpop.f32.mrb[49].mxu0  ;;  %v1860_v26 = vadd.f32 %v4030_v3, %v4800_v48  ;;  %v3140_v45 = vadd.f32 %v3139_v35, %v2860_v24  ;;  %v4166_v24 = vpop.f32.mrb[44].mxu1  ;;  %v2865_v25 = vmax.f32 %v2391_v61, 0.0 }
 0x147   : > { %v2988_v12 = vadd.f32 %v2987_v2, %v2728_v0  ;;  %v1852_v13 = vadd.f32 %v4800_v48, %v1851_v8  ;;  %v4031_v17 = vpop.f32.mrb[50].mxu0  ;;  %v2863_v4 = vmax.f32 %v2383_v57, 0.0  ;;  %v3252_v8 = vld [vmem:[%s5328_s3 + $0x48] sm:$0xff] }
 0x148   : > { %v1854_v19 = vpop.f32.mrb[51].mxu0  ;;  %v1863_v40 = vadd.f32 %v4031_v17, %v4800_v48  ;;  %v2732_v52 = vmax.f32 %v1860_v26, 0.0  ;;  %v3141_v60 = vadd.f32 %v3140_v45, %v2861_v33 }
 0x149   : > { %v2730_v29 = vmax.f32 %v1852_v13, 0.0  ;;  %v2989_v30 = vadd.f32 %v2988_v12, %v2729_v11  ;;  %v1855_v31 = vadd.f32 %v4800_v48, %v1854_v19  ;;  %v4319_v12 = vpack.c.bf16 %v3252_v8, %v3251_v7 }
 0x14a   : > { %v2733_v62 = vmax.f32 %v1863_v40, 0.0  ;;  %v3142_v11 = vadd.f32 %v3141_v60, %v2862_v56 }
 0x14b   : > { %v2990_v37 = vadd.f32 %v2989_v30, %v2730_v29  ;;  %v2731_v41 = vmax.f32 %v1855_v31, 0.0  ;;  %v2395_v29 = vpop.f32.mrb[45].mxu1  ;;  %4320 = vmatpush3.bf16.msra.mxu1 %v4319_v12 }
 0x14c   : > { %v3143_v26 = vadd.f32 %v3142_v11, %v2863_v4  ;;  %v2396_v33 = vadd.f32 %v4800_v48, %v2395_v29  ;;  %v4167_v35 = vpop.f32.mrb[46].mxu1  ;;  %4321 = vmatprep.subr.bf16.mxu1 %v4509_v38 }
 0x14d   : > { %v2991_v53 = vadd.f32 %v2990_v37, %v2731_v41  ;;  %v4034_v54 = vpop.f32.mrb[52].mxu0  ;;  %v2404_v37 = vadd.f32 %v4166_v24, %v4800_v48  ;;  %v2398_v40 = vpop.f32.mrb[47].mxu1 }
 0x14e   : > { %v1867_v59 = vpop.f32.mrb[53].mxu0  ;;  %v1876_v13 = vadd.f32 %v4034_v54, %v4800_v48  ;;  %v3144_v36 = vadd.f32 %v3143_v26, %v2864_v10  ;;  %v2866_v45 = vmax.f32 %v2396_v33, 0.0  ;;  %v2399_v47 = vadd.f32 %v4800_v48, %v2398_v40  ;;  %v4170_v8 = vpop.f32.mrb[48].mxu1 }
 0x14f   : > { %v2992_v0 = vadd.f32 %v2991_v53, %v2732_v52  ;;  %v1868_v2 = vadd.f32 %v4800_v48, %v1867_v59  ;;  %v4035_v3 = vpop.f32.mrb[54].mxu0  ;;  %v2407_v53 = vadd.f32 %v4167_v35, %v4800_v48  ;;  %v2411_v11 = vpop.f32.mrb[49].mxu1  ;;  %v2969_v35 = vrot.slane %v4940_v14, 4 }
 0x150   : > { %v1870_v9 = vpop.f32.mrb[55].mxu0  ;;  %v1879_v31 = vadd.f32 %v4035_v3, %v4800_v48  ;;  %v2736_v41 = vmax.f32 %v1876_v13, 0.0  ;;  %v3145_v52 = vadd.f32 %v3144_v36, %v2865_v25  ;;  %v2867_v60 = vmax.f32 %v2399_v47, 0.0 }
 0x151   : > { %v2734_v17 = vmax.f32 %v1868_v2, 0.0  ;;  %v2993_v18 = vadd.f32 %v2992_v0, %v2733_v62  ;;  %v1871_v19 = vadd.f32 %v4800_v48, %v1870_v9  ;;  %v2868_v62 = vmax.f32 %v2404_v37, 0.0 }
 0x152   : > { %v2737_v54 = vmax.f32 %v1879_v31, 0.0  ;;  %v3146_v0 = vadd.f32 %v3145_v52, %v2866_v45  ;;  %v2869_v9 = vmax.f32 %v2407_v53, 0.0  ;;  %v2420_v25 = vadd.f32 %v4170_v8, %v4800_v48 }
 0x153   : > { %v2994_v30 = vadd.f32 %v2993_v18, %v2734_v17  ;;  %v2735_v32 = vmax.f32 %v1871_v19, 0.0  ;;  %v2412_v18 = vadd.f32 %v4800_v48, %v2411_v11  ;;  %v4171_v19 = vpop.f32.mrb[50].mxu1 }
 0x154   : > { %v3147_v10 = vadd.f32 %v3146_v0, %v2867_v60  ;;  %v2414_v26 = vpop.f32.mrb[51].mxu1  ;;  %v2423_v40 = vadd.f32 %v4171_v19, %v4800_v48  ;;  %v2872_v53 = vmax.f32 %v2420_v25, 0.0 }
 0x155   : > { %v2995_v42 = vadd.f32 %v2994_v30, %v2735_v32  ;;  %v4038_v43 = vpop.f32.mrb[56].mxu0  ;;  %v2870_v32 = vmax.f32 %v2412_v18, 0.0  ;;  %v2415_v33 = vadd.f32 %v4800_v48, %v2414_v26  ;;  %v4174_v60 = vpop.f32.mrb[52].mxu1 }
 0x156   : > { %v1883_v49 = vpop.f32.mrb[57].mxu0  ;;  %v1892_v2 = vadd.f32 %v4038_v43, %v4800_v48  ;;  %v3148_v24 = vadd.f32 %v3147_v10, %v2868_v62  ;;  %v2873_v0 = vmax.f32 %v2423_v40, 0.0  ;;  %v2436_v8 = vadd.f32 %v4174_v60, %v4800_v48 }
 0x157   : > { %v2996_v56 = vadd.f32 %v2995_v42, %v2736_v41  ;;  %v1884_v57 = vadd.f32 %v4800_v48, %v1883_v49  ;;  %v4039_v59 = vpop.f32.mrb[58].mxu0  ;;  %v2871_v47 = vmax.f32 %v2415_v33, 0.0 }
 0x158   : > { %v1886_v61 = vpop.f32.mrb[59].mxu0  ;;  %v1895_v13 = vadd.f32 %v4039_v59, %v4800_v48  ;;  %v2740_v29 = vmax.f32 %v1892_v2, 0.0  ;;  %v3149_v37 = vadd.f32 %v3148_v24, %v2869_v9 }
 0x159   : > { %v2738_v3 = vmax.f32 %v1884_v57, 0.0  ;;  %v2997_v4 = vadd.f32 %v2996_v56, %v2737_v54  ;;  %v1887_v7 = vadd.f32 %v4800_v48, %v1886_v61  ;;  %v2970_v61 = vadd.f32 %v2969_v35, %v4940_v14 }
 0x15a   : > { %v2741_v41 = vmax.f32 %v1895_v13, 0.0  ;;  %v3150_v54 = vadd.f32 %v3149_v37, %v2870_v32  ;;  %v2876_v35 = vmax.f32 %v2436_v8, 0.0 }
 0x15b   : > { %v2998_v12 = vadd.f32 %v2997_v4, %v2738_v3  ;;  %v2739_v17 = vmax.f32 %v1887_v7, 0.0  ;;  %v2427_v3 = vpop.f32.mrb[53].mxu1  ;;  %v2971_v25 = vrot.slane %v2970_v61, 2 }
 0x15c   : > { %v3151_v2 = vadd.f32 %v3150_v54, %v2871_v47  ;;  %v2428_v9 = vadd.f32 %v4800_v48, %v2427_v3  ;;  %v4175_v10 = vpop.f32.mrb[54].mxu1 }
 0x15d   : > { %v2999_v30 = vadd.f32 %v2998_v12, %v2739_v17  ;;  %v4042_v31 = vpop.f32.mrb[60].mxu0  ;;  %v2430_v13 = vpop.f32.mrb[55].mxu1  ;;  %v2439_v14 = vadd.f32 %v4175_v10, %v4800_v48 }
 0x15e   : > { %v1899_v36 = vpop.f32.mrb[61].mxu0  ;;  %v1908_v49 = vadd.f32 %v4042_v31, %v4800_v48  ;;  %v3152_v12 = vadd.f32 %v3151_v2, %v2872_v53  ;;  %v2874_v19 = vmax.f32 %v2428_v9, 0.0  ;;  %v2431_v24 = vadd.f32 %v4800_v48, %v2430_v13  ;;  %v4178_v47 = vpop.f32.mrb[56].mxu1  ;;  %v5031_v13 = vld [vmem:[%s5327_s2] ss:$0 sm:$0xff] }
 0x15f   : > { %v3000_v42 = vadd.f32 %v2999_v30, %v2740_v29  ;;  %v1900_v43 = vadd.f32 %v4800_v48, %v1899_v36  ;;  %v4043_v45 = vpop.f32.mrb[62].mxu0  ;;  %v2443_v54 = vpop.f32.mrb[57].mxu1  ;;  %v2452_v2 = vadd.f32 %v4178_v47, %v4800_v48 }
 0x160   : > { %v1902_v52 = vpop.f32.mrb[63].mxu0  ;;  %v1911_v62 = vadd.f32 %v4043_v45, %v4800_v48  ;;  %v2744_v11 = vmax.f32 %v1908_v49, 0.0  ;;  %v5020_v30 = vadd.f32 %v3152_v12, %v2873_v0  ;;  %v2875_v36 = vmax.f32 %v2431_v24, 0.0 }
 0x161   : > { %v2742_v56 = vmax.f32 %v1900_v43, 0.0  ;;  %v3001_v57 = vadd.f32 %v3000_v42, %v2741_v41  ;;  %v1903_v59 = vadd.f32 %v4800_v48, %v1902_v52  ;;  %v2877_v43 = vmax.f32 %v2439_v14, 0.0 }
 0x162   : > { %v2745_v26 = vmax.f32 %v1911_v62, 0.0  ;;  %v3160_v45 = vadd.f32 %v2875_v36, %v2874_v19  ;;  %v2972_v49 = vadd.f32 %v2971_v25, %v2970_v61  ;;  %v2444_v60 = vadd.f32 %v4800_v48, %v2443_v54  ;;  %v4179_v62 = vpop.f32.mrb[58].mxu1 }
 0x163   : > { %v3002_v4 = vadd.f32 %v3001_v57, %v2742_v56  ;;  %v2743_v7 = vmax.f32 %v1903_v59, 0.0  ;;  %v2446_v3 = vpop.f32.mrb[59].mxu1 }
 0x164   : > { %v3161_v59 = vadd.f32 %v3160_v45, %v2876_v35  ;;  %v2878_v9 = vmax.f32 %v2444_v60, 0.0  ;;  %v2973_v61 = vrot.slane %v2972_v49, 1 }
 0x165   : > { %v3003_v17 = vadd.f32 %v3002_v4, %v2743_v7  ;;  %v4046_v18 = vpop.f32.mrb[64].mxu0 }
 0x166   : > { %v1915_v29 = vpop.f32.mrb[65].mxu0  ;;  %v1924_v37 = vadd.f32 %v4046_v18, %v4800_v48  ;;  %v3162_v10 = vadd.f32 %v3161_v59, %v2877_v43  ;;  %v2447_v18 = vadd.f32 %v5031_v13, %v2446_v3 }
 0x167   : > { %v3004_v31 = vadd.f32 %v3003_v17, %v2744_v11  ;;  %v1916_v32 = vadd.f32 %v4800_v48, %v1915_v29  ;;  %v4047_v33 = vpop.f32.mrb[66].mxu0  ;;  %v2455_v17 = vadd.f32 %v5031_v13, %v4179_v62 }
 0x168   : > { %v1918_v40 = vpop.f32.mrb[67].mxu0  ;;  %v1927_v53 = vadd.f32 %v4047_v33, %v4800_v48  ;;  %v2748_v0 = vmax.f32 %v1924_v37, 0.0  ;;  %v3163_v25 = vadd.f32 %v3162_v10, %v2878_v9 }
 0x169   : > { %v3005_v41 = vadd.f32 %v3004_v31, %v2745_v26  ;;  %v1919_v42 = vadd.f32 %v4800_v48, %v1918_v40  ;;  %v2746_v52 = vmax.f32 %v1916_v32, 0.0  ;;  %v2880_v31 = vmax.f32 %v2452_v2, 0.0  ;;  %v4182_v40 = vpop.f32.mrb[60].mxu1 }
 0x16a   : > { %v2749_v11 = vmax.f32 %v1927_v53, 0.0  ;;  %v2879_v32 = vmax.f32 %v2447_v18, 0.0  ;;  %v2881_v43 = vmax.f32 %v2455_v17, 0.0  ;;  %v2459_v47 = vpop.f32.mrb[61].mxu1  ;;  %v2468_v62 = vadd.f32 %v5031_v13, %v4182_v40 }
 0x16b   : > { %v3006_v56 = vrot.slane %v3005_v41, 4  ;;  %v2747_v57 = vmax.f32 %v1919_v42, 0.0 }
 0x16c   : > { %v3164_v45 = vadd.f32 %v3163_v25, %v2879_v32 }
 0x16d   : > { %v3007_v4 = vadd.f32 %v3006_v56, %v3005_v41  ;;  %v3012_v7 = vadd.f32 %v2747_v57, %v2746_v52  ;;  %v4050_v8 = vpop.f32.mrb[68].mxu0  ;;  %v2974_v41 = vadd.f32 %v2973_v61, %v2972_v49  ;;  %v2460_v56 = vadd.f32 %v5031_v13, %v2459_v47  ;;  %v4183_v57 = vpop.f32.mrb[62].mxu1 }
 0x16e   : > { %v1931_v12 = vpop.f32.mrb[69].mxu0  ;;  %v1940_v26 = vadd.f32 %v5031_v13, %v4050_v8  ;;  %v3165_v60 = vadd.f32 %v3164_v45, %v2880_v31 }
 0x16f   : > { %v3008_v19 = vrot.slane %v3007_v4, 2  ;;  %v3013_v48 = vadd.f32 %v3012_v7, %v2748_v0  ;;  %v1932_v14 = vadd.f32 %v5031_v13, %v1931_v12  ;;  %v4051_v24 = vpop.f32.mrb[70].mxu0  ;;  %v2462_v0 = vpop.f32.mrb[63].mxu1  ;;  %v3235_v8 = vmul.f32 0.00390625, %v2974_v41 }
 0x170   : > { %v1934_v29 = vpop.f32.mrb[71].mxu0  ;;  %v1943_v42 = vadd.f32 %v5031_v13, %v4051_v24  ;;  %v2752_v59 = vmax.f32 %v1940_v26, 0.0  ;;  %v2463_v7 = vadd.f32 %v5031_v13, %v2462_v0  ;;  %v3166_v61 = vadd.f32 %v3165_v60, %v2881_v43  ;;  %v3254_v24 = vld [vmem:[%s5328_s3 + $0x58] sm:$0xff]  ;;  %v4186_v40 = vpop.f32.mrb[64].mxu1 }
 0x171   : > { %v3009_v33 = vadd.f32 %v3008_v19, %v3007_v4  ;;  %v2750_v35 = vmax.f32 %v1932_v14, 0.0  ;;  %v3014_v36 = vadd.f32 %v3013_v48, %v2749_v11  ;;  %v1935_v37 = vadd.f32 %v5031_v13, %v1934_v29  ;;  %v3253_v14 = vld [vmem:[%s5328_s3 + $0x50] sm:$0xff]  ;;  %v2475_v43 = vpop.f32.mrb[65].mxu1 }
 0x172   : > { %v2882_v4 = vmax.f32 %v2460_v56, 0.0  ;;  %v2753_v9 = vmax.f32 %v1943_v42, 0.0  ;;  %v2471_v11 = vadd.f32 %v5031_v13, %v4183_v57  ;;  %v2883_v48 = vmax.f32 %v2463_v7, 0.0 }
 0x173   : > { %v3010_v52 = vrot.slane %v3009_v33, 1  ;;  %v3015_v53 = vadd.f32 %v3014_v36, %v2750_v35  ;;  %v2751_v54 = vmax.f32 %v1935_v37, 0.0  ;;  %v2884_v29 = vmax.f32 %v2468_v62, 0.0 }
 0x174   : > { %v3167_v31 = vadd.f32 %v3166_v61, %v2882_v4  ;;  %v4322_v32 = vpack.c.bf16 %v3254_v24, %v3253_v14  ;;  %v2885_v41 = vmax.f32 %v2471_v11, 0.0  ;;  %v2484_v57 = vadd.f32 %v5031_v13, %v4186_v40 }
 0x175   : > { %v3011_v2 = vadd.f32 %v3010_v52, %v3009_v33  ;;  %v3016_v3 = vadd.f32 %v3015_v53, %v2751_v54  ;;  %v4054_v49 = vpop.f32.mrb[72].mxu0  ;;  %v2476_v53 = vadd.f32 %v5031_v13, %v2475_v43  ;;  %v4187_v54 = vpop.f32.mrb[66].mxu1 }
 0x176   : > { %v1947_v10 = vpop.f32.mrb[73].mxu0  ;;  %v1956_v25 = vadd.f32 %v5031_v13, %v4054_v49  ;;  %v3168_v42 = vadd.f32 %v3167_v31, %v2883_v48  ;;  %4323 = vmatpush3.bf16.msra.mxu1 %v4322_v32  ;;  %v2487_v7 = vadd.f32 %v5031_v13, %v4187_v54 }
 0x177   : > { %v3236_v12 = vmul.f32 0.00390625, %v3011_v2  ;;  %v3017_v17 = vadd.f32 %v3016_v3, %v2752_v59  ;;  %v1948_v18 = vadd.f32 %v5031_v13, %v1947_v10  ;;  %v4055_v19 = vpop.f32.mrb[74].mxu0  ;;  %4324 = vmatprep.subr.bf16.mxu1 %v4509_v38  ;;  %v2478_v59 = vpop.f32.mrb[67].mxu1  ;;  %v2886_v2 = vmax.f32 %v2476_v53, 0.0 }
 0x178   : > { %v1950_v26 = vpop.f32.mrb[75].mxu0  ;;  %v1959_v47 = vadd.f32 %v5031_v13, %v4055_v19  ;;  %v3169_v56 = vadd.f32 %v3168_v42, %v2884_v29  ;;  %v2756_v60 = vmax.f32 %v1956_v25, 0.0  ;;  %v2479_v3 = vadd.f32 %v5031_v13, %v2478_v59  ;;  %v4190_v25 = vpop.f32.mrb[68].mxu1 }
 0x179   : > { %v5052_v33 = vsel %vm3274_vm1, %v3236_v12, %v3235_v8  ;;  %v2754_v35 = vmax.f32 %v1948_v18, 0.0  ;;  %v3018_v36 = vadd.f32 %v3017_v17, %v2753_v9  ;;  %v1951_v37 = vadd.f32 %v5031_v13, %v1950_v26  ;;  %v2491_v31 = vpop.f32.mrb[69].mxu1 }
 0x17a   : > { %v3170_v4 = vadd.f32 %v3169_v56, %v2885_v41  ;;  %v2757_v8 = vmax.f32 %v1959_v47, 0.0  ;;  %v2887_v11 = vmax.f32 %v2479_v3, 0.0  ;;  %v2888_v17 = vmax.f32 %v2484_v57, 0.0  ;;  %v4191_v40 = vpop.f32.mrb[70].mxu1 }
 0x17b   : > { %v3019_v45 = vadd.f32 %v3018_v36, %v2754_v35  ;;  %v2755_v52 = vmax.f32 %v1951_v37, 0.0  ;;  %v2889_v26 = vmax.f32 %v2487_v7, 0.0  ;;  %v2492_v37 = vadd.f32 %v5031_v13, %v2491_v31  ;;  %v2494_v43 = vpop.f32.mrb[71].mxu1 }
 0x17c   : > { %v3171_v18 = vadd.f32 %v3170_v4, %v2886_v2  ;;  %v2500_v42 = vadd.f32 %v5031_v13, %v4190_v25  ;;  %v2495_v54 = vadd.f32 %v5031_v13, %v2494_v43  ;;  %v2503_v59 = vadd.f32 %v5031_v13, %v4191_v40 }
 0x17d   : > { %v3020_v62 = vadd.f32 %v3019_v45, %v2755_v52  ;;  %v4058_v0 = vpop.f32.mrb[76].mxu0  ;;  %v2890_v53 = vmax.f32 %v2492_v37, 0.0 }
 0x17e   : > { %v1963_v49 = vpop.f32.mrb[77].mxu0  ;;  %v1972_v19 = vadd.f32 %v5031_v13, %v4058_v0  ;;  %v3172_v29 = vadd.f32 %v3171_v18, %v2887_v11  ;;  %v2891_v3 = vmax.f32 %v2495_v54, 0.0  ;;  %v2892_v4 = vmax.f32 %v2500_v42, 0.0  ;;  %v4194_v11 = vpop.f32.mrb[72].mxu1 }
 0x17f   : > { %v3021_v9 = vadd.f32 %v3020_v62, %v2756_v60  ;;  %v1964_v10 = vadd.f32 %v5031_v13, %v1963_v49  ;;  %v4059_v61 = vpop.f32.mrb[78].mxu0  ;;  %v2507_v18 = vpop.f32.mrb[73].mxu1 }
 0x180   : > { %v1966_v12 = vpop.f32.mrb[79].mxu0  ;;  %v1975_v35 = vadd.f32 %v5031_v13, %v4059_v61  ;;  %v3173_v41 = vadd.f32 %v3172_v29, %v2888_v17  ;;  %v2760_v45 = vmax.f32 %v1972_v19, 0.0  ;;  %v4195_v25 = vpop.f32.mrb[74].mxu1  ;;  %v2516_v29 = vadd.f32 %v5031_v13, %v4194_v11 }
 0x181   : > { %v2758_v48 = vmax.f32 %v1964_v10, 0.0  ;;  %v3022_v14 = vadd.f32 %v3021_v9, %v2757_v8  ;;  %v1967_v24 = vadd.f32 %v5031_v13, %v1966_v12  ;;  %v2893_v12 = vmax.f32 %v2503_v59, 0.0  ;;  %v2510_v31 = vpop.f32.mrb[75].mxu1 }
 0x182   : > { %v3174_v57 = vadd.f32 %v3173_v41, %v2889_v26  ;;  %v2761_v60 = vmax.f32 %v1975_v35, 0.0  ;;  %v2511_v40 = vadd.f32 %v5031_v13, %v2510_v31  ;;  %v2519_v43 = vadd.f32 %v5031_v13, %v4195_v25 }
 0x183   : > { %v3023_v32 = vadd.f32 %v3022_v14, %v2758_v48  ;;  %v2759_v36 = vmax.f32 %v1967_v24, 0.0  ;;  %v2508_v24 = vadd.f32 %v5031_v13, %v2507_v18 }
 0x184   : > { %v3175_v7 = vadd.f32 %v3174_v57, %v2890_v53  ;;  %v2895_v54 = vmax.f32 %v2511_v40, 0.0  ;;  %v2896_v57 = vmax.f32 %v2516_v29, 0.0 }
 0x185   : > { %v3024_v47 = vadd.f32 %v3023_v32, %v2759_v36  ;;  %v4062_v52 = vpop.f32.mrb[80].mxu0  ;;  %v2894_v37 = vmax.f32 %v2508_v24, 0.0 }
 0x186   : > { %v1979_v56 = vpop.f32.mrb[81].mxu0  ;;  %v1988_v8 = vadd.f32 %v5031_v13, %v4062_v52  ;;  %v3176_v17 = vadd.f32 %v3175_v7, %v2891_v3  ;;  %v4198_v3 = vpop.f32.mrb[76].mxu1 }
 0x187   : > { %v3025_v62 = vadd.f32 %v3024_v47, %v2760_v45  ;;  %v1980_v0 = vadd.f32 %v5031_v13, %v1979_v56  ;;  %v4063_v2 = vpop.f32.mrb[82].mxu0  ;;  %v2523_v7 = vpop.f32.mrb[77].mxu1 }
 0x188   : > { %v1982_v49 = vpop.f32.mrb[83].mxu0  ;;  %v1991_v48 = vadd.f32 %v5031_v13, %v4063_v2  ;;  %v3177_v26 = vadd.f32 %v3176_v17, %v2892_v4  ;;  %v2764_v32 = vmax.f32 %v1988_v8, 0.0  ;;  %v4199_v11 = vpop.f32.mrb[78].mxu1  ;;  %v2532_v17 = vadd.f32 %v5031_v13, %v4198_v3 }
 0x189   : > { %v2762_v9 = vmax.f32 %v1980_v0, 0.0  ;;  %v3026_v10 = vadd.f32 %v3025_v62, %v2761_v60  ;;  %v1983_v61 = vadd.f32 %v5031_v13, %v1982_v49  ;;  %v2897_v49 = vmax.f32 %v2519_v43, 0.0  ;;  %v2526_v18 = vpop.f32.mrb[79].mxu1 }
 0x18a   : > { %v3178_v42 = vadd.f32 %v3177_v26, %v2893_v12  ;;  %v2765_v45 = vmax.f32 %v1991_v48, 0.0  ;;  %v2527_v25 = vadd.f32 %v5031_v13, %v2526_v18  ;;  %v2535_v31 = vadd.f32 %v5031_v13, %v4199_v11  ;;  %v3256_v18 = vld [vmem:[%s5328_s3 + $0x68] sm:$0xff] }
 0x18b   : > { %v3027_v19 = vadd.f32 %v3026_v10, %v2762_v9  ;;  %v2763_v14 = vmax.f32 %v1983_v61, 0.0  ;;  %v2524_v61 = vadd.f32 %v5031_v13, %v2523_v7  ;;  %v2900_v43 = vmax.f32 %v2532_v17, 0.0  ;;  %v3255_v17 = vld [vmem:[%s5328_s3 + $0x60] sm:$0xff] }
 0x18c   : > { %v3179_v59 = vadd.f32 %v3178_v42, %v2894_v37  ;;  %v2899_v40 = vmax.f32 %v2527_v25, 0.0  ;;  %v4325_v25 = vpack.c.bf16 %v3256_v18, %v3255_v17 }
 0x18d   : > { %v3028_v35 = vadd.f32 %v3027_v19, %v2763_v14  ;;  %v4066_v36 = vpop.f32.mrb[84].mxu0  ;;  %v2898_v24 = vmax.f32 %v2524_v61, 0.0 }
 0x18e   : > { %v1995_v41 = vpop.f32.mrb[85].mxu0  ;;  %v2004_v60 = vadd.f32 %v5031_v13, %v4066_v36  ;;  %v3180_v4 = vadd.f32 %v3179_v59, %v2895_v54  ;;  %4326 = vmatpush3.bf16.msra.mxu1 %v4325_v25 }
 0x18f   : > { %v3029_v47 = vadd.f32 %v3028_v35, %v2764_v32  ;;  %v1996_v52 = vadd.f32 %v5031_v13, %v1995_v41  ;;  %v4067_v53 = vpop.f32.mrb[86].mxu0  ;;  %4327 = vmatprep.subr.bf16.mxu1 %v4509_v38 }
 0x190   : > { %v1998_v56 = vpop.f32.mrb[87].mxu0  ;;  %v2007_v9 = vadd.f32 %v5031_v13, %v4067_v53  ;;  %v3181_v12 = vadd.f32 %v3180_v4, %v2896_v57  ;;  %v2768_v19 = vmax.f32 %v2004_v60, 0.0  ;;  %v2901_v57 = vmax.f32 %v2535_v31, 0.0 }
 0x191   : > { %v2766_v62 = vmax.f32 %v1996_v52, 0.0  ;;  %v3030_v0 = vadd.f32 %v3029_v47, %v2765_v45  ;;  %v1999_v2 = vadd.f32 %v5031_v13, %v1998_v56  ;;  %v4202_v56 = vpop.f32.mrb[80].mxu1 }
 0x192   : > { %v3182_v29 = vadd.f32 %v3181_v12, %v2897_v49  ;;  %v2769_v32 = vmax.f32 %v2007_v9, 0.0  ;;  %v2539_v60 = vpop.f32.mrb[81].mxu1 }
 0x193   : > { %v3031_v8 = vadd.f32 %v3030_v0, %v2766_v62  ;;  %v2767_v10 = vmax.f32 %v1999_v2, 0.0  ;;  %v2548_v2 = vadd.f32 %v5031_v13, %v4202_v56  ;;  %v2540_v3 = vadd.f32 %v5031_v13, %v2539_v60  ;;  %v4203_v49 = vpop.f32.mrb[82].mxu1 }
 0x194   : > { %v3183_v45 = vadd.f32 %v3182_v29, %v2898_v24  ;;  %v2551_v24 = vadd.f32 %v5031_v13, %v4203_v49 }
 0x195   : > { %v3032_v48 = vadd.f32 %v3031_v8, %v2767_v10  ;;  %v4070_v14 = vpop.f32.mrb[88].mxu0  ;;  %v2542_v8 = vpop.f32.mrb[83].mxu1  ;;  %v2902_v11 = vmax.f32 %v2540_v3, 0.0 }
 0x196   : > { %v2011_v26 = vpop.f32.mrb[89].mxu0  ;;  %v2020_v41 = vadd.f32 %v5031_v13, %v4070_v14  ;;  %v3184_v59 = vadd.f32 %v3183_v45, %v2899_v40  ;;  %v2543_v12 = vadd.f32 %v5031_v13, %v2542_v8  ;;  %v2905_v56 = vmax.f32 %v2551_v24, 0.0 }
 0x197   : > { %v3033_v35 = vadd.f32 %v3032_v48, %v2768_v19  ;;  %v2012_v36 = vadd.f32 %v5031_v13, %v2011_v26  ;;  %v4071_v37 = vpop.f32.mrb[90].mxu0  ;;  %v3257_v19 = vld [vmem:[%s5328_s3 + $0x70] sm:$0xff]  ;;  %v3258_v26 = vld [vmem:[%s5328_s3 + $0x78] sm:$0xff] }
 0x198   : > { %v2014_v42 = vpop.f32.mrb[91].mxu0  ;;  %v2023_v53 = vadd.f32 %v5031_v13, %v4071_v37  ;;  %v2772_v4 = vmax.f32 %v2020_v41, 0.0  ;;  %v3185_v7 = vadd.f32 %v3184_v59, %v2900_v43 }
 0x199   : > { %v2770_v47 = vmax.f32 %v2012_v36, 0.0  ;;  %v3034_v52 = vadd.f32 %v3033_v35, %v2769_v32  ;;  %v2015_v54 = vadd.f32 %v5031_v13, %v2014_v42  ;;  %v2904_v35 = vmax.f32 %v2548_v2, 0.0 }
 0x19a   : > { %v2773_v9 = vmax.f32 %v2023_v53, 0.0  ;;  %v3186_v14 = vadd.f32 %v3185_v7, %v2901_v57  ;;  %v2903_v36 = vmax.f32 %v2543_v12, 0.0  ;;  %v4328_v42 = vpack.c.bf16 %v3258_v26, %v3257_v19 }
 0x19b   : > { %v3035_v62 = vadd.f32 %v3034_v52, %v2770_v47  ;;  %v2771_v0 = vmax.f32 %v2015_v54, 0.0  ;;  %v4206_v52 = vpop.f32.mrb[84].mxu1  ;;  %v4511_v53 = vmov 0.0  }
 0x19c   : > { %v3187_v41 = vadd.f32 %v3186_v14, %v2902_v11  ;;  %4268 = vmatprep.mubr.msk.f32.mxu1 %vm4510_vm2, %v4511_v53  ;;  %v2555_v59 = vpop.f32.mrb[85].mxu1  ;;  %4329 = vmatpush3.bf16.msra.mxu1 %v4328_v42 }
 0x19d   : > { %v3036_v10 = vadd.f32 %v3035_v62, %v2771_v0  ;;  %v4074_v61 = vpop.f32.mrb[92].mxu0  ;;  %v2564_v0 = vadd.f32 %v5031_v13, %v4206_v52  ;;  %v2556_v2 = vadd.f32 %v5031_v13, %v2555_v59  ;;  %v4207_v3 = vpop.f32.mrb[86].mxu1  ;;  %4330 = vmatprep.subr.bf16.mxu1 %v4509_v38 }
 0x19e   : > { %v2027_v48 = vpop.f32.mrb[93].mxu0  ;;  %v2036_v37 = vadd.f32 %v5031_v13, %v4074_v61  ;;  %v3188_v57 = vadd.f32 %v3187_v41, %v2903_v36  ;;  %v2558_v7 = vpop.f32.mrb[87].mxu1  ;;  %v2567_v61 = vadd.f32 %v5031_v13, %v4207_v3 }
 0x19f   : > { %v3037_v29 = vadd.f32 %v3036_v10, %v2772_v4  ;;  %v2028_v31 = vadd.f32 %v5031_v13, %v2027_v48  ;;  %v4075_v32 = vpop.f32.mrb[94].mxu0  ;;  %v2906_v10 = vmax.f32 %v2556_v2, 0.0  ;;  %v2559_v11 = vadd.f32 %v5031_v13, %v2558_v7 }
 0x1a0   : > { %v2030_v40 = vpop.f32.mrb[95].mxu0  ;;  %v2039_v54 = vadd.f32 %v5031_v13, %v4075_v32  ;;  %v2776_v49 = vmax.f32 %v2036_v37, 0.0  ;;  %v3189_v4 = vadd.f32 %v3188_v57, %v2904_v35  ;;  %v2908_v24 = vmax.f32 %v2564_v0, 0.0  ;;  %v4210_v37 = vpop.f32.mrb[88].mxu1 }
 0x1a1   : > { %v2774_v43 = vmax.f32 %v2028_v31, 0.0  ;;  %v3038_v45 = vadd.f32 %v3037_v29, %v2773_v9  ;;  %v2031_v47 = vadd.f32 %v5031_v13, %v2030_v40  ;;  %v2907_v25 = vmax.f32 %v2559_v11, 0.0  ;;  %v2571_v42 = vpop.f32.mrb[89].mxu1 }
 0x1a2   : > { %v2777_v12 = vmax.f32 %v2039_v54, 0.0  ;;  %v5117_v18 = vadd.f32 %v3189_v4, %v2905_v56  ;;  %v2909_v35 = vmax.f32 %v2567_v61, 0.0  ;;  %v2572_v52 = vadd.f32 %v5031_v13, %v2571_v42  ;;  %v4211_v54 = vpop.f32.mrb[90].mxu1 }
 0x1a3   : > { %v3039_v60 = vadd.f32 %v3038_v45, %v2774_v43  ;;  %v2775_v62 = vmax.f32 %v2031_v47, 0.0  ;;  %v3197_v36 = vadd.f32 %v2907_v25, %v2906_v10  ;;  %v2580_v57 = vadd.f32 %v5031_v13, %v4210_v37  ;;  %v2574_v59 = vpop.f32.mrb[91].mxu1 }
 0x1a4   : > { %v2910_v2 = vmax.f32 %v2572_v52, 0.0  ;;  %v2583_v7 = vadd.f32 %v5031_v13, %v4211_v54 }
 0x1a5   : > { %v3040_v8 = vadd.f32 %v3039_v60, %v2775_v62  ;;  %v4078_v9 = vpop.f32.mrb[96].mxu0  ;;  %v3198_v47 = vadd.f32 %v3197_v36, %v2908_v24 }
 0x1a6   : > { %v2043_v17 = vpop.f32.mrb[97].mxu0  ;;  %v2052_v26 = vadd.f32 %v5031_v13, %v4078_v9 }
 0x1a7   : > { %v3041_v19 = vadd.f32 %v3040_v8, %v2776_v49  ;;  %v2044_v48 = vadd.f32 %v5031_v13, %v2043_v17  ;;  %v4079_v14 = vpop.f32.mrb[98].mxu0  ;;  %v3199_v3 = vadd.f32 %v3198_v47, %v2909_v35  ;;  %v2575_v8 = vadd.f32 %v5031_v13, %v2574_v59 }
 0x1a8   : > { %v2046_v29 = vpop.f32.mrb[99].mxu0  ;;  %v2055_v41 = vadd.f32 %v5031_v13, %v4079_v14  ;;  %v2780_v56 = vmax.f32 %v2052_v26, 0.0  ;;  %v2913_v35 = vmax.f32 %v2583_v7, 0.0 }
 0x1a9   : > { %v3042_v31 = vadd.f32 %v3041_v19, %v2777_v12  ;;  %v2047_v32 = vadd.f32 %v5031_v13, %v2046_v29  ;;  %v2778_v40 = vmax.f32 %v2044_v48, 0.0  ;;  %v3200_v12 = vadd.f32 %v3199_v3, %v2910_v2 }
 0x1aa   : > { %v2781_v49 = vmax.f32 %v2055_v41, 0.0  ;;  %v2912_v48 = vmax.f32 %v2580_v57, 0.0  ;;  %v2911_v14 = vmax.f32 %v2575_v8, 0.0 }
 0x1ab   : > { %v3043_v43 = vrot.slane %v3042_v31, 4  ;;  %v2779_v45 = vmax.f32 %v2047_v32, 0.0 }
 0x1ac   : > { %v3201_v36 = vadd.f32 %v3200_v12, %v2911_v14 }
 0x1ad   : > { %v3044_v60 = vadd.f32 %v3043_v43, %v3042_v31  ;;  %v3049_v62 = vadd.f32 %v2779_v45, %v2778_v40  ;;  %v4082_v0 = vpop.f32.mrb[100].mxu0  ;;  %v4214_v31 = vpop.f32.mrb[92].mxu1 }
 0x1ae   : > { %v2059_v4 = vpop.f32.mrb[101].mxu0  ;;  %v2068_v17 = vadd.f32 %v5031_v13, %v4082_v0  ;;  %v2587_v37 = vpop.f32.mrb[93].mxu1  ;;  %v3202_v52 = vadd.f32 %v3201_v36, %v2912_v48  ;;  %v2596_v54 = vadd.f32 %v5031_v13, %v4214_v31 }
 0x1af   : > { %v3045_v9 = vrot.slane %v3044_v60, 2  ;;  %v3050_v10 = vadd.f32 %v3049_v62, %v2780_v56  ;;  %v2060_v61 = vadd.f32 %v5031_v13, %v2059_v4  ;;  %v4083_v11 = vpop.f32.mrb[102].mxu0  ;;  %v2588_v43 = vadd.f32 %v5031_v13, %v2587_v37  ;;  %v4215_v45 = vpop.f32.mrb[94].mxu1 }
 0x1b0   : > { %v2062_v19 = vpop.f32.mrb[103].mxu0  ;;  %v2071_v32 = vadd.f32 %v5031_v13, %v4083_v11  ;;  %v2784_v47 = vmax.f32 %v2068_v17, 0.0  ;;  %v2590_v56 = vpop.f32.mrb[95].mxu1  ;;  %v2599_v4 = vadd.f32 %v5031_v13, %v4215_v45  ;;  %v2916_v17 = vmax.f32 %v2596_v54, 0.0 }
 0x1b1   : > { %v3046_v24 = vadd.f32 %v3045_v9, %v3044_v60  ;;  %v2782_v25 = vmax.f32 %v2060_v61, 0.0  ;;  %v3051_v26 = vadd.f32 %v3050_v10, %v2781_v49  ;;  %v2063_v29 = vadd.f32 %v5031_v13, %v2062_v19 }
 0x1b2   : > { %v2914_v62 = vmax.f32 %v2588_v43, 0.0  ;;  %v2591_v0 = vadd.f32 %v5031_v13, %v2590_v56  ;;  %v2785_v2 = vmax.f32 %v2071_v32, 0.0  ;;  %v3203_v49 = vadd.f32 %v3202_v52, %v2913_v35 }
 0x1b3   : > { %v3047_v40 = vrot.slane %v3046_v24, 1  ;;  %v3052_v41 = vadd.f32 %v3051_v26, %v2782_v25  ;;  %v2783_v42 = vmax.f32 %v2063_v29, 0.0  ;;  %v4218_v25 = vpop.f32.mrb[96].mxu1  ;;  %v2917_v29 = vmax.f32 %v2599_v4, 0.0 }
 0x1b4   : > { %v2915_v61 = vmax.f32 %v2591_v0, 0.0  ;;  %v3204_v19 = vadd.f32 %v3203_v49, %v2914_v62  ;;  %v2603_v32 = vpop.f32.mrb[97].mxu1  ;;  %v2612_v43 = vadd.f32 %v5031_v13, %v4218_v25 }
 0x1b5   : > { %v3048_v57 = vadd.f32 %v3047_v40, %v3046_v24  ;;  %v3053_v59 = vadd.f32 %v3052_v41, %v2783_v42  ;;  %v4086_v60 = vpop.f32.mrb[104].mxu0  ;;  %v2604_v40 = vadd.f32 %v5031_v13, %v2603_v32  ;;  %v4219_v41 = vpop.f32.mrb[98].mxu1 }
 0x1b6   : > { %v2075_v3 = vpop.f32.mrb[105].mxu0  ;;  %v2084_v11 = vadd.f32 %v5031_v13, %v4086_v60  ;;  %v3205_v31 = vadd.f32 %v3204_v19, %v2915_v61  ;;  %v2606_v45 = vpop.f32.mrb[99].mxu1  ;;  %v2615_v60 = vadd.f32 %v5031_v13, %v4219_v41 }
 0x1b7   : > { %v3237_v7 = vmul.f32 0.00390625, %v3048_v57  ;;  %v3054_v8 = vadd.f32 %v3053_v59, %v2784_v47  ;;  %v2076_v9 = vadd.f32 %v5031_v13, %v2075_v3  ;;  %v4087_v10 = vpop.f32.mrb[106].mxu0  ;;  %v2918_v56 = vmax.f32 %v2604_v40, 0.0 }
 0x1b8   : > { %v2078_v12 = vpop.f32.mrb[107].mxu0  ;;  %v2087_v36 = vadd.f32 %v5031_v13, %v4087_v10  ;;  %v3206_v42 = vadd.f32 %v3205_v31, %v2916_v17  ;;  %v2788_v47 = vmax.f32 %v2084_v11, 0.0  ;;  %v2921_v17 = vmax.f32 %v2615_v60, 0.0 }
 0x1b9   : > { %v2786_v48 = vmax.f32 %v2076_v9, 0.0  ;;  %v3055_v14 = vadd.f32 %v3054_v8, %v2785_v2  ;;  %v2079_v24 = vadd.f32 %v5031_v13, %v2078_v12  ;;  %v5139_v26 = vsel %vm3276_vm3, %v3237_v7, %v5052_v33  ;;  %v4222_v12 = vpop.f32.mrb[100].mxu1 }
 0x1ba   : > { %v2607_v33 = vadd.f32 %v5031_v13, %v2606_v45  ;;  %v3207_v59 = vadd.f32 %v3206_v42, %v2917_v29  ;;  %v2789_v62 = vmax.f32 %v2087_v36, 0.0  ;;  %v2920_v7 = vmax.f32 %v2612_v43, 0.0 }
 0x1bb   : > { %v3056_v35 = vadd.f32 %v3055_v14, %v2786_v48  ;;  %v2787_v37 = vmax.f32 %v2079_v24, 0.0  ;;  %v2619_v48 = vpop.f32.mrb[101].mxu1 }
 0x1bc   : > { %v2919_v49 = vmax.f32 %v2607_v33, 0.0  ;;  %v3208_v8 = vadd.f32 %v3207_v59, %v2918_v56  ;;  %v2620_v29 = vadd.f32 %v5031_v13, %v2619_v48  ;;  %v4223_v31 = vpop.f32.mrb[102].mxu1 }
 0x1bd   : > { %v3057_v52 = vadd.f32 %v3056_v35, %v2787_v37  ;;  %v4090_v54 = vpop.f32.mrb[108].mxu0  ;;  %v2628_v35 = vadd.f32 %v5031_v13, %v4222_v12  ;;  %v2622_v36 = vpop.f32.mrb[103].mxu1 }
 0x1be   : > { %v2091_v57 = vpop.f32.mrb[109].mxu0  ;;  %v2100_v9 = vadd.f32 %v5031_v13, %v4090_v54  ;;  %v3209_v19 = vadd.f32 %v3208_v8, %v2919_v49  ;;  %v2922_v42 = vmax.f32 %v2620_v29, 0.0  ;;  %v2623_v43 = vadd.f32 %v5031_v13, %v2622_v36 }
 0x1bf   : > { %v3058_v0 = vadd.f32 %v3057_v52, %v2788_v47  ;;  %v2092_v2 = vadd.f32 %v5031_v13, %v2091_v57  ;;  %v4091_v3 = vpop.f32.mrb[110].mxu0  ;;  %v2631_v52 = vadd.f32 %v5031_v13, %v4223_v31 }
 0x1c0   : > { %v2094_v4 = vpop.f32.mrb[111].mxu0  ;;  %v2103_v24 = vadd.f32 %v5031_v13, %v4091_v3  ;;  %v3210_v32 = vadd.f32 %v3209_v19, %v2920_v7  ;;  %v2792_v37 = vmax.f32 %v2100_v9, 0.0  ;;  %v2923_v59 = vmax.f32 %v2623_v43, 0.0  ;;  %v4226_v7 = vpop.f32.mrb[104].mxu1 }
 0x1c1   : > { %v2790_v10 = vmax.f32 %v2092_v2, 0.0  ;;  %v3059_v61 = vadd.f32 %v3058_v0, %v2789_v62  ;;  %v2095_v11 = vadd.f32 %v5031_v13, %v2094_v4  ;;  %v2924_v62 = vmax.f32 %v2628_v35, 0.0 }
 0x1c2   : > { %v3211_v47 = vadd.f32 %v3210_v32, %v2921_v17  ;;  %v2793_v54 = vmax.f32 %v2103_v24, 0.0  ;;  %v2925_v8 = vmax.f32 %v2631_v52, 0.0 }
 0x1c3   : > { %v3060_v14 = vadd.f32 %v3059_v61, %v2790_v10  ;;  %v2791_v25 = vmax.f32 %v2095_v11, 0.0  ;;  %v2635_v10 = vpop.f32.mrb[105].mxu1 }
 0x1c4   : > { %v3212_v0 = vadd.f32 %v3211_v47, %v2922_v42  ;;  %v2636_v17 = vadd.f32 %v5031_v13, %v2635_v10  ;;  %v4227_v19 = vpop.f32.mrb[106].mxu1 }
 0x1c5   : > { %v3061_v40 = vadd.f32 %v3060_v14, %v2791_v25  ;;  %v4094_v41 = vpop.f32.mrb[112].mxu0  ;;  %v2644_v14 = vadd.f32 %v5031_v13, %v4226_v7  ;;  %v2638_v24 = vpop.f32.mrb[107].mxu1 }
 0x1c6   : > { %v2107_v45 = vpop.f32.mrb[113].mxu0  ;;  %v2116_v2 = vadd.f32 %v5031_v13, %v4094_v41  ;;  %v3213_v9 = vadd.f32 %v3212_v0, %v2923_v59  ;;  %v2926_v32 = vmax.f32 %v2636_v17, 0.0  ;;  %v2639_v35 = vadd.f32 %v5031_v13, %v2638_v24 }
 0x1c7   : > { %v3062_v56 = vadd.f32 %v3061_v40, %v2792_v37  ;;  %v2108_v33 = vadd.f32 %v5031_v13, %v2107_v45  ;;  %v4095_v57 = vpop.f32.mrb[114].mxu0  ;;  %v2647_v40 = vadd.f32 %v5031_v13, %v4227_v19 }
 0x1c8   : > { %v2110_v60 = vpop.f32.mrb[115].mxu0  ;;  %v2119_v11 = vadd.f32 %v5031_v13, %v4095_v57  ;;  %v3214_v48 = vadd.f32 %v3213_v9, %v2924_v62  ;;  %v2796_v25 = vmax.f32 %v2116_v2, 0.0  ;;  %v2927_v47 = vmax.f32 %v2639_v35, 0.0  ;;  %v4230_v62 = vpop.f32.mrb[108].mxu1 }
 0x1c9   : > { %v2794_v3 = vmax.f32 %v2108_v33, 0.0  ;;  %v3063_v49 = vadd.f32 %v3062_v56, %v2793_v54  ;;  %v2111_v4 = vadd.f32 %v5031_v13, %v2110_v60  ;;  %v2928_v54 = vmax.f32 %v2644_v14, 0.0 }
 0x1ca   : > { %v3215_v37 = vadd.f32 %v3214_v48, %v2925_v8  ;;  %v2797_v41 = vmax.f32 %v2119_v11, 0.0  ;;  %v2929_v0 = vmax.f32 %v2647_v40, 0.0 }
 0x1cb   : > { %v3064_v61 = vadd.f32 %v3063_v49, %v2794_v3  ;;  %v2795_v12 = vmax.f32 %v2111_v4, 0.0  ;;  %v2651_v3 = vpop.f32.mrb[109].mxu1 }
 0x1cc   : > { %v3216_v56 = vadd.f32 %v3215_v37, %v2926_v32  ;;  %v2652_v8 = vadd.f32 %v5031_v13, %v2651_v3  ;;  %v4231_v9 = vpop.f32.mrb[110].mxu1 }
 0x1cd   : > { %v3065_v29 = vadd.f32 %v3064_v61, %v2795_v12  ;;  %v4098_v31 = vpop.f32.mrb[116].mxu0  ;;  %v2660_v61 = vadd.f32 %v5031_v13, %v4230_v62  ;;  %v2654_v11 = vpop.f32.mrb[111].mxu1 }
 0x1ce   : > { %v2123_v36 = vpop.f32.mrb[117].mxu0  ;;  %v2132_v33 = vadd.f32 %v5031_v13, %v4098_v31  ;;  %v3217_v2 = vadd.f32 %v3216_v56, %v2927_v47  ;;  %v2930_v48 = vmax.f32 %v2652_v8, 0.0  ;;  %v2655_v14 = vadd.f32 %v5031_v13, %v2654_v11 }
 0x1cf   : > { %v3066_v42 = vadd.f32 %v3065_v29, %v2796_v25  ;;  %v2124_v43 = vadd.f32 %v5031_v13, %v2123_v36  ;;  %v4099_v45 = vpop.f32.mrb[118].mxu0  ;;  %v2663_v29 = vadd.f32 %v5031_v13, %v4231_v9 }
 0x1d0   : > { %v2126_v52 = vpop.f32.mrb[119].mxu0  ;;  %v2135_v4 = vadd.f32 %v5031_v13, %v4099_v45  ;;  %v3218_v10 = vadd.f32 %v3217_v2, %v2928_v54  ;;  %v2800_v12 = vmax.f32 %v2132_v33, 0.0  ;;  %v2931_v37 = vmax.f32 %v2655_v14, 0.0  ;;  %v4234_v54 = vpop.f32.mrb[112].mxu1 }
 0x1d1   : > { %v2798_v57 = vmax.f32 %v2124_v43, 0.0  ;;  %v3067_v59 = vadd.f32 %v3066_v42, %v2797_v41  ;;  %v2127_v60 = vadd.f32 %v5031_v13, %v2126_v52  ;;  %v2932_v41 = vmax.f32 %v2660_v61, 0.0 }
 0x1d2   : > { %v3219_v25 = vadd.f32 %v3218_v10, %v2929_v0  ;;  %v2801_v31 = vmax.f32 %v2135_v4, 0.0  ;;  %v2933_v56 = vmax.f32 %v2663_v29, 0.0 }
 0x1d3   : > { %v3068_v49 = vadd.f32 %v3067_v59, %v2798_v57  ;;  %v2799_v7 = vmax.f32 %v2127_v60, 0.0  ;;  %v2667_v57 = vpop.f32.mrb[113].mxu1 }
 0x1d4   : > { %v3220_v42 = vadd.f32 %v3219_v25, %v2930_v48  ;;  %v2668_v0 = vadd.f32 %v5031_v13, %v2667_v57  ;;  %v4235_v2 = vpop.f32.mrb[114].mxu1 }
 0x1d5   : > { %v3069_v17 = vadd.f32 %v3068_v49, %v2799_v7  ;;  %v4102_v19 = vpop.f32.mrb[120].mxu0  ;;  %v2676_v49 = vadd.f32 %v5031_v13, %v4234_v54  ;;  %v2670_v4 = vpop.f32.mrb[115].mxu1 }
 0x1d6   : > { %v2139_v24 = vpop.f32.mrb[121].mxu0  ;;  %v2148_v43 = vadd.f32 %v5031_v13, %v4102_v19  ;;  %v3221_v33 = vadd.f32 %v3220_v42, %v2931_v37  ;;  %v2934_v10 = vmax.f32 %v2668_v0, 0.0  ;;  %v2671_v61 = vadd.f32 %v5031_v13, %v2670_v4  ;;  %v5188_v4 = vld [vmem:[%s5327_s2] ss:$0 sm:$0xff] }
 0x1d7   : > { %v3070_v32 = vadd.f32 %v3069_v17, %v2800_v12  ;;  %v2140_v35 = vadd.f32 %v5031_v13, %v2139_v24  ;;  %v4103_v36 = vpop.f32.mrb[122].mxu0  ;;  %v2679_v17 = vadd.f32 %v5031_v13, %v4235_v2 }
 0x1d8   : > { %v2142_v40 = vpop.f32.mrb[123].mxu0  ;;  %v2151_v60 = vadd.f32 %v5031_v13, %v4103_v36  ;;  %v3222_v3 = vadd.f32 %v3221_v33, %v2932_v41  ;;  %v2804_v7 = vmax.f32 %v2148_v43, 0.0  ;;  %v2935_v25 = vmax.f32 %v2671_v61, 0.0 }
 0x1d9   : > { %v2802_v45 = vmax.f32 %v2140_v35, 0.0  ;;  %v3071_v47 = vadd.f32 %v3070_v32, %v2801_v31  ;;  %v2143_v52 = vadd.f32 %v5031_v13, %v2142_v40  ;;  %v2936_v31 = vmax.f32 %v2676_v49, 0.0 }
 0x1da   : > { %v3223_v12 = vadd.f32 %v3222_v3, %v2933_v56  ;;  %v2805_v19 = vmax.f32 %v2151_v60, 0.0  ;;  %v2937_v41 = vmax.f32 %v2679_v17, 0.0 }
 0x1db   : > { %v3072_v59 = vadd.f32 %v3071_v47, %v2802_v45  ;;  %v2803_v62 = vmax.f32 %v2143_v52, 0.0 }
 0x1dc   : > { %v3224_v32 = vadd.f32 %v3223_v12, %v2934_v10 }
 0x1dd   : > { %v3073_v8 = vadd.f32 %v3072_v59, %v2803_v62  ;;  %v4106_v9 = vpop.f32.mrb[124].mxu0 }
 0x1de   : > { %v2155_v11 = vpop.f32.mrb[125].mxu0  ;;  %v2164_v35 = vadd.f32 %v5031_v13, %v4106_v9  ;;  %v3225_v42 = vadd.f32 %v3224_v32, %v2935_v25 }
 0x1df   : > { %v3074_v48 = vadd.f32 %v3073_v8, %v2804_v7  ;;  %v2156_v14 = vadd.f32 %v5031_v13, %v2155_v11  ;;  %v4107_v24 = vpop.f32.mrb[126].mxu0 }
 0x1e0   : > { %v2158_v29 = vpop.f32.mrb[127].mxu0  ;;  %v2167_v45 = vadd.f32 %v5031_v13, %v4107_v24  ;;  %v3226_v52 = vadd.f32 %v3225_v42, %v2936_v31  ;;  %v2808_v54 = vmax.f32 %v2164_v35, 0.0 }
 0x1e1   : > { %v2806_v36 = vmax.f32 %v2156_v14, 0.0  ;;  %v3075_v37 = vadd.f32 %v3074_v48, %v2805_v19  ;;  %v2159_v40 = vadd.f32 %v5031_v13, %v2158_v29 }
 0x1e2   : > { %v5182_v59 = vadd.f32 %v3226_v52, %v2937_v41  ;;  %v2809_v60 = vmax.f32 %v2167_v45, 0.0 }
 0x1e3   : > { %v3076_v43 = vadd.f32 %v3075_v37, %v2806_v36  ;;  %v2807_v47 = vmax.f32 %v2159_v40, 0.0 }
 0x1e5   : > { %v3077_v56 = vadd.f32 %v3076_v43, %v2807_v47  ;;  %v4110_v33 = vpop.f32.mrb[128].mxu0 }
 0x1e6   : > { %v2171_v57 = vpop.f32.mrb[129].mxu0  ;;  %v2180_v7 = vadd.f32 %v5188_v4, %v4110_v33 }
 0x1e7   : > { %v3078_v62 = vadd.f32 %v3077_v56, %v2808_v54  ;;  %v2172_v0 = vadd.f32 %v5031_v13, %v2171_v57  ;;  %v4111_v2 = vpop.f32.mrb[130].mxu0 }
 0x1e8   : > { %v2174_v3 = vpop.f32.mrb[131].mxu0  ;;  %v2183_v61 = vadd.f32 %v5188_v4, %v4111_v2  ;;  %v2812_v17 = vmax.f32 %v2180_v7, 0.0 }
 0x1e9   : > { %v3079_v49 = vadd.f32 %v3078_v62, %v2809_v60  ;;  %v2175_v8 = vadd.f32 %v5188_v4, %v2174_v3  ;;  %v2810_v10 = vmax.f32 %v2172_v0, 0.0 }
 0x1ea   : > { %v2813_v24 = vmax.f32 %v2183_v61, 0.0 }
 0x1eb   : > { %v3080_v9 = vrot.slane %v3079_v49, 4  ;;  %v2811_v11 = vmax.f32 %v2175_v8, 0.0 }
 0x1ed   : > { %v3081_v12 = vadd.f32 %v3080_v9, %v3079_v49  ;;  %v3086_v13 = vadd.f32 %v2811_v11, %v2810_v10  ;;  %v4114_v19 = vpop.f32.mrb[132].mxu0 }
 0x1ee   : > { %v2187_v48 = vpop.f32.mrb[133].mxu0  ;;  %v2196_v32 = vadd.f32 %v5188_v4, %v4114_v19 }
 0x1ef   : > { %v3082_v14 = vrot.slane %v3081_v12, 2  ;;  %v3087_v25 = vadd.f32 %v3086_v13, %v2812_v17  ;;  %v2188_v29 = vadd.f32 %v5188_v4, %v2187_v48  ;;  %v4115_v31 = vpop.f32.mrb[134].mxu0  ;;  %v2220_v13 = vadd.f32 %v5188_v4, %v4843_v39 }
 0x1f0   : > { %v2190_v35 = vpop.f32.mrb[135].mxu0  ;;  %v2199_v45 = vadd.f32 %v5188_v4, %v4115_v31  ;;  %v2816_v54 = vmax.f32 %v2196_v32, 0.0  ;;  %v2231_v32 = vadd.f32 %v5188_v4, %v4847_v44  ;;  %v2236_v39 = vadd.f32 %v5188_v4, %v4864_v1 }
 0x1f1   : > { %v3083_v36 = vadd.f32 %v3082_v14, %v3081_v12  ;;  %v2814_v37 = vmax.f32 %v2188_v29, 0.0  ;;  %v3088_v40 = vadd.f32 %v3087_v25, %v2813_v24  ;;  %v2191_v41 = vadd.f32 %v5188_v4, %v2190_v35 }
 0x1f2   : > { %v2817_v62 = vmax.f32 %v2199_v45, 0.0  ;;  %v2223_v14 = vadd.f32 %v5188_v4, %v4850_v46  ;;  %v2228_v29 = vadd.f32 %v5188_v4, %v4833_v34  ;;  %v2822_v31 = vmax.f32 %v2220_v13, 0.0 }
 0x1f3   : > { %v3084_v42 = vrot.slane %v3083_v36, 1  ;;  %v3089_v43 = vadd.f32 %v3088_v40, %v2814_v37  ;;  %v2815_v47 = vmax.f32 %v2191_v41, 0.0  ;;  %v2825_v41 = vmax.f32 %v2231_v32, 0.0 }
 0x1f4   : > { %v2823_v35 = vmax.f32 %v2223_v14, 0.0  ;;  %v2824_v37 = vmax.f32 %v2228_v29, 0.0  ;;  %v2239_v46 = vadd.f32 %v5188_v4, %v4870_v6  ;;  %v2244_v34 = vadd.f32 %v5188_v4, %v4860_v63 }
 0x1f5   : > { %v3085_v52 = vadd.f32 %v3084_v42, %v3083_v36  ;;  %v3090_v56 = vadd.f32 %v3089_v43, %v2815_v47  ;;  %v4118_v33 = vpop.f32.mrb[136].mxu0  ;;  %v2826_v43 = vmax.f32 %v2236_v39, 0.0  ;;  %v2247_v44 = vadd.f32 %v5188_v4, %v4868_v5 }
 0x1f6   : > { %v2203_v57 = vpop.f32.mrb[137].mxu0  ;;  %v2212_v49 = vadd.f32 %v5188_v4, %v4118_v33  ;;  %v2827_v47 = vmax.f32 %v2239_v46, 0.0  ;;  %v2252_v1 = vadd.f32 %v5188_v4, %v4881_v23  ;;  %v2255_v6 = vadd.f32 %v5188_v4, %v4887_v28 }
 0x1f7   : > { %v3238_v60 = vmul.f32 0.00390625, %v3085_v52  ;;  %v3091_v0 = vadd.f32 %v3090_v56, %v2816_v54  ;;  %v2204_v2 = vadd.f32 %v5188_v4, %v2203_v57  ;;  %v4119_v3 = vpop.f32.mrb[138].mxu0  ;;  %v2828_v54 = vmax.f32 %v2244_v34, 0.0 }
 0x1f8   : > { %v2206_v7 = vpop.f32.mrb[139].mxu0  ;;  %v2215_v12 = vadd.f32 %v5188_v4, %v4119_v3  ;;  %v2820_v19 = vmax.f32 %v2212_v49, 0.0  ;;  %v2829_v33 = vmax.f32 %v2247_v44, 0.0  ;;  %v2260_v63 = vadd.f32 %v5188_v4, %v4878_v22 }
 0x1f9   : > { %v2818_v8 = vmax.f32 %v2204_v2, 0.0  ;;  %v3092_v9 = vadd.f32 %v3091_v0, %v2817_v62  ;;  %v2207_v10 = vadd.f32 %v5188_v4, %v2206_v7  ;;  %v5201_v61 = vsel %vm3278_vm4, %v3238_v60, %v5139_v26 }
 0x1fa   : > { %v2821_v24 = vmax.f32 %v2215_v12, 0.0  ;;  %v2830_v60 = vmax.f32 %v2252_v1, 0.0  ;;  %v2263_v5 = vadd.f32 %v5188_v4, %v4885_v27  ;;  %v2831_v0 = vmax.f32 %v2255_v6, 0.0 }
 0x1fb   : > { %v3093_v11 = vadd.f32 %v3092_v9, %v2818_v8  ;;  %v2819_v17 = vmax.f32 %v2207_v10, 0.0  ;;  %v2832_v3 = vmax.f32 %v2260_v63, 0.0  ;;  %v2268_v23 = vadd.f32 %v5188_v4, %v4897_v51  ;;  %v3360_v63 = vld [vmem:[%s5330_s5 + $0x8] sm:$0xff] }
 0x1fc   : > { %v2833_v7 = vmax.f32 %v2263_v5, 0.0  ;;  %v2271_v28 = vadd.f32 %v5188_v4, %v4909_v58  ;;  %v2276_v22 = vadd.f32 %v5188_v4, %v4894_v50  ;;  %v2279_v27 = vadd.f32 %v5188_v4, %v4901_v55 }
 0x1fd   : > { %v3094_v48 = vadd.f32 %v3093_v11, %v2819_v17  ;;  %v2834_v9 = vmax.f32 %v2268_v23, 0.0  ;;  %v2284_v51 = vadd.f32 %v5188_v4, %v4920_v16  ;;  %v2287_v58 = vadd.f32 %v5188_v4, %v4926_v21 }
 0x1fe   : > { %v2835_v11 = vmax.f32 %v2271_v28, 0.0  ;;  %v2836_v17 = vmax.f32 %v2276_v22, 0.0  ;;  %v3154_v14 = vrot.slane %v5020_v30, 4  ;;  %v2292_v50 = vadd.f32 %v5188_v4, %v4917_v15  ;;  %v3364_v22 = vld [vmem:[%s5330_s5 + $0x28] sm:$0xff] }
 0x1ff   : > { %v3095_v25 = vadd.f32 %v3094_v48, %v2820_v19  ;;  %v2837_v19 = vmax.f32 %v2279_v27, 0.0  ;;  %v3191_v55 = vrot.slane %v5117_v18, 4  ;;  %v3228_v29 = vrot.slane %v5182_v59, 4 }
 0x200   : > { %v2295_v16 = vadd.f32 %v5188_v4, %v4924_v20  ;;  %v3155_v32 = vadd.f32 %v3154_v14, %v5020_v30  ;;  %v2840_v21 = vmax.f32 %v2292_v50, 0.0  ;;  %v3373_v50 = vld [vmem:[%s5330_s5 + $0x70] sm:$0xff] }
 0x201   : > { %v3096_v26 = vadd.f32 %v3095_v25, %v2821_v24  ;;  %v2838_v24 = vmax.f32 %v2284_v51, 0.0  ;;  %v3369_v51 = vld [vmem:[%s5330_s5 + $0x50] sm:$0xff] }
 0x202   : > { %v2841_v15 = vmax.f32 %v2295_v16, 0.0 }
 0x203   : > { %v3097_v36 = vadd.f32 %v3096_v26, %v2822_v31  ;;  %v2839_v31 = vmax.f32 %v2287_v58, 0.0  ;;  %v3371_v58 = vld [vmem:[%s5330_s5 + $0x60] sm:$0xff] }
 0x205   : > { %v3098_v40 = vadd.f32 %v3097_v36, %v2823_v35  ;;  %v3192_v35 = vadd.f32 %v3191_v55, %v5117_v18 }
 0x207   : > { %v3099_v42 = vadd.f32 %v3098_v40, %v2824_v37  ;;  %v3229_v37 = vadd.f32 %v3228_v29, %v5182_v59  ;;  %v3156_v40 = vrot.slane %v3155_v32, 2 }
 0x209   : > { %v3100_v45 = vadd.f32 %v3099_v42, %v2825_v41  ;;  %v3193_v41 = vrot.slane %v3192_v35, 2  ;;  %v3230_v42 = vrot.slane %v3229_v37, 2 }
 0x20b   : > { %v3101_v52 = vadd.f32 %v3100_v45, %v2826_v43  ;;  %v3157_v43 = vadd.f32 %v3156_v40, %v3155_v32  ;;  %v3194_v45 = vadd.f32 %v3193_v41, %v3192_v35  ;;  %v3231_v4 = vadd.f32 %v3230_v42, %v3229_v37 }
 0x20d   : > { %v3102_v56 = vadd.f32 %v3101_v52, %v2827_v47  ;;  %v3158_v47 = vrot.slane %v3157_v43, 1  ;;  %v3195_v30 = vrot.slane %v3194_v45, 1 }
 0x20f   : > { %v3103_v57 = vadd.f32 %v3102_v56, %v2828_v54  ;;  %v3232_v54 = vrot.slane %v3231_v4, 1  ;;  %v3159_v1 = vadd.f32 %v3158_v47, %v3157_v43  ;;  %v3196_v59 = vadd.f32 %v3195_v30, %v3194_v45 }
 0x211   : > { %v3104_v62 = vadd.f32 %v3103_v57, %v2829_v33  ;;  %v3233_v33 = vadd.f32 %v3232_v54, %v3231_v4  ;;  %v3359_v57 = vld [vmem:[%s5330_s5] sm:$0xff] }
 0x213   : > { %v3105_v2 = vadd.f32 %v3104_v62, %v2830_v60  ;;  %v3240_v60 = vmul.f32 0.00390625, %v3159_v1  ;;  %v3241_v62 = vmul.f32 0.00390625, %v3196_v59 }
 0x215   : > { %v3106_v49 = vadd.f32 %v3105_v2, %v2831_v0  ;;  %v3242_v0 = vmul.f32 0.00390625, %v3233_v33 }
 0x217   : > { %v3107_v8 = vadd.f32 %v3106_v49, %v2832_v3  ;;  %v4331_v3 = vpack.c.bf16 %v3360_v63, %v3359_v57  ;;  %v3361_v49 = vld [vmem:[%s5330_s5 + $0x10] sm:$0xff] }
 0x219   : > { %v3108_v10 = vadd.f32 %v3107_v8, %v2833_v7  ;;  %v3362_v7 = vld [vmem:[%s5330_s5 + $0x18] sm:$0xff] }
 0x21a   : > { %v4334_v8 = vpack.c.bf16 %v3362_v7, %v3361_v49 }
 0x21b   : > { %v3109_v12 = vadd.f32 %v3108_v10, %v2834_v9  ;;  %v3365_v10 = vld [vmem:[%s5330_s5 + $0x30] sm:$0xff] }
 0x21d   : > { %v3110_v13 = vadd.f32 %v3109_v12, %v2835_v11  ;;  %v3367_v11 = vld [vmem:[%s5330_s5 + $0x40] sm:$0xff]  ;;  %v3368_v12 = vld [vmem:[%s5330_s5 + $0x48] sm:$0xff] }
 0x21f   : > { %v3111_v48 = vadd.f32 %v3110_v13, %v2836_v17  ;;  %v4343_v17 = vpack.c.bf16 %v3368_v12, %v3367_v11  ;;  %v3370_v13 = vld [vmem:[%s5330_s5 + $0x58] sm:$0xff] }
 0x221   : > { %v3112_v25 = vadd.f32 %v3111_v48, %v2837_v19  ;;  %v4346_v19 = vpack.c.bf16 %v3370_v13, %v3369_v51  ;;  %v3372_v48 = vld [vmem:[%s5330_s5 + $0x68] sm:$0xff] }
 0x222   : > { %v4349_v14 = vpack.c.bf16 %v3372_v48, %v3371_v58 }
 0x223   : > { %v3113_v26 = vadd.f32 %v3112_v25, %v2838_v24  ;;  %v3374_v24 = vld [vmem:[%s5330_s5 + $0x78] sm:$0xff]  ;;  %v3807_v25 = vld [vmem:[%s5329_s4] ss:$0 sm:$0xff] }
 0x224   : > { %v4352_v55 = vpack.c.bf16 %v3374_v24, %v3373_v50 }
 0x225   : > { %v3114_v36 = vadd.f32 %v3113_v26, %v2839_v31  ;;  %v3808_v31 = vld [vmem:[%s5331_s6] ss:$0 sm:$0xff] }
 0x227   : > { %v3115_v39 = vadd.f32 %v3114_v36, %v2840_v21 }
 0x229   : > { %v3116_v46 = vadd.f32 %v3115_v39, %v2841_v15 }
 0x22b   : > { %v3117_v34 = vrot.slane %v3116_v46, 4 }
 0x22d   : > { %v3118_v20 = vadd.f32 %v3117_v34, %v3116_v46 }
 0x22f   : > { %v3119_v44 = vrot.slane %v3118_v20, 2 }
 0x231   : > { %v3120_v52 = vadd.f32 %v3119_v44, %v3118_v20 }
 0x233   : > { %v3121_v18 = vrot.slane %v3120_v52, 1 }
 0x235   : > { %v3122_v56 = vadd.f32 %v3121_v18, %v3120_v52 }
 0x237   : > { %v3239_v6 = vmul.f32 0.00390625, %v3122_v56 }
 0x239   : > { %v3281_v5 = vsel %vm3280_vm5, %v3239_v6, %v5201_v61  ;;  %v3363_v61 = vld [vmem:[%s5330_s5 + $0x20] sm:$0xff] }
 0x23a   : > { %v3283_v2 = vsel %vm3282_vm6, %v3240_v60, %v3281_v5  ;;  %v4337_v9 = vpack.c.bf16 %v3364_v22, %v3363_v61 }
 0x23b   : > { %v3285_v23 = vsel %vm3284_vm7, %v3241_v62, %v3283_v2 }
 0x23c   : > { %v3287_v28 = vsel %vm3286_vm8, %v3242_v0, %v3285_v23 }
 0x23d   : > { %4269 = vmatmul.mubr.f32.vlgmr.msra.gmra.mrb[116].mxu1 %v3287_v28 }
 0x23e   : > { %4332 = vmatpush3.bf16.msra.mxu1 %v4331_v3  ;;  %4303 = vmatprep.mubr.msk.f32.mxu1 %vm4510_vm2, %v4511_v53  ;;  %v3366_v53 = vld [vmem:[%s5330_s5 + $0x38] sm:$0xff] }
 0x23f   : > { %4333 = vmatprep.subr.bf16.mxu1 %v4509_v38  ;;  %v4340_v27 = vpack.c.bf16 %v3366_v53, %v3365_v10 }
 0x242   : > { %4335 = vmatpush3.bf16.msra.mxu1 %v4334_v8 }
 0x243   : > { %4336 = vmatprep.subr.bf16.mxu1 %v4509_v38 }
 0x246   : > { %4338 = vmatpush3.bf16.msra.mxu1 %v4337_v9 }
 0x247   : > { %4339 = vmatprep.subr.bf16.mxu1 %v4509_v38 }
 0x24a   : > { %4341 = vmatpush3.bf16.msra.mxu1 %v4340_v27 }
 0x24b   : > { %4342 = vmatprep.subr.bf16.mxu1 %v4509_v38 }
 0x24e   : > { %4344 = vmatpush3.bf16.msra.mxu1 %v4343_v17 }
 0x24f   : > { %4345 = vmatprep.subr.bf16.mxu1 %v4509_v38 }
 0x252   : > { %4347 = vmatpush3.bf16.msra.mxu1 %v4346_v19 }
 0x253   : > { %4348 = vmatprep.subr.bf16.mxu1 %v4509_v38 }
 0x256   : > { %4350 = vmatpush3.bf16.msra.mxu1 %v4349_v14 }
 0x257   : > { %4351 = vmatprep.subr.bf16.mxu1 %v4509_v38 }
 0x25a   : > { %4353 = vmatpush3.bf16.msra.mxu1 %v4352_v55 }
 0x310   : > { %v3355_v38 = vpop.f32.mrb[116].mxu1 }
 0x311   : > { %v3356_v29 = vadd.f32 %v3807_v25, %v3355_v38  ;;  %v4270_v16 = vpop.f32.mrb[117].mxu1 }
 0x313   : > { %3452 = vst [vmem:[%s319_s11] sm:$0xff] %v3356_v29  ;;  %4304 = vmatmul.mubr.f32.vlgmr.msra.gmra.mrb[118].mxu1 %v3356_v29 }
 0x3e6   : > { %v3448_v26 = vpop.f32.mrb[118].mxu1 }
 0x3e7   : > { %v3449_v32 = vadd.f32 %v3808_v31, %v3448_v26  ;;  %v4305_v21 = vpop.f32.mrb[119].mxu1 }
 0x3e9   : > { %3453 = vst [vmem:[%s315_s28] sm:$0xff] %v3449_v32 }
 0x3ea PF: > { %s19_s27 = sadd.s32 1, %s4507_s27  }
 0x3eb   : > { %p16_p5 = scmp.ge.s32.totalorder %s19_s27, 5  }
 0x3ed   :  { %18 = sbr.rel (!%p16_p5) target bundleno = 1 (0x1), region = 90 }

// kernel: _nach_forward.5
= control target key start
LH: loop header
LB: loop body
LE: loop exit
PB: predicated region body
PF: predicated region fallthrough
CT: control target
= control target key end

     0   :  { %16 = vsyncpa [#allocation3], 0  ;;  %s500_s0 = inlined_call_operand.vmem [shape: f32[8,128], index: 0, kind: input, shape index: {}]   ;;  %s501_s1 = inlined_call_operand.vmem [shape: f32[8,128], index: 1, kind: input, shape index: {}]   ;;  %s502_s2 = inlined_call_operand.vmem [shape: f32[4,128], index: 2, kind: input, shape index: {}]   ;;  %s503_s3 = inlined_call_operand.vmem [shape: f32[4,128], index: 3, kind: input, shape index: {}]   ;;  %s504_s4 = inlined_call_operand.vmem [shape: f32[8,128], index: 4, kind: input, shape index: {}]   ;;  %s505_s5 = inlined_call_operand.vmem [shape: f32[8,128], index: 5, kind: input, shape index: {}]   ;;  %s506_s6 = inlined_call_operand.vmem [shape: f32[8,1], index: 6, kind: input, shape index: {}]   ;;  %s507_s7 = inlined_call_operand.hbm [shape: f32[1,1], index: 7, kind: output, shape index: {0}]   ;;  %s508_s8 = inlined_call_operand.hbm [shape: f32[1,1], index: 8, kind: output, shape index: {1}]   ;;  %s509_s9 = inlined_call_operand.hbm [shape: f32[1,1], index: 9, kind: output, shape index: {2}]   ;;  %s510_s10 = inlined_call_operand.hbm [shape: f32[1,1], index: 10, kind: output, shape index: {3}]  }
   0x1   :  { %17 = vsyncpa [#allocation5], 0  ;;  %v33_v0 = vlaneseq }
   0x2   :  { %18 = vsyncpa [#allocation8], 0  ;;  %v90_v2 = vld [vmem:[%s502_s2] sm:$0xf]  ;;  %vm95_vm0 = vcmask 1043456   ;;  %vm57_vm3 = vcmask 7168  }
   0x3   :  { %v396_v1 = vand.u32 127, %v33_v0  ;;  %v130_v4 = vld [vmem:[%s504_s4] sm:$0xff]  ;;  %vm115_vm4 = vcmask 3072   ;;  %vm71_vm5 = vcmask 0   ;;  %s337_s21 = smov [#allocation2]  }
   0x4   :  { %v36_v7 = vld [vmem:[%s500_s0] sm:$0xff]  ;;  %s170_s22 = sshll.u32 %s337_s21, 4  ;;  %s171_s22 = int_to_ptr.vmem [resolvable:$true] %s170_s22 }
   0x5   :  { %vm35_vm1 = vcmp.lt.s32.totalorder %v396_v1, 10  ;;  %v37_v8 = vld [vmem:[%s501_s1] sm:$0xff]  ;;  %v74_v53 = vrot.slane %v36_v7, 4  ;;  %s243_s23 = scalar_lea.vmem %s171_s22, 16  ;;  %s247_s24 = scalar_lea.vmem %s171_s22, 32 }
   0x6   :  { %v404_v3 = vsel %vm35_vm1, %v90_v2, -1e+30  ;;  %v132_v6 = vsel %vm35_vm1, %v130_v4, -1e+30  ;;  %v38_v9 = vmul.f32 %v37_v8, %v36_v7  ;;  %v131_v42 = vld [vmem:[%s505_s5] sm:$0xff]  ;;  %p244_p0 = scmp.ne.s32.totalorder %s171_s22, %s243_s23  ;;  %p248_p1 = scmp.lt.s32.totalorder %s171_s22, %s171_s22 }
   0x7   :  { %v96_v5 = vsel %vm95_vm0, %v404_v3, -inf  ;;  %v91_v48 = vld [vmem:[%s503_s3] sm:$0xf]  ;;  %v75_v54 = vadd.f32 %v74_v53, %v36_v7  ;;  %p249_p2 = scmp.lt.s32.totalorder %s247_s24, %s243_s23 }
   0x8   :  { %97 = vmax.xlane.f32.xlu0 %v96_v5  ;;  %v149_v63 = vld [vmem:[%s506_s6] sm:$0xff] }
   0x9   :  { %v76_v55 = vrot.slane %v75_v54, 2  ;;  %p250_p3 = por %p249_p2, %p248_p1 }
   0xb   :  { %v77_v56 = vadd.f32 %v76_v55, %v75_v54  ;;  %p251_p4 = pnand %p250_p3, %p244_p0 }
   0xc   :  { %133 = vmax.xlane.f32.xlu0 %v132_v6 }
   0xd   :  { %v78_v57 = vrot.slane %v77_v56, 1 }
   0xf   :  { %v79_v58 = vadd.f32 %v78_v57, %v77_v56 }
  0x10   :  { %39 = vadd.xlane.f32.xlu0 %v38_v9 }
  0x11   :  { %v80_v59 = vmul.f32 0.125, %v79_v58 }
  0x13   :  { %v81_v60 = vadd.f32 1e-10, %v80_v59 }
  0x95   :  { %v98_v10 = vpop.xlane.xlu0 %97 }
  0x96   :  { %v99_v11 = vsub.f32 %v404_v3, %v98_v10 }
  0x98   :  { %v100_v12 = vmul.f32 1.442695, %v99_v11 }
  0x99   :  { %v134_v13 = vpop.xlane.xlu0 %133 }
  0x9a   :  { %v135_v14 = vsub.f32 %v132_v6, %v134_v13  ;;  %229 = vpow2.f32 %v100_v12 }
  0x9c   :  { %v136_v15 = vmul.f32 1.442695, %v135_v14 }
  0x9d   :  { %v40_v21 = vpop.xlane.xlu0 %39 }
  0x9e   :  { %231 = vpow2.f32 %v136_v15  ;;  %v43_v22 = vand.u32 2147483647, %v40_v21  ;;  %v41_v33 = vsub.f32 0.0, %v40_v21 }
  0xa0   :  { %v44_v23 = vsub.f32 0.0, %v43_v22  ;;  %v42_v38 = vmax.f32 %v41_v33, 0.0 }
  0xa2   :  { %v45_v24 = vmul.f32 1.442695, %v44_v23 }
  0xa4   :  { %v230_v16 = vpop.eup %229  ;;  %233 = vpow2.f32 %v45_v24 }
  0xa5   :  { %v102_v19 = vsel %vm35_vm1, %v230_v16, 0.0 }
  0xa6   :  { %v103_v20 = vsel %vm95_vm0, %v102_v19, 0.0 }
  0xa8   :  { %v232_v17 = vpop.eup %231 }
  0xa9   :  { %v138_v18 = vsel %vm35_vm1, %v232_v17, 0.0 }
  0xaa   :  { %139 = vadd.xlane.f32.xlu1 %v138_v18 }
  0xae   :  { %104 = vadd.xlane.f32.xlu1 %v103_v20  ;;  %v234_v25 = vpop.eup %233 }
  0xaf   :  { %v47_v26 = vadd.f32 1.0, %v234_v25  ;;  %v50_v28 = vmul.f32 -0.5, %v234_v25  ;;  %v53_v32 = vand.u32 2147483647, %v234_v25 }
  0xb1   :  { %235 = vlog2.f32 %v47_v26  ;;  %v51_v30 = vadd.f32 1.0, %v50_v28  ;;  %vm54_vm2 = vcmp.lt.f32.partialorder %v53_v32, 0.0004427343 }
  0xb3   :  { %v52_v35 = vmul.f32 %v234_v25, %v51_v30 }
  0xbb   :  { %v236_v31 = vpop.eup %235 }
  0xbc   :  { %v49_v34 = vmul.f32 0.6931472, %v236_v31 }
  0xbe   :  { %v55_v40 = vsel %vm54_vm2, %v52_v35, %v49_v34 }
  0xbf   :  { %v56_v45 = vadd.f32 %v55_v40, %v42_v38 }
  0xc1   :  { %v58_v50 = vsel %vm57_vm3, %v56_v45, 0.0 }
 0x137   :  { %v140_v27 = vpop.xlane.xlu1 %139 }
 0x138   :  { %237 = vlog2.f32 %v140_v27 }
 0x13b   :  { %v105_v29 = vpop.xlane.xlu1 %104 }
 0x13c   :  { %239 = vlog2.f32 %v105_v29 }
 0x13d   :  { %241 = vlog2.f32 %v81_v60 }
 0x142   :  { %v238_v36 = vpop.eup %237 }
 0x143   :  { %v142_v37 = vmul.f32 0.6931472, %v238_v36 }
 0x145   :  { %v143_v39 = vadd.f32 %v142_v37, %v134_v13 }
 0x146   :  { %v240_v41 = vpop.eup %239 }
 0x147   :  { %v107_v43 = vmul.f32 0.6931472, %v240_v41  ;;  %v144_v44 = vsub.f32 %v132_v6, %v143_v39  ;;  %v242_v61 = vpop.eup %241 }
 0x148   :  { %v83_v2 = vmul.f32 0.6931472, %v242_v61 }
 0x149   :  { %v108_v46 = vadd.f32 %v107_v43, %v98_v10  ;;  %v145_v47 = vmul.f32 %v144_v44, %v131_v42 }
 0x14a   :  { %v84_v9 = vmul.f32 %v83_v2, %v80_v59 }
 0x14b   :  { %146 = vadd.xlane.f32.xlu1 %v145_v47  ;;  %v109_v49 = vsub.f32 %v404_v3, %v108_v46 }
 0x14c   :  { %v85_v13 = vsel %vm35_vm1, %v84_v9, 0.0 }
 0x14d   :  { %v110_v51 = vmul.f32 %v109_v49, %v91_v48 }
 0x14f   :  { %v111_v52 = vsel %vm95_vm0, %v110_v51, 0.0  ;;  %59 = vadd.xlane.f32.xlu1 %v58_v50 }
 0x150   :  { %112 = vadd.xlane.f32.xlu0 %v111_v52 }
 0x1d8   :  { %v147_v62 = vpop.xlane.xlu1 %146 }
 0x1d9   :  { %v148_v0 = vsub.f32 0.0, %v147_v62 }
 0x1db   :  { %v150_v3 = vmul.f32 %v149_v63, %v148_v0 }
 0x1dc   :  { %v60_v4 = vpop.xlane.xlu1 %59 }
 0x1dd   :  { %v113_v5 = vpop.xlane.xlu0 %112  ;;  %v151_v6 = vsel %vm57_vm3, %v150_v3, 0.0  ;;  %v61_v7 = vrot.slane %v60_v4, 4 }
 0x1de   :  { %v114_v8 = vsub.f32 0.0, %v113_v5  ;;  %152 = vadd.xlane.f32.xlu1 %v151_v6 }
 0x1df   :  { %v62_v10 = vadd.f32 %v61_v7, %v60_v4 }
 0x1e0   :  { %v116_v11 = vsel %vm115_vm4, %v114_v8, 0.0 }
 0x1e1   :  { %117 = vadd.xlane.f32.xlu0 %v116_v11  ;;  %v63_v12 = vrot.slane %v62_v10, 2 }
 0x1e3   :  { %v64_v14 = vadd.f32 %v63_v12, %v62_v10 }
 0x1e5   :  { %86 = vadd.xlane.f32.xlu0 %v85_v13  ;;  %v65_v15 = vrot.slane %v64_v14, 1 }
 0x1e7   :  { %v66_v16 = vadd.f32 %v65_v15, %v64_v14 }
 0x1e9   :  { %219 = vpush %v66_v16 }
 0x21a   :  { %s220_s6 = spop %219 }
 0x21b   :  { %v68_v17 = vstv %s220_s6 }
 0x21c   :  { %v70_v18 = vmul.f32 0.125, %v68_v17 }
 0x21e   :  { %72 = vst.msk [vmem:[#allocation2] sm:$0x1] %vm71_vm5, %v70_v18 }
 0x21f   :  { %254 = shalt.err (!%p251_p4)
}
 0x220   :  { %s255_s27 = scalar_lea.hbm %s507_s7, 16 }
 0x221   :  { %p256_p5 = scmp.ne.s32.totalorder %s507_s7, %s255_s27  ;;  %p259_p6 = scmp.lt.u32.totalorder %s255_s27, %s507_s7 }
 0x223   :  { %p261_p7 = pnand %p259_p6, %p256_p5 }
 0x225   :  { %264 = shalt.err (!%p261_p7)
}
 0x226   :  { %173 = dma.vmem_to_hbm [thread:$0]  %s171_s22, 16, %s507_s7, [#allocation3]  }
 0x227   :  { %s338_s14 = smov [#allocation4]  }
 0x228   :  { %s180_s15 = sshll.u32 %s338_s14, 4  ;;  %s181_s15 = int_to_ptr.vmem [resolvable:$true] %s180_s15 }
 0x229   :  { %s265_s16 = scalar_lea.vmem %s181_s15, 16  ;;  %s269_s7 = scalar_lea.vmem %s181_s15, 32 }
 0x22a   :  { %p266_p8 = scmp.ne.s32.totalorder %s181_s15, %s265_s16  ;;  %p270_p9 = scmp.lt.s32.totalorder %s181_s15, %s181_s15 }
 0x22b   :  { %p271_p10 = scmp.lt.s32.totalorder %s269_s7, %s265_s16 }
 0x22d   :  { %p272_p11 = por %p271_p10, %p270_p9 }
 0x22f   :  { %p273_p12 = pnand %p272_p11, %p266_p8 }
 0x26b   :  { %v153_v1 = vpop.xlane.xlu1 %152 }
 0x26c   :  { %v154_v19 = vrot.slane %v153_v1, 4 }
 0x26e   :  { %v155_v20 = vadd.f32 %v154_v19, %v153_v1  ;;  %v118_v21 = vpop.xlane.xlu0 %117 }
 0x26f   :  { %v119_v22 = vrot.slane %v118_v21, 4 }
 0x270   :  { %v156_v23 = vrot.slane %v155_v20, 2 }
 0x271   :  { %v120_v24 = vadd.f32 %v119_v22, %v118_v21 }
 0x272   :  { %v157_v25 = vadd.f32 %v156_v23, %v155_v20  ;;  %v87_v26 = vpop.xlane.xlu0 %86 }
 0x273   :  { %v121_v27 = vrot.slane %v120_v24, 2  ;;  %v88_v28 = vsub.f32 0.0, %v87_v26 }
 0x274   :  { %v158_v30 = vrot.slane %v157_v25, 1 }
 0x275   :  { %v122_v29 = vadd.f32 %v121_v27, %v120_v24  ;;  %89 = vst.msk [vmem:[#allocation4] sm:$0x1] %vm71_vm5, %v88_v28 }
 0x276   :  { %276 = shalt.err (!%p273_p12)
}
 0x277   :  { %s277_s18 = scalar_lea.hbm %s508_s8, 16 }
 0x278   :  { %p278_p13 = scmp.ne.s32.totalorder %s508_s8, %s277_s18  ;;  %p281_p0 = scmp.lt.u32.totalorder %s277_s18, %s508_s8 }
 0x27a   :  { %p283_p1 = pnand %p281_p0, %p278_p13 }
 0x27c   :  { %286 = shalt.err (!%p283_p1)
}
 0x27d   :  { %183 = dma.vmem_to_hbm [thread:$0]  %s181_s15, 16, %s508_s8, [#allocation5]   ;;  %v123_v31 = vrot.slane %v122_v29, 1  ;;  %v159_v33 = vadd.f32 %v158_v30, %v157_v25 }
 0x27e   :  { %s339_s5 = smov [#allocation6]   ;;  %s340_s22 = smov [#allocation7]  }
 0x27f   :  { %v124_v32 = vadd.f32 %v123_v31, %v122_v29  ;;  %s190_s6 = sshll.u32 %s339_s5, 4  ;;  %s200_s23 = sshll.u32 %s340_s22, 4  ;;  %s191_s6 = int_to_ptr.vmem [resolvable:$true] %s190_s6  ;;  %s466_s23 = int_to_ptr.vmem [resolvable:$true] %s200_s23 }
 0x280   :  { %s287_s8 = scalar_lea.vmem %s191_s6, 16  ;;  %s291_s25 = scalar_lea.vmem %s191_s6, 32 }
 0x281   :  { %221 = vpush %v124_v32  ;;  %p288_p2 = scmp.ne.s32.totalorder %s191_s6, %s287_s8  ;;  %p292_p3 = scmp.lt.s32.totalorder %s191_s6, %s191_s6 }
 0x282   :  { %223 = vpush %v159_v33  ;;  %p293_p4 = scmp.lt.s32.totalorder %s291_s25, %s287_s8 }
 0x284   :  { %p294_p5 = por %p293_p4, %p292_p3 }
 0x286   :  { %p295_p6 = pnand %p294_p5, %p288_p2 }
 0x2b2   :  { %s222_s21 = spop %221 }
 0x2b3   :  { %v126_v34 = vstv %s222_s21  ;;  %s224_s24 = spop %223 }
 0x2b4   :  { %v128_v35 = vmul.f32 0.25, %v126_v34  ;;  %v161_v36 = vstv %s224_s24 }
 0x2b5   :  { %v162_v37 = vmul.f32 0.125, %v161_v36 }
 0x2b6   :  { %129 = vst.msk [vmem:[#allocation6] sm:$0x1] %vm71_vm5, %v128_v35 }
 0x2b7   :  { %163 = vst.msk [vmem:[#allocation7] sm:$0x1] %vm71_vm5, %v162_v37 }
 0x2b8   :  { %298 = shalt.err (!%p295_p6)
}
 0x2b9   :  { %s299_s28 = scalar_lea.hbm %s509_s9, 16 }
 0x2ba   :  { %p300_p7 = scmp.ne.s32.totalorder %s509_s9, %s299_s28  ;;  %p303_p8 = scmp.lt.u32.totalorder %s299_s28, %s509_s9 }
 0x2bc   :  { %p305_p9 = pnand %p303_p8, %p300_p7 }
 0x2be   :  { %308 = shalt.err (!%p305_p9)
}
 0x2bf   :  { %193 = dma.vmem_to_hbm [thread:$0]  %s191_s6, 16, %s509_s9, [#allocation5]  }
 0x2c0   :  { %s309_s15 = scalar_lea.vmem %s466_s23, 16  ;;  %s313_s16 = scalar_lea.vmem %s466_s23, 32 }
 0x2c1   :  { %p310_p10 = scmp.ne.s32.totalorder %s466_s23, %s309_s15  ;;  %p314_p11 = scmp.lt.s32.totalorder %s466_s23, %s466_s23 }
 0x2c2   :  { %p315_p12 = scmp.lt.s32.totalorder %s313_s16, %s309_s15 }
 0x2c4   :  { %p316_p13 = por %p315_p12, %p314_p11 }
 0x2c6   :  { %p317_p0 = pnand %p316_p13, %p310_p10 }
 0x2c8   :  { %320 = shalt.err (!%p317_p0)
}
 0x2c9   :  { %s321_s17 = scalar_lea.hbm %s510_s10, 16 }
 0x2ca   :  { %p322_p1 = scmp.ne.s32.totalorder %s510_s10, %s321_s17  ;;  %p325_p2 = scmp.lt.u32.totalorder %s321_s17, %s510_s10 }
 0x2cc   :  { %p327_p3 = pnand %p325_p2, %p322_p1 }
 0x2ce   :  { %330 = shalt.err (!%p327_p3)
}
 0x2cf   :  { %203 = dma.vmem_to_hbm [thread:$0]  %s466_s23, 16, %s510_s10, [#allocation8]  }
 0x2d0   :  { %331 = dma.done.wait [#allocation3], 16  }
 0x2d1   :  { %332 = vsyncadd [#allocation3], 4294967280 }
 0x2d2   :  { %333 = dma.done.wait [#allocation5], 32  }
 0x2d3   :  { %334 = vsyncadd [#allocation5], 4294967264 }
 0x2d4   :  { %335 = dma.done.wait [#allocation8], 16  }
 0x2d5   :  { %336 = vsyncadd [#allocation8], 4294967280 }
 0x2d6   :  { %216 = vsyncpa [#allocation3], 1 }
 0x2d7   :  { %217 = vsyncpa [#allocation5], 1 }
 0x2d8   :  { %218 = vsyncpa [#allocation8], 1 }

</bundles_post_ra>
